<compile_context>
chip_gen: v7x
topology: tpu7x:2x2x1
jax: 0.10.0
libtpu: 0.0.40
codegen_flags: <defaults>
</compile_context>

<pallas_src>
import functools

import jax
import jax.numpy as jnp
from jax.experimental import pallas as pl
from jax.experimental.pallas import tpu as pltpu

BN_EPS = 1e-5
_ROW_ALIGN = 16                 # bf16 sublane packing => point-tiles multiple of 16


def _round_up(x, m):
    return ((x + m - 1) // m) * m


def _edgeconv_kernel(xi_ref, xj_ref, dis_ref, w_self_ref, w_nbr_ref, pack_ref,
                     wk_ref, wq_ref, gsum_ref, gexp_ref, emat_ref, out_ref):
    k = dis_ref.shape[1]
    kk = k * k
    kc = w_nbr_ref.shape[1]          # K * C (packed lane width)
    c = out_ref.shape[1]             # C

    # --- 1x1 conv over cat([x_i, x_j - x_i]) in the packed [TN, K*C] layout.
    #   x_i @ (W1 - W2) is replicated across the K lane-blocks by w_self_rep,
    #   x_j @ W2 is the block-diagonal matmul on the lane-dense neighbor slab.
    p_self = jnp.dot(xi_ref[...], w_self_ref[...],
                     preferred_element_type=jnp.float32)                 # [TN, K*C]
    p_nbr = jnp.dot(xj_ref[...], w_nbr_ref[...],
                    preferred_element_type=jnp.float32)                  # [TN, K*C]
    pre = p_self + p_nbr + pack_ref[0:1, :]
    # ReLU then BatchNorm1d (running stats folded in the wrapper).
    # TODO(synk): training-mode BN batch statistics over the full N*K batch are
    # not computed inside the tiled kernel (eval-mode semantics only).
    feat = jnp.maximum(pre, 0.0) * pack_ref[1:2, :] + pack_ref[2:3, :]   # [TN, K*C]

    # --- Attention scores packed as r[n, b*K + a] = kv[n, a] * qv[n, b]
    # (both projections land directly in that layout -> no relayout, no slicing).
    feat_bf = feat.astype(jnp.bfloat16)
    kv_t = jnp.dot(feat_bf, wk_ref[...], preferred_element_type=jnp.float32)
    qv_r = jnp.dot(feat_bf, wq_ref[...], preferred_element_type=jnp.float32)
    r = kv_t * qv_r                                                      # [TN, K*K]
    # per-point shift (constant in a) keeps softmax-over-a exact and stable.
    r = r - jnp.max(r, axis=-1, keepdims=True)
    e = jnp.exp(r)                                                       # [TN, K*K]

    # Softmax denominator per (n, b) and the distance gate, folded into one
    # factor g[n, b] = 2*sigmoid(-dis[n, b]) / sum_a e[n, b, a].
    s = jnp.dot(e, gsum_ref[...], preferred_element_type=jnp.float32)    # [TN, K]
    g = (2.0 * jax.nn.sigmoid(-dis_ref[...])
         * pl.reciprocal(jnp.maximum(s, 1e-30), approx=True))            # [TN, K]
    eg = e * jnp.dot(g, gexp_ref[...], preferred_element_type=jnp.float32)
    eg_bf = eg.astype(jnp.bfloat16)                                      # [TN, K*K]

    # --- out[n, c] = max_b sum_a eg[n, b*K+a] * feat[n, a*C+c].
    # Per b: a one-hot expansion matmul places eg[n, b, a] onto the lanes of
    # feat block a; the product is block-summed with log2(K) lane-halving adds.
    out = None
    for b in range(k):
        w_exp = jnp.dot(eg_bf, emat_ref[b * kk:(b + 1) * kk, :],
                        preferred_element_type=jnp.float32)              # [TN, K*C]
        prod = w_exp * feat                                              # [TN, K*C]
        width = kc
        while width > c:
            width //= 2
            prod = prod[:, :width] + prod[:, width:]
        out = prod if out is None else jnp.maximum(out, prod)            # [TN, C]
    out_ref[...] = out.astype(out_ref.dtype)


def edgeconv_layer(xi, xj, dis, consts, *, tile_n, vmem_limit):
    n_pad, f = xi.shape
    k = dis.shape[1]
    kk = k * k
    kc = consts["w_nbr_blk"].shape[1]
    c = kc // k
    grid = (n_pad // tile_n,)

    const_args = (consts["w_self_rep"], consts["w_nbr_blk"], consts["pack"],
                  consts["wk_tiled"], consts["wq_rep"], consts["gsum"],
                  consts["gexp"], consts["emat"])
    const_bytes = sum(int(a.size) * a.dtype.itemsize for a in const_args)
    flops = n_pad * 2 * (f * kc + (k * f) * kc + 2 * kc * kk
                         + kk * k + k * kk + k * kk * kc) + n_pad * 32 * kc
    bytes_accessed = (int(xi.size) * 2 + int(xj.size) * 2 + int(dis.size) * 4
                      + n_pad * c * 4 + const_bytes)
    transcendentals = n_pad * (kk + k)

    return pl.pallas_call(
        _edgeconv_kernel,
        out_shape=jax.ShapeDtypeStruct((n_pad, c), jnp.float32),
        grid_spec=pltpu.PrefetchScalarGridSpec(
            num_scalar_prefetch=0,
            grid=grid,
            in_specs=[
                pl.BlockSpec((tile_n, f), lambda i: (i, 0)),        # x_i (bf16)
                pl.BlockSpec((tile_n, k * f), lambda i: (i, 0)),    # x_j slab (bf16, lane-dense)
                pl.BlockSpec((tile_n, k), lambda i: (i, 0)),        # neighbor distances
                pl.BlockSpec((f, kc), lambda i: (0, 0)),            # (W1 - W2) tiled over K
                pl.BlockSpec((k * f, kc), lambda i: (0, 0)),        # block-diagonal W2
                pl.BlockSpec((8, kc), lambda i: (0, 0)),            # [bias; bn_scale; bn_shift]
                pl.BlockSpec((kc, kk), lambda i: (0, 0)),           # kv projection
                pl.BlockSpec((kc, kk), lambda i: (0, 0)),           # qv projection
                pl.BlockSpec((kk, k), lambda i: (0, 0)),            # per-b group sum
                pl.BlockSpec((k, kk), lambda i: (0, 0)),            # gate lane-expansion
                pl.BlockSpec((k * kk, kc), lambda i: (0, 0)),       # one-hot expansions
            ],
            out_specs=pl.BlockSpec((tile_n, c), lambda i: (i, 0)),
        ),
        compiler_params=pltpu.CompilerParams(
            dimension_semantics=("parallel",),
            vmem_limit_bytes=int(vmem_limit)),
        cost_estimate=pl.CostEstimate(flops=int(flops),
                                      transcendentals=int(transcendentals),
                                      bytes_accessed=int(bytes_accessed)),
    )(xi, xj, dis, *const_args)


def init_params(key, channels):
    """Deterministic synthetic parameters (same shapes as the PyTorch module)."""
    params = []
    for i in range(len(channels) - 1):
        fin, fout = channels[i], channels[i + 1]
        key, k1, k2, k3, k4, k5 = jax.random.split(key, 6)
        params.append(dict(
            # Conv1d(2*fin, fout, 1) weight split into transposed halves.
            w1=jax.random.normal(k1, (fin, fout), jnp.float32) * 0.2,   # x_i half
            w2=jax.random.normal(k2, (fin, fout), jnp.float32) * 0.2,   # (x_j - x_i) half
            b=jax.random.normal(k3, (fout,), jnp.float32) * 0.05,
            # BatchNorm1d(fout) default init + running stats (eval mode).
            gamma=jnp.ones((fout,), jnp.float32),
            beta=jnp.zeros((fout,), jnp.float32),
            running_mean=jnp.zeros((fout,), jnp.float32),
            running_var=jnp.ones((fout,), jnp.float32),
            # Conv1d(fout, 1, 1, bias=False) weights of linear / linear2 (merge=True).
            wk=jax.random.normal(k4, (fout,), jnp.float32) * 0.2,
            wq=jax.random.normal(k5, (fout,), jnp.float32) * 0.2,
        ))
    return params


def _fold_layer_params(p, k):
    """Fold PyTorch-style params into the packed, lane-dense kernel operands."""
    f, c = p["w1"].shape
    kc, kk = k * c, k * k
    eye_k = jnp.eye(k, dtype=jnp.float32)

    # conv(cat([x_i, x_j - x_i])) == x_i @ (W1 - W2) + x_j @ W2 + b.
    w_self = p["w1"] - p["w2"]
    w_self_rep = jnp.tile(w_self, (1, k)).astype(jnp.bfloat16)              # [F, K*C]
    w_nbr_blk = jnp.einsum("ab,fc->afbc", eye_k, p["w2"]).reshape(
        k * f, kc).astype(jnp.bfloat16)                                     # [K*F, K*C]

    bn_scale = p["gamma"] * jax.lax.rsqrt(p["running_var"] + BN_EPS)
    bn_shift = p["beta"] - p["running_mean"] * bn_scale
    pack = jnp.zeros((8, kc), jnp.float32)
    pack = pack.at[0].set(jnp.tile(p["b"], k))
    pack = pack.at[1].set(jnp.tile(bn_scale, k))
    pack = pack.at[2].set(jnp.tile(bn_shift, k))

    # kv/qv projections straight into the [b*K + a] outer-product layout:
    #   wk_tiled[a*C+c, b*K+a'] = wk[c] * delta(a, a')
    #   wq_rep  [b*C+c, b'*K+a] = wq[c] * delta(b, b')
    wk_tiled = (p["wk"][None, :, None, None] * eye_k[:, None, None, :]
                * jnp.ones((1, 1, k, 1), jnp.float32)).reshape(
                    kc, kk).astype(jnp.bfloat16)
    wq_rep = (p["wq"][None, :, None, None] * eye_k[:, None, :, None]
              * jnp.ones((1, 1, 1, k), jnp.float32)).reshape(
                  kc, kk).astype(jnp.bfloat16)

    # gsum[b*K+a, b'] = delta(b, b')  (softmax denominator);  gexp = gsum.T
    gsum = jnp.repeat(eye_k, k, axis=0)                                     # [K*K, K]
    gexp = gsum.T                                                           # [K, K*K]

    # emat[b*K*K + b'*K + a, a'*C + c] = delta(b, b') * delta(a, a')
    emat = (eye_k[:, :, None, None, None] * eye_k[None, None, :, :, None]
            * jnp.ones((1, 1, 1, 1, c), jnp.float32)).reshape(
                k * kk, kc).astype(jnp.bfloat16)

    return dict(w_self_rep=w_self_rep, w_nbr_blk=w_nbr_blk, pack=pack,
                wk_tiled=wk_tiled, wq_rep=wq_rep, gsum=gsum, gexp=gexp,
                emat=emat)


def _hardware_tiling():
    """Hardware-derived tile cap / VMEM limit (falls back to v7x-safe values)."""
    try:
        vmem_cap = int(pltpu.get_tpu_info().vmem_capacity_bytes)
    except Exception:  # noqa: BLE001 - be robust if the query is unavailable
        vmem_cap = 64 * 1024 * 1024
    max_tile_n = 2048 if vmem_cap >= (100 << 20) else 1024
    vmem_limit = min(vmem_cap // 2, 64 << 20)
    return max_tile_n, vmem_limit


@functools.partial(jax.jit, static_argnames=("k",))
def plain_gcn_forward(pillar_features, voxel_coords, params, *, k):
    assert k & (k - 1) == 0, "kernel block-sum assumes K is a power of two"
    coords = voxel_coords.astype(jnp.float32)
    pos = coords[:, 1:4]                               # [N, 3]
    batch_idx = coords[:, 0].astype(jnp.int32)         # [N]
    n = pillar_features.shape[0]

    # kNN (glue): per-batch kNN via masked pairwise distances, producing global
    # indices exactly like knn() in the PyTorch module.
    # TODO(synk): top-k neighbor selection and the dynamic row gather below have
    # no practical Pallas TPU equivalent (no general in-kernel row gather);
    # they stay in plain JAX.
    d2 = jnp.sum((pos[:, None, :] - pos[None, :, :]) ** 2, axis=-1)   # [N, N]
    same_batch = batch_idx[:, None] == batch_idx[None, :]
    d2 = jnp.where(same_batch, d2, jnp.inf)
    _, index = jax.lax.top_k(-d2, k)                   # [N, K]

    # Neighbor euclidean distances for the diss gate (same for every layer).
    pos_j = jnp.take(pos, index, axis=0)               # [N, K, 3]
    dis = jnp.sqrt(jnp.sum((pos_j - pos[:, None, :]) ** 2, axis=-1))  # [N, K]

    # Balanced tiles, hardware-derived cap, >=2 grid steps (keeps both v7x
    # TensorCores busy; negligible overhead on v5e/v6e).
    max_tile_n, vmem_limit = _hardware_tiling()
    n_al = _round_up(n, _ROW_ALIGN)
    steps = max(2, pl.cdiv(n_al, max_tile_n))
    tile_n = _round_up(pl.cdiv(n_al, steps), _ROW_ALIGN)
    n_pad = pl.cdiv(n_al, tile_n) * tile_n
    pad = n_pad - n

    # Pad once; padded rows gather row 0, are finite, and are sliced off at the end.
    index_p = jnp.pad(index, ((0, pad), (0, 0)))
    dis_p = jnp.pad(dis, ((0, pad), (0, 0)))
    feats = jnp.pad(pillar_features.astype(jnp.float32), ((0, pad), (0, 0)))

    for p in params:
        consts = _fold_layer_params(p, k)
        # Lane-dense [N, K*F] neighbor slab (row-major gather, no extra copies).
        xj = jnp.take(feats, index_p, axis=0).reshape(n_pad, -1)
        feats = edgeconv_layer(feats.astype(jnp.bfloat16),
                               xj.astype(jnp.bfloat16),
                               dis_p, consts,
                               tile_n=tile_n, vmem_limit=vmem_limit)
    return feats[:n], voxel_coords                     # == (features.squeeze(), voxel_coords)


if __name__ == "__main__":
    # PlainGCN(NUM_FILTERS=[16, 32], ATT=True, MERGE=True, K=8, input_channels=4)
    NUM_FILTERS = [16, 32]
    K = 8
    INPUT_CHANNELS = 4
    N = 70            # 2 batches of 35 pillars (also exercises the padding path)

    key = jax.random.PRNGKey(0)
    kf, kp, kw = jax.random.split(key, 3)
    pillar_features = jax.random.normal(kf, (N, INPUT_CHANNELS), jnp.float32)
    batch_col = jnp.repeat(jnp.arange(2, dtype=jnp.float32), N // 2)
    positions = jax.random.uniform(kp, (N, 3), jnp.float32, 0.0, 10.0)
    voxel_coords = jnp.concatenate([batch_col[:, None], positions], axis=1)  # [N, 4]

    channels = [INPUT_CHANNELS] + list(NUM_FILTERS)
    params = init_params(kw, channels)

    feats, coords_out = plain_gcn_forward(pillar_features, voxel_coords, params, k=K)
    jax.block_until_ready(feats)
    assert feats.shape == (N, NUM_FILTERS[-1])
    assert coords_out.shape == (N, 4)
    assert bool(jnp.all(jnp.isfinite(feats)))
    print("KERNEL_OK")
</pallas_src>

<mosaic_0001>
module attributes {stable_mosaic.version = 11 : i64} {
  func.func @_edgeconv_kernel(%arg0: i32, %arg1: memref<48x4xbf16, #tpu.memory_space<vmem>>, %arg2: memref<48x32xbf16, #tpu.memory_space<vmem>>, %arg3: memref<48x8xf32, #tpu.memory_space<vmem>>, %arg4: memref<4x128xbf16, #tpu.memory_space<vmem>>, %arg5: memref<32x128xbf16, #tpu.memory_space<vmem>>, %arg6: memref<8x128xf32, #tpu.memory_space<vmem>>, %arg7: memref<128x64xbf16, #tpu.memory_space<vmem>>, %arg8: memref<128x64xbf16, #tpu.memory_space<vmem>>, %arg9: memref<64x8xf32, #tpu.memory_space<vmem>>, %arg10: memref<8x64xf32, #tpu.memory_space<vmem>>, %arg11: memref<512x128xbf16, #tpu.memory_space<vmem>>, %arg12: memref<48x16xf32, #tpu.memory_space<vmem>>) attributes {dimension_semantics = [#tpu.dimension_semantics<parallel>], iteration_bounds = array<i64: 2>, scalar_prefetch = 0 : i64, scratch_operands = 0 : i64, tpu.core_type = #tpu.core_type<tc>, window_params = [{transform_indices = @transform_0, window_bounds = array<i64: 48, 4>}, {transform_indices = @transform_1, window_bounds = array<i64: 48, 32>}, {transform_indices = @transform_2, window_bounds = array<i64: 48, 8>}, {pipeline_mode = #tpu.pipeline_mode<synchronous>, transform_indices = @transform_3, window_bounds = array<i64: 4, 128>}, {pipeline_mode = #tpu.pipeline_mode<synchronous>, transform_indices = @transform_4, window_bounds = array<i64: 32, 128>}, {pipeline_mode = #tpu.pipeline_mode<synchronous>, transform_indices = @transform_5, window_bounds = array<i64: 8, 128>}, {pipeline_mode = #tpu.pipeline_mode<synchronous>, transform_indices = @transform_6, window_bounds = array<i64: 128, 64>}, {pipeline_mode = #tpu.pipeline_mode<synchronous>, transform_indices = @transform_7, window_bounds = array<i64: 128, 64>}, {pipeline_mode = #tpu.pipeline_mode<synchronous>, transform_indices = @transform_8, window_bounds = array<i64: 64, 8>}, {pipeline_mode = #tpu.pipeline_mode<synchronous>, transform_indices = @transform_9, window_bounds = array<i64: 8, 64>}, {pipeline_mode = #tpu.pipeline_mode<synchronous>, transform_indices = @transform_10, window_bounds = array<i64: 512, 128>}, {transform_indices = @transform_11, window_bounds = array<i64: 48, 16>}]} {
    %c0 = arith.constant 0 : index
    %c0_0 = arith.constant 0 : index
    %0 = vector.load %arg1[%c0, %c0_0] : memref<48x4xbf16, #tpu.memory_space<vmem>>, vector<48x4xbf16>
    %c0_1 = arith.constant 0 : index
    %c0_2 = arith.constant 0 : index
    %1 = vector.load %arg4[%c0_1, %c0_2] : memref<4x128xbf16, #tpu.memory_space<vmem>>, vector<4x128xbf16>
    %cst = arith.constant dense<0.000000e+00> : vector<48x128xf32>
    %2 = tpu.matmul %0, %1, %cst {dimension_numbers = #tpu.dot_dimension_numbers<[1], [0], [0], [1], [0, 0, 1, 1], [], []>} : vector<48x4xbf16>, vector<4x128xbf16>, vector<48x128xf32> -> vector<48x128xf32>
    %c0_3 = arith.constant 0 : index
    %c0_4 = arith.constant 0 : index
    %3 = vector.load %arg2[%c0_3, %c0_4] : memref<48x32xbf16, #tpu.memory_space<vmem>>, vector<48x32xbf16>
    %c0_5 = arith.constant 0 : index
    %c0_6 = arith.constant 0 : index
    %4 = vector.load %arg5[%c0_5, %c0_6] : memref<32x128xbf16, #tpu.memory_space<vmem>>, vector<32x128xbf16>
    %cst_7 = arith.constant dense<0.000000e+00> : vector<48x128xf32>
    %5 = tpu.matmul %3, %4, %cst_7 {dimension_numbers = #tpu.dot_dimension_numbers<[1], [0], [0], [1], [0, 0, 1, 1], [], []>} : vector<48x32xbf16>, vector<32x128xbf16>, vector<48x128xf32> -> vector<48x128xf32>
    %6 = arith.addf %2, %5 : vector<48x128xf32>
    %c0_8 = arith.constant 0 : index
    %c0_9 = arith.constant 0 : index
    %7 = vector.load %arg6[%c0_8, %c0_9] : memref<8x128xf32, #tpu.memory_space<vmem>>, vector<1x128xf32>
    %8 = vector.broadcast %7 : vector<1x128xf32> to vector<48x128xf32>
    %9 = arith.addf %6, %8 : vector<48x128xf32>
    %cst_10 = arith.constant 0.000000e+00 : f32
    %10 = vector.broadcast %cst_10 : f32 to vector<48x128xf32>
    %11 = arith.maximumf %9, %10 : vector<48x128xf32>
    %c1 = arith.constant 1 : index
    %c0_11 = arith.constant 0 : index
    %12 = vector.load %arg6[%c1, %c0_11] : memref<8x128xf32, #tpu.memory_space<vmem>>, vector<1x128xf32>
    %13 = vector.broadcast %12 : vector<1x128xf32> to vector<48x128xf32>
    %14 = arith.mulf %11, %13 : vector<48x128xf32>
    %c2 = arith.constant 2 : index
    %c0_12 = arith.constant 0 : index
    %15 = vector.load %arg6[%c2, %c0_12] : memref<8x128xf32, #tpu.memory_space<vmem>>, vector<1x128xf32>
    %16 = vector.broadcast %15 : vector<1x128xf32> to vector<48x128xf32>
    %17 = arith.addf %14, %16 : vector<48x128xf32>
    %18 = arith.truncf %17 : vector<48x128xf32> to vector<48x128xbf16>
    %c0_13 = arith.constant 0 : index
    %c0_14 = arith.constant 0 : index
    %19 = vector.load %arg7[%c0_13, %c0_14] : memref<128x64xbf16, #tpu.memory_space<vmem>>, vector<128x64xbf16>
    %cst_15 = arith.constant dense<0.000000e+00> : vector<48x64xf32>
    %20 = tpu.matmul %18, %19, %cst_15 {dimension_numbers = #tpu.dot_dimension_numbers<[1], [0], [0], [1], [0, 0, 1, 1], [], []>} : vector<48x128xbf16>, vector<128x64xbf16>, vector<48x64xf32> -> vector<48x64xf32>
    %c0_16 = arith.constant 0 : index
    %c0_17 = arith.constant 0 : index
    %21 = vector.load %arg8[%c0_16, %c0_17] : memref<128x64xbf16, #tpu.memory_space<vmem>>, vector<128x64xbf16>
    %cst_18 = arith.constant dense<0.000000e+00> : vector<48x64xf32>
    %22 = tpu.matmul %18, %21, %cst_18 {dimension_numbers = #tpu.dot_dimension_numbers<[1], [0], [0], [1], [0, 0, 1, 1], [], []>} : vector<48x128xbf16>, vector<128x64xbf16>, vector<48x64xf32> -> vector<48x64xf32>
    %23 = arith.mulf %20, %22 : vector<48x64xf32>
    %cst_19 = arith.constant dense<0xFF800000> : vector<48xf32>
    %24 = vector.multi_reduction <maximumf>, %23, %cst_19 [1] : vector<48x64xf32> to vector<48xf32>
    %25 = vector.shape_cast %24 : vector<48xf32> to vector<48x1xf32>
    %26 = vector.broadcast %25 : vector<48x1xf32> to vector<48x64xf32>
    %27 = arith.subf %23, %26 : vector<48x64xf32>
    %28 = math.exp %27 : vector<48x64xf32>
    %c0_20 = arith.constant 0 : index
    %c0_21 = arith.constant 0 : index
    %29 = vector.load %arg9[%c0_20, %c0_21] : memref<64x8xf32, #tpu.memory_space<vmem>>, vector<64x8xf32>
    %cst_22 = arith.constant dense<0.000000e+00> : vector<48x8xf32>
    %30 = tpu.matmul %28, %29, %cst_22 {dimension_numbers = #tpu.dot_dimension_numbers<[1], [0], [0], [1], [0, 0, 1, 1], [], []>} : vector<48x64xf32>, vector<64x8xf32>, vector<48x8xf32> -> vector<48x8xf32>
    %c0_23 = arith.constant 0 : index
    %c0_24 = arith.constant 0 : index
    %31 = vector.load %arg3[%c0_23, %c0_24] : memref<48x8xf32, #tpu.memory_space<vmem>>, vector<48x8xf32>
    %cst_25 = arith.constant 0.000000e+00 : f32
    %32 = vector.broadcast %cst_25 : f32 to vector<48x8xf32>
    %33 = arith.subf %32, %31 : vector<48x8xf32>
    %34 = arith.negf %33 : vector<48x8xf32>
    %35 = math.exp %34 : vector<48x8xf32>
    %cst_26 = arith.constant 1.000000e+00 : f32
    %36 = vector.broadcast %cst_26 : f32 to vector<48x8xf32>
    %37 = arith.addf %36, %35 : vector<48x8xf32>
    %38 = arith.divf %36, %37 : vector<48x8xf32>
    %cst_27 = arith.constant 2.000000e+00 : f32
    %39 = vector.broadcast %cst_27 : f32 to vector<48x8xf32>
    %40 = arith.mulf %39, %38 : vector<48x8xf32>
    %cst_28 = arith.constant 1.000000e-30 : f32
    %41 = vector.broadcast %cst_28 : f32 to vector<48x8xf32>
    %42 = arith.maximumf %30, %41 : vector<48x8xf32>
    %43 = tpu.reciprocal %42 {approx = true} : vector<48x8xf32> -> vector<48x8xf32>
    %44 = arith.mulf %40, %43 : vector<48x8xf32>
    %c0_29 = arith.constant 0 : index
    %c0_30 = arith.constant 0 : index
    %45 = vector.load %arg10[%c0_29, %c0_30] : memref<8x64xf32, #tpu.memory_space<vmem>>, vector<8x64xf32>
    %cst_31 = arith.constant dense<0.000000e+00> : vector<48x64xf32>
    %46 = tpu.matmul %44, %45, %cst_31 {dimension_numbers = #tpu.dot_dimension_numbers<[1], [0], [0], [1], [0, 0, 1, 1], [], []>} : vector<48x8xf32>, vector<8x64xf32>, vector<48x64xf32> -> vector<48x64xf32>
    %47 = arith.mulf %28, %46 : vector<48x64xf32>
    %48 = arith.truncf %47 : vector<48x64xf32> to vector<48x64xbf16>
    %c0_32 = arith.constant 0 : index
    %c0_33 = arith.constant 0 : index
    %49 = vector.load %arg11[%c0_32, %c0_33] : memref<512x128xbf16, #tpu.memory_space<vmem>>, vector<64x128xbf16>
    %cst_34 = arith.constant dense<0.000000e+00> : vector<48x128xf32>
    %50 = tpu.matmul %48, %49, %cst_34 {dimension_numbers = #tpu.dot_dimension_numbers<[1], [0], [0], [1], [0, 0, 1, 1], [], []>} : vector<48x64xbf16>, vector<64x128xbf16>, vector<48x128xf32> -> vector<48x128xf32>
    %51 = arith.mulf %50, %17 : vector<48x128xf32>
    %52 = vector.extract_strided_slice %51 {offsets = [0, 0], sizes = [48, 64], strides = [1, 1]} : vector<48x128xf32> to vector<48x64xf32>
    %53 = vector.extract_strided_slice %51 {offsets = [0, 64], sizes = [48, 64], strides = [1, 1]} : vector<48x128xf32> to vector<48x64xf32>
    %54 = arith.addf %52, %53 : vector<48x64xf32>
    %55 = vector.extract_strided_slice %54 {offsets = [0, 0], sizes = [48, 32], strides = [1, 1]} : vector<48x64xf32> to vector<48x32xf32>
    %56 = vector.extract_strided_slice %54 {offsets = [0, 32], sizes = [48, 32], strides = [1, 1]} : vector<48x64xf32> to vector<48x32xf32>
    %57 = arith.addf %55, %56 : vector<48x32xf32>
    %58 = vector.extract_strided_slice %57 {offsets = [0, 0], sizes = [48, 16], strides = [1, 1]} : vector<48x32xf32> to vector<48x16xf32>
    %59 = vector.extract_strided_slice %57 {offsets = [0, 16], sizes = [48, 16], strides = [1, 1]} : vector<48x32xf32> to vector<48x16xf32>
    %60 = arith.addf %58, %59 : vector<48x16xf32>
    %c64 = arith.constant 64 : index
    %c0_35 = arith.constant 0 : index
    %61 = vector.load %arg11[%c64, %c0_35] : memref<512x128xbf16, #tpu.memory_space<vmem>>, vector<64x128xbf16>
    %cst_36 = arith.constant dense<0.000000e+00> : vector<48x128xf32>
    %62 = tpu.matmul %48, %61, %cst_36 {dimension_numbers = #tpu.dot_dimension_numbers<[1], [0], [0], [1], [0, 0, 1, 1], [], []>} : vector<48x64xbf16>, vector<64x128xbf16>, vector<48x128xf32> -> vector<48x128xf32>
    %63 = arith.mulf %62, %17 : vector<48x128xf32>
    %64 = vector.extract_strided_slice %63 {offsets = [0, 0], sizes = [48, 64], strides = [1, 1]} : vector<48x128xf32> to vector<48x64xf32>
    %65 = vector.extract_strided_slice %63 {offsets = [0, 64], sizes = [48, 64], strides = [1, 1]} : vector<48x128xf32> to vector<48x64xf32>
    %66 = arith.addf %64, %65 : vector<48x64xf32>
    %67 = vector.extract_strided_slice %66 {offsets = [0, 0], sizes = [48, 32], strides = [1, 1]} : vector<48x64xf32> to vector<48x32xf32>
    %68 = vector.extract_strided_slice %66 {offsets = [0, 32], sizes = [48, 32], strides = [1, 1]} : vector<48x64xf32> to vector<48x32xf32>
    %69 = arith.addf %67, %68 : vector<48x32xf32>
    %70 = vector.extract_strided_slice %69 {offsets = [0, 0], sizes = [48, 16], strides = [1, 1]} : vector<48x32xf32> to vector<48x16xf32>
    %71 = vector.extract_strided_slice %69 {offsets = [0, 16], sizes = [48, 16], strides = [1, 1]} : vector<48x32xf32> to vector<48x16xf32>
    %72 = arith.addf %70, %71 : vector<48x16xf32>
    %73 = arith.maximumf %60, %72 : vector<48x16xf32>
    %c128 = arith.constant 128 : index
    %c0_37 = arith.constant 0 : index
    %74 = vector.load %arg11[%c128, %c0_37] : memref<512x128xbf16, #tpu.memory_space<vmem>>, vector<64x128xbf16>
    %cst_38 = arith.constant dense<0.000000e+00> : vector<48x128xf32>
    %75 = tpu.matmul %48, %74, %cst_38 {dimension_numbers = #tpu.dot_dimension_numbers<[1], [0], [0], [1], [0, 0, 1, 1], [], []>} : vector<48x64xbf16>, vector<64x128xbf16>, vector<48x128xf32> -> vector<48x128xf32>
    %76 = arith.mulf %75, %17 : vector<48x128xf32>
    %77 = vector.extract_strided_slice %76 {offsets = [0, 0], sizes = [48, 64], strides = [1, 1]} : vector<48x128xf32> to vector<48x64xf32>
    %78 = vector.extract_strided_slice %76 {offsets = [0, 64], sizes = [48, 64], strides = [1, 1]} : vector<48x128xf32> to vector<48x64xf32>
    %79 = arith.addf %77, %78 : vector<48x64xf32>
    %80 = vector.extract_strided_slice %79 {offsets = [0, 0], sizes = [48, 32], strides = [1, 1]} : vector<48x64xf32> to vector<48x32xf32>
    %81 = vector.extract_strided_slice %79 {offsets = [0, 32], sizes = [48, 32], strides = [1, 1]} : vector<48x64xf32> to vector<48x32xf32>
    %82 = arith.addf %80, %81 : vector<48x32xf32>
    %83 = vector.extract_strided_slice %82 {offsets = [0, 0], sizes = [48, 16], strides = [1, 1]} : vector<48x32xf32> to vector<48x16xf32>
    %84 = vector.extract_strided_slice %82 {offsets = [0, 16], sizes = [48, 16], strides = [1, 1]} : vector<48x32xf32> to vector<48x16xf32>
    %85 = arith.addf %83, %84 : vector<48x16xf32>
    %86 = arith.maximumf %73, %85 : vector<48x16xf32>
    %c192 = arith.constant 192 : index
    %c0_39 = arith.constant 0 : index
    %87 = vector.load %arg11[%c192, %c0_39] : memref<512x128xbf16, #tpu.memory_space<vmem>>, vector<64x128xbf16>
    %cst_40 = arith.constant dense<0.000000e+00> : vector<48x128xf32>
    %88 = tpu.matmul %48, %87, %cst_40 {dimension_numbers = #tpu.dot_dimension_numbers<[1], [0], [0], [1], [0, 0, 1, 1], [], []>} : vector<48x64xbf16>, vector<64x128xbf16>, vector<48x128xf32> -> vector<48x128xf32>
    %89 = arith.mulf %88, %17 : vector<48x128xf32>
    %90 = vector.extract_strided_slice %89 {offsets = [0, 0], sizes = [48, 64], strides = [1, 1]} : vector<48x128xf32> to vector<48x64xf32>
    %91 = vector.extract_strided_slice %89 {offsets = [0, 64], sizes = [48, 64], strides = [1, 1]} : vector<48x128xf32> to vector<48x64xf32>
    %92 = arith.addf %90, %91 : vector<48x64xf32>
    %93 = vector.extract_strided_slice %92 {offsets = [0, 0], sizes = [48, 32], strides = [1, 1]} : vector<48x64xf32> to vector<48x32xf32>
    %94 = vector.extract_strided_slice %92 {offsets = [0, 32], sizes = [48, 32], strides = [1, 1]} : vector<48x64xf32> to vector<48x32xf32>
    %95 = arith.addf %93, %94 : vector<48x32xf32>
    %96 = vector.extract_strided_slice %95 {offsets = [0, 0], sizes = [48, 16], strides = [1, 1]} : vector<48x32xf32> to vector<48x16xf32>
    %97 = vector.extract_strided_slice %95 {offsets = [0, 16], sizes = [48, 16], strides = [1, 1]} : vector<48x32xf32> to vector<48x16xf32>
    %98 = arith.addf %96, %97 : vector<48x16xf32>
    %99 = arith.maximumf %86, %98 : vector<48x16xf32>
    %c256 = arith.constant 256 : index
    %c0_41 = arith.constant 0 : index
    %100 = vector.load %arg11[%c256, %c0_41] : memref<512x128xbf16, #tpu.memory_space<vmem>>, vector<64x128xbf16>
    %cst_42 = arith.constant dense<0.000000e+00> : vector<48x128xf32>
    %101 = tpu.matmul %48, %100, %cst_42 {dimension_numbers = #tpu.dot_dimension_numbers<[1], [0], [0], [1], [0, 0, 1, 1], [], []>} : vector<48x64xbf16>, vector<64x128xbf16>, vector<48x128xf32> -> vector<48x128xf32>
    %102 = arith.mulf %101, %17 : vector<48x128xf32>
    %103 = vector.extract_strided_slice %102 {offsets = [0, 0], sizes = [48, 64], strides = [1, 1]} : vector<48x128xf32> to vector<48x64xf32>
    %104 = vector.extract_strided_slice %102 {offsets = [0, 64], sizes = [48, 64], strides = [1, 1]} : vector<48x128xf32> to vector<48x64xf32>
    %105 = arith.addf %103, %104 : vector<48x64xf32>
    %106 = vector.extract_strided_slice %105 {offsets = [0, 0], sizes = [48, 32], strides = [1, 1]} : vector<48x64xf32> to vector<48x32xf32>
    %107 = vector.extract_strided_slice %105 {offsets = [0, 32], sizes = [48, 32], strides = [1, 1]} : vector<48x64xf32> to vector<48x32xf32>
    %108 = arith.addf %106, %107 : vector<48x32xf32>
    %109 = vector.extract_strided_slice %108 {offsets = [0, 0], sizes = [48, 16], strides = [1, 1]} : vector<48x32xf32> to vector<48x16xf32>
    %110 = vector.extract_strided_slice %108 {offsets = [0, 16], sizes = [48, 16], strides = [1, 1]} : vector<48x32xf32> to vector<48x16xf32>
    %111 = arith.addf %109, %110 : vector<48x16xf32>
    %112 = arith.maximumf %99, %111 : vector<48x16xf32>
    %c320 = arith.constant 320 : index
    %c0_43 = arith.constant 0 : index
    %113 = vector.load %arg11[%c320, %c0_43] : memref<512x128xbf16, #tpu.memory_space<vmem>>, vector<64x128xbf16>
    %cst_44 = arith.constant dense<0.000000e+00> : vector<48x128xf32>
    %114 = tpu.matmul %48, %113, %cst_44 {dimension_numbers = #tpu.dot_dimension_numbers<[1], [0], [0], [1], [0, 0, 1, 1], [], []>} : vector<48x64xbf16>, vector<64x128xbf16>, vector<48x128xf32> -> vector<48x128xf32>
    %115 = arith.mulf %114, %17 : vector<48x128xf32>
    %116 = vector.extract_strided_slice %115 {offsets = [0, 0], sizes = [48, 64], strides = [1, 1]} : vector<48x128xf32> to vector<48x64xf32>
    %117 = vector.extract_strided_slice %115 {offsets = [0, 64], sizes = [48, 64], strides = [1, 1]} : vector<48x128xf32> to vector<48x64xf32>
    %118 = arith.addf %116, %117 : vector<48x64xf32>
    %119 = vector.extract_strided_slice %118 {offsets = [0, 0], sizes = [48, 32], strides = [1, 1]} : vector<48x64xf32> to vector<48x32xf32>
    %120 = vector.extract_strided_slice %118 {offsets = [0, 32], sizes = [48, 32], strides = [1, 1]} : vector<48x64xf32> to vector<48x32xf32>
    %121 = arith.addf %119, %120 : vector<48x32xf32>
    %122 = vector.extract_strided_slice %121 {offsets = [0, 0], sizes = [48, 16], strides = [1, 1]} : vector<48x32xf32> to vector<48x16xf32>
    %123 = vector.extract_strided_slice %121 {offsets = [0, 16], sizes = [48, 16], strides = [1, 1]} : vector<48x32xf32> to vector<48x16xf32>
    %124 = arith.addf %122, %123 : vector<48x16xf32>
    %125 = arith.maximumf %112, %124 : vector<48x16xf32>
    %c384 = arith.constant 384 : index
    %c0_45 = arith.constant 0 : index
    %126 = vector.load %arg11[%c384, %c0_45] : memref<512x128xbf16, #tpu.memory_space<vmem>>, vector<64x128xbf16>
    %cst_46 = arith.constant dense<0.000000e+00> : vector<48x128xf32>
    %127 = tpu.matmul %48, %126, %cst_46 {dimension_numbers = #tpu.dot_dimension_numbers<[1], [0], [0], [1], [0, 0, 1, 1], [], []>} : vector<48x64xbf16>, vector<64x128xbf16>, vector<48x128xf32> -> vector<48x128xf32>
    %128 = arith.mulf %127, %17 : vector<48x128xf32>
    %129 = vector.extract_strided_slice %128 {offsets = [0, 0], sizes = [48, 64], strides = [1, 1]} : vector<48x128xf32> to vector<48x64xf32>
    %130 = vector.extract_strided_slice %128 {offsets = [0, 64], sizes = [48, 64], strides = [1, 1]} : vector<48x128xf32> to vector<48x64xf32>
    %131 = arith.addf %129, %130 : vector<48x64xf32>
    %132 = vector.extract_strided_slice %131 {offsets = [0, 0], sizes = [48, 32], strides = [1, 1]} : vector<48x64xf32> to vector<48x32xf32>
    %133 = vector.extract_strided_slice %131 {offsets = [0, 32], sizes = [48, 32], strides = [1, 1]} : vector<48x64xf32> to vector<48x32xf32>
    %134 = arith.addf %132, %133 : vector<48x32xf32>
    %135 = vector.extract_strided_slice %134 {offsets = [0, 0], sizes = [48, 16], strides = [1, 1]} : vector<48x32xf32> to vector<48x16xf32>
    %136 = vector.extract_strided_slice %134 {offsets = [0, 16], sizes = [48, 16], strides = [1, 1]} : vector<48x32xf32> to vector<48x16xf32>
    %137 = arith.addf %135, %136 : vector<48x16xf32>
    %138 = arith.maximumf %125, %137 : vector<48x16xf32>
    %c448 = arith.constant 448 : index
    %c0_47 = arith.constant 0 : index
    %139 = vector.load %arg11[%c448, %c0_47] : memref<512x128xbf16, #tpu.memory_space<vmem>>, vector<64x128xbf16>
    %cst_48 = arith.constant dense<0.000000e+00> : vector<48x128xf32>
    %140 = tpu.matmul %48, %139, %cst_48 {dimension_numbers = #tpu.dot_dimension_numbers<[1], [0], [0], [1], [0, 0, 1, 1], [], []>} : vector<48x64xbf16>, vector<64x128xbf16>, vector<48x128xf32> -> vector<48x128xf32>
    %141 = arith.mulf %140, %17 : vector<48x128xf32>
    %142 = vector.extract_strided_slice %141 {offsets = [0, 0], sizes = [48, 64], strides = [1, 1]} : vector<48x128xf32> to vector<48x64xf32>
    %143 = vector.extract_strided_slice %141 {offsets = [0, 64], sizes = [48, 64], strides = [1, 1]} : vector<48x128xf32> to vector<48x64xf32>
    %144 = arith.addf %142, %143 : vector<48x64xf32>
    %145 = vector.extract_strided_slice %144 {offsets = [0, 0], sizes = [48, 32], strides = [1, 1]} : vector<48x64xf32> to vector<48x32xf32>
    %146 = vector.extract_strided_slice %144 {offsets = [0, 32], sizes = [48, 32], strides = [1, 1]} : vector<48x64xf32> to vector<48x32xf32>
    %147 = arith.addf %145, %146 : vector<48x32xf32>
    %148 = vector.extract_strided_slice %147 {offsets = [0, 0], sizes = [48, 16], strides = [1, 1]} : vector<48x32xf32> to vector<48x16xf32>
    %149 = vector.extract_strided_slice %147 {offsets = [0, 16], sizes = [48, 16], strides = [1, 1]} : vector<48x32xf32> to vector<48x16xf32>
    %150 = arith.addf %148, %149 : vector<48x16xf32>
    %151 = arith.maximumf %138, %150 : vector<48x16xf32>
    %c0_49 = arith.constant 0 : index
    %c0_50 = arith.constant 0 : index
    %152 = vector.load %arg12[%c0_49, %c0_50] : memref<48x16xf32, #tpu.memory_space<vmem>>, vector<48x16xf32>
    tpu.vector_store %arg12[%c0_49, %c0_50], %151 {strides = array<i32>} : memref<48x16xf32, #tpu.memory_space<vmem>>, vector<48x16xf32>,
    return
  }
  func.func @transform_0(%arg0: i32) -> (i32, i32) {
    %c0_i32 = arith.constant 0 : i32
    %c0_i32_0 = arith.constant 0 : i32
    return %arg0, %c0_i32 : i32, i32
  }
  func.func @transform_1(%arg0: i32) -> (i32, i32) {
    %c0_i32 = arith.constant 0 : i32
    %c0_i32_0 = arith.constant 0 : i32
    return %arg0, %c0_i32 : i32, i32
  }
  func.func @transform_2(%arg0: i32) -> (i32, i32) {
    %c0_i32 = arith.constant 0 : i32
    %c0_i32_0 = arith.constant 0 : i32
    return %arg0, %c0_i32 : i32, i32
  }
  func.func @transform_3(%arg0: i32) -> (i32, i32) {
    %c0_i32 = arith.constant 0 : i32
    %c0_i32_0 = arith.constant 0 : i32
    %c0_i32_1 = arith.constant 0 : i32
    return %c0_i32, %c0_i32_0 : i32, i32
  }
  func.func @transform_4(%arg0: i32) -> (i32, i32) {
    %c0_i32 = arith.constant 0 : i32
    %c0_i32_0 = arith.constant 0 : i32
    %c0_i32_1 = arith.constant 0 : i32
    return %c0_i32, %c0_i32_0 : i32, i32
  }
  func.func @transform_5(%arg0: i32) -> (i32, i32) {
    %c0_i32 = arith.constant 0 : i32
    %c0_i32_0 = arith.constant 0 : i32
    %c0_i32_1 = arith.constant 0 : i32
    return %c0_i32, %c0_i32_0 : i32, i32
  }
  func.func @transform_6(%arg0: i32) -> (i32, i32) {
    %c0_i32 = arith.constant 0 : i32
    %c0_i32_0 = arith.constant 0 : i32
    %c0_i32_1 = arith.constant 0 : i32
    return %c0_i32, %c0_i32_0 : i32, i32
  }
  func.func @transform_7(%arg0: i32) -> (i32, i32) {
    %c0_i32 = arith.constant 0 : i32
    %c0_i32_0 = arith.constant 0 : i32
    %c0_i32_1 = arith.constant 0 : i32
    return %c0_i32, %c0_i32_0 : i32, i32
  }
  func.func @transform_8(%arg0: i32) -> (i32, i32) {
    %c0_i32 = arith.constant 0 : i32
    %c0_i32_0 = arith.constant 0 : i32
    %c0_i32_1 = arith.constant 0 : i32
    return %c0_i32, %c0_i32_0 : i32, i32
  }
  func.func @transform_9(%arg0: i32) -> (i32, i32) {
    %c0_i32 = arith.constant 0 : i32
    %c0_i32_0 = arith.constant 0 : i32
    %c0_i32_1 = arith.constant 0 : i32
    return %c0_i32, %c0_i32_0 : i32, i32
  }
  func.func @transform_10(%arg0: i32) -> (i32, i32) {
    %c0_i32 = arith.constant 0 : i32
    %c0_i32_0 = arith.constant 0 : i32
    %c0_i32_1 = arith.constant 0 : i32
    return %c0_i32, %c0_i32_0 : i32, i32
  }
  func.func @transform_11(%arg0: i32) -> (i32, i32) {
    %c0_i32 = arith.constant 0 : i32
    %c0_i32_0 = arith.constant 0 : i32
    return %arg0, %c0_i32 : i32, i32
  }
}

module attributes {stable_mosaic.version = 11 : i64} {
  func.func @_edgeconv_kernel(%arg0: i32, %arg1: memref<48x16xbf16, #tpu.memory_space<vmem>>, %arg2: memref<48x128xbf16, #tpu.memory_space<vmem>>, %arg3: memref<48x8xf32, #tpu.memory_space<vmem>>, %arg4: memref<16x256xbf16, #tpu.memory_space<vmem>>, %arg5: memref<128x256xbf16, #tpu.memory_space<vmem>>, %arg6: memref<8x256xf32, #tpu.memory_space<vmem>>, %arg7: memref<256x64xbf16, #tpu.memory_space<vmem>>, %arg8: memref<256x64xbf16, #tpu.memory_space<vmem>>, %arg9: memref<64x8xf32, #tpu.memory_space<vmem>>, %arg10: memref<8x64xf32, #tpu.memory_space<vmem>>, %arg11: memref<512x256xbf16, #tpu.memory_space<vmem>>, %arg12: memref<48x32xf32, #tpu.memory_space<vmem>>) attributes {dimension_semantics = [#tpu.dimension_semantics<parallel>], iteration_bounds = array<i64: 2>, scalar_prefetch = 0 : i64, scratch_operands = 0 : i64, tpu.core_type = #tpu.core_type<tc>, window_params = [{transform_indices = @transform_0, window_bounds = array<i64: 48, 16>}, {transform_indices = @transform_1, window_bounds = array<i64: 48, 128>}, {transform_indices = @transform_2, window_bounds = array<i64: 48, 8>}, {pipeline_mode = #tpu.pipeline_mode<synchronous>, transform_indices = @transform_3, window_bounds = array<i64: 16, 256>}, {pipeline_mode = #tpu.pipeline_mode<synchronous>, transform_indices = @transform_4, window_bounds = array<i64: 128, 256>}, {pipeline_mode = #tpu.pipeline_mode<synchronous>, transform_indices = @transform_5, window_bounds = array<i64: 8, 256>}, {pipeline_mode = #tpu.pipeline_mode<synchronous>, transform_indices = @transform_6, window_bounds = array<i64: 256, 64>}, {pipeline_mode = #tpu.pipeline_mode<synchronous>, transform_indices = @transform_7, window_bounds = array<i64: 256, 64>}, {pipeline_mode = #tpu.pipeline_mode<synchronous>, transform_indices = @transform_8, window_bounds = array<i64: 64, 8>}, {pipeline_mode = #tpu.pipeline_mode<synchronous>, transform_indices = @transform_9, window_bounds = array<i64: 8, 64>}, {pipeline_mode = #tpu.pipeline_mode<synchronous>, transform_indices = @transform_10, window_bounds = array<i64: 512, 256>}, {transform_indices = @transform_11, window_bounds = array<i64: 48, 32>}]} {
    %c0 = arith.constant 0 : index
    %c0_0 = arith.constant 0 : index
    %0 = vector.load %arg1[%c0, %c0_0] : memref<48x16xbf16, #tpu.memory_space<vmem>>, vector<48x16xbf16>
    %c0_1 = arith.constant 0 : index
    %c0_2 = arith.constant 0 : index
    %1 = vector.load %arg4[%c0_1, %c0_2] : memref<16x256xbf16, #tpu.memory_space<vmem>>, vector<16x256xbf16>
    %cst = arith.constant dense<0.000000e+00> : vector<48x256xf32>
    %2 = tpu.matmul %0, %1, %cst {dimension_numbers = #tpu.dot_dimension_numbers<[1], [0], [0], [1], [0, 0, 1, 1], [], []>} : vector<48x16xbf16>, vector<16x256xbf16>, vector<48x256xf32> -> vector<48x256xf32>
    %c0_3 = arith.constant 0 : index
    %c0_4 = arith.constant 0 : index
    %3 = vector.load %arg2[%c0_3, %c0_4] : memref<48x128xbf16, #tpu.memory_space<vmem>>, vector<48x128xbf16>
    %c0_5 = arith.constant 0 : index
    %c0_6 = arith.constant 0 : index
    %4 = vector.load %arg5[%c0_5, %c0_6] : memref<128x256xbf16, #tpu.memory_space<vmem>>, vector<128x256xbf16>
    %cst_7 = arith.constant dense<0.000000e+00> : vector<48x256xf32>
    %5 = tpu.matmul %3, %4, %cst_7 {dimension_numbers = #tpu.dot_dimension_numbers<[1], [0], [0], [1], [0, 0, 1, 1], [], []>} : vector<48x128xbf16>, vector<128x256xbf16>, vector<48x256xf32> -> vector<48x256xf32>
    %6 = arith.addf %2, %5 : vector<48x256xf32>
    %c0_8 = arith.constant 0 : index
    %c0_9 = arith.constant 0 : index
    %7 = vector.load %arg6[%c0_8, %c0_9] : memref<8x256xf32, #tpu.memory_space<vmem>>, vector<1x256xf32>
    %8 = vector.broadcast %7 : vector<1x256xf32> to vector<48x256xf32>
    %9 = arith.addf %6, %8 : vector<48x256xf32>
    %cst_10 = arith.constant 0.000000e+00 : f32
    %10 = vector.broadcast %cst_10 : f32 to vector<48x256xf32>
    %11 = arith.maximumf %9, %10 : vector<48x256xf32>
    %c1 = arith.constant 1 : index
    %c0_11 = arith.constant 0 : index
    %12 = vector.load %arg6[%c1, %c0_11] : memref<8x256xf32, #tpu.memory_space<vmem>>, vector<1x256xf32>
    %13 = vector.broadcast %12 : vector<1x256xf32> to vector<48x256xf32>
    %14 = arith.mulf %11, %13 : vector<48x256xf32>
    %c2 = arith.constant 2 : index
    %c0_12 = arith.constant 0 : index
    %15 = vector.load %arg6[%c2, %c0_12] : memref<8x256xf32, #tpu.memory_space<vmem>>, vector<1x256xf32>
    %16 = vector.broadcast %15 : vector<1x256xf32> to vector<48x256xf32>
    %17 = arith.addf %14, %16 : vector<48x256xf32>
    %18 = arith.truncf %17 : vector<48x256xf32> to vector<48x256xbf16>
    %c0_13 = arith.constant 0 : index
    %c0_14 = arith.constant 0 : index
    %19 = vector.load %arg7[%c0_13, %c0_14] : memref<256x64xbf16, #tpu.memory_space<vmem>>, vector<256x64xbf16>
    %cst_15 = arith.constant dense<0.000000e+00> : vector<48x64xf32>
    %20 = tpu.matmul %18, %19, %cst_15 {dimension_numbers = #tpu.dot_dimension_numbers<[1], [0], [0], [1], [0, 0, 1, 1], [], []>} : vector<48x256xbf16>, vector<256x64xbf16>, vector<48x64xf32> -> vector<48x64xf32>
    %c0_16 = arith.constant 0 : index
    %c0_17 = arith.constant 0 : index
    %21 = vector.load %arg8[%c0_16, %c0_17] : memref<256x64xbf16, #tpu.memory_space<vmem>>, vector<256x64xbf16>
    %cst_18 = arith.constant dense<0.000000e+00> : vector<48x64xf32>
    %22 = tpu.matmul %18, %21, %cst_18 {dimension_numbers = #tpu.dot_dimension_numbers<[1], [0], [0], [1], [0, 0, 1, 1], [], []>} : vector<48x256xbf16>, vector<256x64xbf16>, vector<48x64xf32> -> vector<48x64xf32>
    %23 = arith.mulf %20, %22 : vector<48x64xf32>
    %cst_19 = arith.constant dense<0xFF800000> : vector<48xf32>
    %24 = vector.multi_reduction <maximumf>, %23, %cst_19 [1] : vector<48x64xf32> to vector<48xf32>
    %25 = vector.shape_cast %24 : vector<48xf32> to vector<48x1xf32>
    %26 = vector.broadcast %25 : vector<48x1xf32> to vector<48x64xf32>
    %27 = arith.subf %23, %26 : vector<48x64xf32>
    %28 = math.exp %27 : vector<48x64xf32>
    %c0_20 = arith.constant 0 : index
    %c0_21 = arith.constant 0 : index
    %29 = vector.load %arg9[%c0_20, %c0_21] : memref<64x8xf32, #tpu.memory_space<vmem>>, vector<64x8xf32>
    %cst_22 = arith.constant dense<0.000000e+00> : vector<48x8xf32>
    %30 = tpu.matmul %28, %29, %cst_22 {dimension_numbers = #tpu.dot_dimension_numbers<[1], [0], [0], [1], [0, 0, 1, 1], [], []>} : vector<48x64xf32>, vector<64x8xf32>, vector<48x8xf32> -> vector<48x8xf32>
    %c0_23 = arith.constant 0 : index
    %c0_24 = arith.constant 0 : index
    %31 = vector.load %arg3[%c0_23, %c0_24] : memref<48x8xf32, #tpu.memory_space<vmem>>, vector<48x8xf32>
    %cst_25 = arith.constant 0.000000e+00 : f32
    %32 = vector.broadcast %cst_25 : f32 to vector<48x8xf32>
    %33 = arith.subf %32, %31 : vector<48x8xf32>
    %34 = arith.negf %33 : vector<48x8xf32>
    %35 = math.exp %34 : vector<48x8xf32>
    %cst_26 = arith.constant 1.000000e+00 : f32
    %36 = vector.broadcast %cst_26 : f32 to vector<48x8xf32>
    %37 = arith.addf %36, %35 : vector<48x8xf32>
    %38 = arith.divf %36, %37 : vector<48x8xf32>
    %cst_27 = arith.constant 2.000000e+00 : f32
    %39 = vector.broadcast %cst_27 : f32 to vector<48x8xf32>
    %40 = arith.mulf %39, %38 : vector<48x8xf32>
    %cst_28 = arith.constant 1.000000e-30 : f32
    %41 = vector.broadcast %cst_28 : f32 to vector<48x8xf32>
    %42 = arith.maximumf %30, %41 : vector<48x8xf32>
    %43 = tpu.reciprocal %42 {approx = true} : vector<48x8xf32> -> vector<48x8xf32>
    %44 = arith.mulf %40, %43 : vector<48x8xf32>
    %c0_29 = arith.constant 0 : index
    %c0_30 = arith.constant 0 : index
    %45 = vector.load %arg10[%c0_29, %c0_30] : memref<8x64xf32, #tpu.memory_space<vmem>>, vector<8x64xf32>
    %cst_31 = arith.constant dense<0.000000e+00> : vector<48x64xf32>
    %46 = tpu.matmul %44, %45, %cst_31 {dimension_numbers = #tpu.dot_dimension_numbers<[1], [0], [0], [1], [0, 0, 1, 1], [], []>} : vector<48x8xf32>, vector<8x64xf32>, vector<48x64xf32> -> vector<48x64xf32>
    %47 = arith.mulf %28, %46 : vector<48x64xf32>
    %48 = arith.truncf %47 : vector<48x64xf32> to vector<48x64xbf16>
    %c0_32 = arith.constant 0 : index
    %c0_33 = arith.constant 0 : index
    %49 = vector.load %arg11[%c0_32, %c0_33] : memref<512x256xbf16, #tpu.memory_space<vmem>>, vector<64x256xbf16>
    %cst_34 = arith.constant dense<0.000000e+00> : vector<48x256xf32>
    %50 = tpu.matmul %48, %49, %cst_34 {dimension_numbers = #tpu.dot_dimension_numbers<[1], [0], [0], [1], [0, 0, 1, 1], [], []>} : vector<48x64xbf16>, vector<64x256xbf16>, vector<48x256xf32> -> vector<48x256xf32>
    %51 = arith.mulf %50, %17 : vector<48x256xf32>
    %52 = vector.extract_strided_slice %51 {offsets = [0, 0], sizes = [48, 128], strides = [1, 1]} : vector<48x256xf32> to vector<48x128xf32>
    %53 = vector.extract_strided_slice %51 {offsets = [0, 128], sizes = [48, 128], strides = [1, 1]} : vector<48x256xf32> to vector<48x128xf32>
    %54 = arith.addf %52, %53 : vector<48x128xf32>
    %55 = vector.extract_strided_slice %54 {offsets = [0, 0], sizes = [48, 64], strides = [1, 1]} : vector<48x128xf32> to vector<48x64xf32>
    %56 = vector.extract_strided_slice %54 {offsets = [0, 64], sizes = [48, 64], strides = [1, 1]} : vector<48x128xf32> to vector<48x64xf32>
    %57 = arith.addf %55, %56 : vector<48x64xf32>
    %58 = vector.extract_strided_slice %57 {offsets = [0, 0], sizes = [48, 32], strides = [1, 1]} : vector<48x64xf32> to vector<48x32xf32>
    %59 = vector.extract_strided_slice %57 {offsets = [0, 32], sizes = [48, 32], strides = [1, 1]} : vector<48x64xf32> to vector<48x32xf32>
    %60 = arith.addf %58, %59 : vector<48x32xf32>
    %c64 = arith.constant 64 : index
    %c0_35 = arith.constant 0 : index
    %61 = vector.load %arg11[%c64, %c0_35] : memref<512x256xbf16, #tpu.memory_space<vmem>>, vector<64x256xbf16>
    %cst_36 = arith.constant dense<0.000000e+00> : vector<48x256xf32>
    %62 = tpu.matmul %48, %61, %cst_36 {dimension_numbers = #tpu.dot_dimension_numbers<[1], [0], [0], [1], [0, 0, 1, 1], [], []>} : vector<48x64xbf16>, vector<64x256xbf16>, vector<48x256xf32> -> vector<48x256xf32>
    %63 = arith.mulf %62, %17 : vector<48x256xf32>
    %64 = vector.extract_strided_slice %63 {offsets = [0, 0], sizes = [48, 128], strides = [1, 1]} : vector<48x256xf32> to vector<48x128xf32>
    %65 = vector.extract_strided_slice %63 {offsets = [0, 128], sizes = [48, 128], strides = [1, 1]} : vector<48x256xf32> to vector<48x128xf32>
    %66 = arith.addf %64, %65 : vector<48x128xf32>
    %67 = vector.extract_strided_slice %66 {offsets = [0, 0], sizes = [48, 64], strides = [1, 1]} : vector<48x128xf32> to vector<48x64xf32>
    %68 = vector.extract_strided_slice %66 {offsets = [0, 64], sizes = [48, 64], strides = [1, 1]} : vector<48x128xf32> to vector<48x64xf32>
    %69 = arith.addf %67, %68 : vector<48x64xf32>
    %70 = vector.extract_strided_slice %69 {offsets = [0, 0], sizes = [48, 32], strides = [1, 1]} : vector<48x64xf32> to vector<48x32xf32>
    %71 = vector.extract_strided_slice %69 {offsets = [0, 32], sizes = [48, 32], strides = [1, 1]} : vector<48x64xf32> to vector<48x32xf32>
    %72 = arith.addf %70, %71 : vector<48x32xf32>
    %73 = arith.maximumf %60, %72 : vector<48x32xf32>
    %c128 = arith.constant 128 : index
    %c0_37 = arith.constant 0 : index
    %74 = vector.load %arg11[%c128, %c0_37] : memref<512x256xbf16, #tpu.memory_space<vmem>>, vector<64x256xbf16>
    %cst_38 = arith.constant dense<0.000000e+00> : vector<48x256xf32>
    %75 = tpu.matmul %48, %74, %cst_38 {dimension_numbers = #tpu.dot_dimension_numbers<[1], [0], [0], [1], [0, 0, 1, 1], [], []>} : vector<48x64xbf16>, vector<64x256xbf16>, vector<48x256xf32> -> vector<48x256xf32>
    %76 = arith.mulf %75, %17 : vector<48x256xf32>
    %77 = vector.extract_strided_slice %76 {offsets = [0, 0], sizes = [48, 128], strides = [1, 1]} : vector<48x256xf32> to vector<48x128xf32>
    %78 = vector.extract_strided_slice %76 {offsets = [0, 128], sizes = [48, 128], strides = [1, 1]} : vector<48x256xf32> to vector<48x128xf32>
    %79 = arith.addf %77, %78 : vector<48x128xf32>
    %80 = vector.extract_strided_slice %79 {offsets = [0, 0], sizes = [48, 64], strides = [1, 1]} : vector<48x128xf32> to vector<48x64xf32>
    %81 = vector.extract_strided_slice %79 {offsets = [0, 64], sizes = [48, 64], strides = [1, 1]} : vector<48x128xf32> to vector<48x64xf32>
    %82 = arith.addf %80, %81 : vector<48x64xf32>
    %83 = vector.extract_strided_slice %82 {offsets = [0, 0], sizes = [48, 32], strides = [1, 1]} : vector<48x64xf32> to vector<48x32xf32>
    %84 = vector.extract_strided_slice %82 {offsets = [0, 32], sizes = [48, 32], strides = [1, 1]} : vector<48x64xf32> to vector<48x32xf32>
    %85 = arith.addf %83, %84 : vector<48x32xf32>
    %86 = arith.maximumf %73, %85 : vector<48x32xf32>
    %c192 = arith.constant 192 : index
    %c0_39 = arith.constant 0 : index
    %87 = vector.load %arg11[%c192, %c0_39] : memref<512x256xbf16, #tpu.memory_space<vmem>>, vector<64x256xbf16>
    %cst_40 = arith.constant dense<0.000000e+00> : vector<48x256xf32>
    %88 = tpu.matmul %48, %87, %cst_40 {dimension_numbers = #tpu.dot_dimension_numbers<[1], [0], [0], [1], [0, 0, 1, 1], [], []>} : vector<48x64xbf16>, vector<64x256xbf16>, vector<48x256xf32> -> vector<48x256xf32>
    %89 = arith.mulf %88, %17 : vector<48x256xf32>
    %90 = vector.extract_strided_slice %89 {offsets = [0, 0], sizes = [48, 128], strides = [1, 1]} : vector<48x256xf32> to vector<48x128xf32>
    %91 = vector.extract_strided_slice %89 {offsets = [0, 128], sizes = [48, 128], strides = [1, 1]} : vector<48x256xf32> to vector<48x128xf32>
    %92 = arith.addf %90, %91 : vector<48x128xf32>
    %93 = vector.extract_strided_slice %92 {offsets = [0, 0], sizes = [48, 64], strides = [1, 1]} : vector<48x128xf32> to vector<48x64xf32>
    %94 = vector.extract_strided_slice %92 {offsets = [0, 64], sizes = [48, 64], strides = [1, 1]} : vector<48x128xf32> to vector<48x64xf32>
    %95 = arith.addf %93, %94 : vector<48x64xf32>
    %96 = vector.extract_strided_slice %95 {offsets = [0, 0], sizes = [48, 32], strides = [1, 1]} : vector<48x64xf32> to vector<48x32xf32>
    %97 = vector.extract_strided_slice %95 {offsets = [0, 32], sizes = [48, 32], strides = [1, 1]} : vector<48x64xf32> to vector<48x32xf32>
    %98 = arith.addf %96, %97 : vector<48x32xf32>
    %99 = arith.maximumf %86, %98 : vector<48x32xf32>
    %c256 = arith.constant 256 : index
    %c0_41 = arith.constant 0 : index
    %100 = vector.load %arg11[%c256, %c0_41] : memref<512x256xbf16, #tpu.memory_space<vmem>>, vector<64x256xbf16>
    %cst_42 = arith.constant dense<0.000000e+00> : vector<48x256xf32>
    %101 = tpu.matmul %48, %100, %cst_42 {dimension_numbers = #tpu.dot_dimension_numbers<[1], [0], [0], [1], [0, 0, 1, 1], [], []>} : vector<48x64xbf16>, vector<64x256xbf16>, vector<48x256xf32> -> vector<48x256xf32>
    %102 = arith.mulf %101, %17 : vector<48x256xf32>
    %103 = vector.extract_strided_slice %102 {offsets = [0, 0], sizes = [48, 128], strides = [1, 1]} : vector<48x256xf32> to vector<48x128xf32>
    %104 = vector.extract_strided_slice %102 {offsets = [0, 128], sizes = [48, 128], strides = [1, 1]} : vector<48x256xf32> to vector<48x128xf32>
    %105 = arith.addf %103, %104 : vector<48x128xf32>
    %106 = vector.extract_strided_slice %105 {offsets = [0, 0], sizes = [48, 64], strides = [1, 1]} : vector<48x128xf32> to vector<48x64xf32>
    %107 = vector.extract_strided_slice %105 {offsets = [0, 64], sizes = [48, 64], strides = [1, 1]} : vector<48x128xf32> to vector<48x64xf32>
    %108 = arith.addf %106, %107 : vector<48x64xf32>
    %109 = vector.extract_strided_slice %108 {offsets = [0, 0], sizes = [48, 32], strides = [1, 1]} : vector<48x64xf32> to vector<48x32xf32>
    %110 = vector.extract_strided_slice %108 {offsets = [0, 32], sizes = [48, 32], strides = [1, 1]} : vector<48x64xf32> to vector<48x32xf32>
    %111 = arith.addf %109, %110 : vector<48x32xf32>
    %112 = arith.maximumf %99, %111 : vector<48x32xf32>
    %c320 = arith.constant 320 : index
    %c0_43 = arith.constant 0 : index
    %113 = vector.load %arg11[%c320, %c0_43] : memref<512x256xbf16, #tpu.memory_space<vmem>>, vector<64x256xbf16>
    %cst_44 = arith.constant dense<0.000000e+00> : vector<48x256xf32>
    %114 = tpu.matmul %48, %113, %cst_44 {dimension_numbers = #tpu.dot_dimension_numbers<[1], [0], [0], [1], [0, 0, 1, 1], [], []>} : vector<48x64xbf16>, vector<64x256xbf16>, vector<48x256xf32> -> vector<48x256xf32>
    %115 = arith.mulf %114, %17 : vector<48x256xf32>
    %116 = vector.extract_strided_slice %115 {offsets = [0, 0], sizes = [48, 128], strides = [1, 1]} : vector<48x256xf32> to vector<48x128xf32>
    %117 = vector.extract_strided_slice %115 {offsets = [0, 128], sizes = [48, 128], strides = [1, 1]} : vector<48x256xf32> to vector<48x128xf32>
    %118 = arith.addf %116, %117 : vector<48x128xf32>
    %119 = vector.extract_strided_slice %118 {offsets = [0, 0], sizes = [48, 64], strides = [1, 1]} : vector<48x128xf32> to vector<48x64xf32>
    %120 = vector.extract_strided_slice %118 {offsets = [0, 64], sizes = [48, 64], strides = [1, 1]} : vector<48x128xf32> to vector<48x64xf32>
    %121 = arith.addf %119, %120 : vector<48x64xf32>
    %122 = vector.extract_strided_slice %121 {offsets = [0, 0], sizes = [48, 32], strides = [1, 1]} : vector<48x64xf32> to vector<48x32xf32>
    %123 = vector.extract_strided_slice %121 {offsets = [0, 32], sizes = [48, 32], strides = [1, 1]} : vector<48x64xf32> to vector<48x32xf32>
    %124 = arith.addf %122, %123 : vector<48x32xf32>
    %125 = arith.maximumf %112, %124 : vector<48x32xf32>
    %c384 = arith.constant 384 : index
    %c0_45 = arith.constant 0 : index
    %126 = vector.load %arg11[%c384, %c0_45] : memref<512x256xbf16, #tpu.memory_space<vmem>>, vector<64x256xbf16>
    %cst_46 = arith.constant dense<0.000000e+00> : vector<48x256xf32>
    %127 = tpu.matmul %48, %126, %cst_46 {dimension_numbers = #tpu.dot_dimension_numbers<[1], [0], [0], [1], [0, 0, 1, 1], [], []>} : vector<48x64xbf16>, vector<64x256xbf16>, vector<48x256xf32> -> vector<48x256xf32>
    %128 = arith.mulf %127, %17 : vector<48x256xf32>
    %129 = vector.extract_strided_slice %128 {offsets = [0, 0], sizes = [48, 128], strides = [1, 1]} : vector<48x256xf32> to vector<48x128xf32>
    %130 = vector.extract_strided_slice %128 {offsets = [0, 128], sizes = [48, 128], strides = [1, 1]} : vector<48x256xf32> to vector<48x128xf32>
    %131 = arith.addf %129, %130 : vector<48x128xf32>
    %132 = vector.extract_strided_slice %131 {offsets = [0, 0], sizes = [48, 64], strides = [1, 1]} : vector<48x128xf32> to vector<48x64xf32>
    %133 = vector.extract_strided_slice %131 {offsets = [0, 64], sizes = [48, 64], strides = [1, 1]} : vector<48x128xf32> to vector<48x64xf32>
    %134 = arith.addf %132, %133 : vector<48x64xf32>
    %135 = vector.extract_strided_slice %134 {offsets = [0, 0], sizes = [48, 32], strides = [1, 1]} : vector<48x64xf32> to vector<48x32xf32>
    %136 = vector.extract_strided_slice %134 {offsets = [0, 32], sizes = [48, 32], strides = [1, 1]} : vector<48x64xf32> to vector<48x32xf32>
    %137 = arith.addf %135, %136 : vector<48x32xf32>
    %138 = arith.maximumf %125, %137 : vector<48x32xf32>
    %c448 = arith.constant 448 : index
    %c0_47 = arith.constant 0 : index
    %139 = vector.load %arg11[%c448, %c0_47] : memref<512x256xbf16, #tpu.memory_space<vmem>>, vector<64x256xbf16>
    %cst_48 = arith.constant dense<0.000000e+00> : vector<48x256xf32>
    %140 = tpu.matmul %48, %139, %cst_48 {dimension_numbers = #tpu.dot_dimension_numbers<[1], [0], [0], [1], [0, 0, 1, 1], [], []>} : vector<48x64xbf16>, vector<64x256xbf16>, vector<48x256xf32> -> vector<48x256xf32>
    %141 = arith.mulf %140, %17 : vector<48x256xf32>
    %142 = vector.extract_strided_slice %141 {offsets = [0, 0], sizes = [48, 128], strides = [1, 1]} : vector<48x256xf32> to vector<48x128xf32>
    %143 = vector.extract_strided_slice %141 {offsets = [0, 128], sizes = [48, 128], strides = [1, 1]} : vector<48x256xf32> to vector<48x128xf32>
    %144 = arith.addf %142, %143 : vector<48x128xf32>
    %145 = vector.extract_strided_slice %144 {offsets = [0, 0], sizes = [48, 64], strides = [1, 1]} : vector<48x128xf32> to vector<48x64xf32>
    %146 = vector.extract_strided_slice %144 {offsets = [0, 64], sizes = [48, 64], strides = [1, 1]} : vector<48x128xf32> to vector<48x64xf32>
    %147 = arith.addf %145, %146 : vector<48x64xf32>
    %148 = vector.extract_strided_slice %147 {offsets = [0, 0], sizes = [48, 32], strides = [1, 1]} : vector<48x64xf32> to vector<48x32xf32>
    %149 = vector.extract_strided_slice %147 {offsets = [0, 32], sizes = [48, 32], strides = [1, 1]} : vector<48x64xf32> to vector<48x32xf32>
    %150 = arith.addf %148, %149 : vector<48x32xf32>
    %151 = arith.maximumf %138, %150 : vector<48x32xf32>
    %c0_49 = arith.constant 0 : index
    %c0_50 = arith.constant 0 : index
    %152 = vector.load %arg12[%c0_49, %c0_50] : memref<48x32xf32, #tpu.memory_space<vmem>>, vector<48x32xf32>
    tpu.vector_store %arg12[%c0_49, %c0_50], %151 {strides = array<i32>} : memref<48x32xf32, #tpu.memory_space<vmem>>, vector<48x32xf32>,
    return
  }
  func.func @transform_0(%arg0: i32) -> (i32, i32) {
    %c0_i32 = arith.constant 0 : i32
    %c0_i32_0 = arith.constant 0 : i32
    return %arg0, %c0_i32 : i32, i32
  }
  func.func @transform_1(%arg0: i32) -> (i32, i32) {
    %c0_i32 = arith.constant 0 : i32
    %c0_i32_0 = arith.constant 0 : i32
    return %arg0, %c0_i32 : i32, i32
  }
  func.func @transform_2(%arg0: i32) -> (i32, i32) {
    %c0_i32 = arith.constant 0 : i32
    %c0_i32_0 = arith.constant 0 : i32
    return %arg0, %c0_i32 : i32, i32
  }
  func.func @transform_3(%arg0: i32) -> (i32, i32) {
    %c0_i32 = arith.constant 0 : i32
    %c0_i32_0 = arith.constant 0 : i32
    %c0_i32_1 = arith.constant 0 : i32
    return %c0_i32, %c0_i32_0 : i32, i32
  }
  func.func @transform_4(%arg0: i32) -> (i32, i32) {
    %c0_i32 = arith.constant 0 : i32
    %c0_i32_0 = arith.constant 0 : i32
    %c0_i32_1 = arith.constant 0 : i32
    return %c0_i32, %c0_i32_0 : i32, i32
  }
  func.func @transform_5(%arg0: i32) -> (i32, i32) {
    %c0_i32 = arith.constant 0 : i32
    %c0_i32_0 = arith.constant 0 : i32
    %c0_i32_1 = arith.constant 0 : i32
    return %c0_i32, %c0_i32_0 : i32, i32
  }
  func.func @transform_6(%arg0: i32) -> (i32, i32) {
    %c0_i32 = arith.constant 0 : i32
    %c0_i32_0 = arith.constant 0 : i32
    %c0_i32_1 = arith.constant 0 : i32
    return %c0_i32, %c0_i32_0 : i32, i32
  }
  func.func @transform_7(%arg0: i32) -> (i32, i32) {
    %c0_i32 = arith.constant 0 : i32
    %c0_i32_0 = arith.constant 0 : i32
    %c0_i32_1 = arith.constant 0 : i32
    return %c0_i32, %c0_i32_0 : i32, i32
  }
  func.func @transform_8(%arg0: i32) -> (i32, i32) {
    %c0_i32 = arith.constant 0 : i32
    %c0_i32_0 = arith.constant 0 : i32
    %c0_i32_1 = arith.constant 0 : i32
    return %c0_i32, %c0_i32_0 : i32, i32
  }
  func.func @transform_9(%arg0: i32) -> (i32, i32) {
    %c0_i32 = arith.constant 0 : i32
    %c0_i32_0 = arith.constant 0 : i32
    %c0_i32_1 = arith.constant 0 : i32
    return %c0_i32, %c0_i32_0 : i32, i32
  }
  func.func @transform_10(%arg0: i32) -> (i32, i32) {
    %c0_i32 = arith.constant 0 : i32
    %c0_i32_0 = arith.constant 0 : i32
    %c0_i32_1 = arith.constant 0 : i32
    return %c0_i32, %c0_i32_0 : i32, i32
  }
  func.func @transform_11(%arg0: i32) -> (i32, i32) {
    %c0_i32 = arith.constant 0 : i32
    %c0_i32_0 = arith.constant 0 : i32
    return %arg0, %c0_i32 : i32, i32
  }
}

</mosaic_0001>

<bundles_post_ra>
// kernel: tile.53
= control target key start
LH: loop header
LB: loop body
LE: loop exit
PB: predicated region body
PF: predicated region fallthrough
CT: control target
= control target key end

     0   :  { %s22_s0 = inlined_call_operand.vmem [shape: f32[16], index: 0, kind: input, shape index: {}]   ;;  %s23_s1 = inlined_call_operand.vmem [shape: f32[8,16], index: 1, kind: output, shape index: {}]  }
   0x1   :  { %v4_v0 = vld [vmem:[%s22_s0] ss:$0 sm:$0xff] }
   0x2   :  { %5 = vst [vmem:[%s23_s1] sm:$0xff] %v4_v0 }

// kernel: plain_gcn_forward.2
= control target key start
LH: loop header
LB: loop body
LE: loop exit
PB: predicated region body
PF: predicated region fallthrough
CT: control target
= control target key end

     0   :  { %s3608_s17 = smov 0   ;;  %s4897_s0 = inlined_call_operand.vmem [shape: bf16[96,4], index: 0, kind: input, shape index: {}]   ;;  %s4898_s1 = inlined_call_operand.vmem [shape: bf16[96,32], index: 1, kind: input, shape index: {}]   ;;  %s4899_s2 = inlined_call_operand.vmem [shape: f32[96,8], index: 2, kind: input, shape index: {}]   ;;  %s4900_s3 = inlined_call_operand.vmem [shape: bf16[4,128], index: 3, kind: input, shape index: {}]   ;;  %s4901_s4 = inlined_call_operand.vmem [shape: bf16[32,128], index: 4, kind: input, shape index: {}]   ;;  %s4902_s5 = inlined_call_operand.vmem [shape: f32[8,128], index: 5, kind: input, shape index: {}]   ;;  %s4903_s6 = inlined_call_operand.vmem [shape: bf16[128,64], index: 6, kind: input, shape index: {}]   ;;  %s4904_s7 = inlined_call_operand.vmem [shape: bf16[128,64], index: 7, kind: input, shape index: {}]   ;;  %s4905_s8 = inlined_call_operand.vmem [shape: f32[64,8], index: 8, kind: input, shape index: {}]   ;;  %s4906_s9 = inlined_call_operand.vmem [shape: f32[8,64], index: 9, kind: input, shape index: {}]   ;;  %s4907_s10 = inlined_call_operand.vmem [shape: bf16[512,128], index: 10, kind: input, shape index: {}]   ;;  %s4908_s11 = inlined_call_operand.vmem [shape: f32[96,16], index: 11, kind: output, shape index: {}]  }
   0x1 LB: > { %s2894_s18 = sadd.s32 4294967295, %s3541_s17   ;;  %p2898_p0 = scmp.ge.s32.totalorder %s3541_s17, 1  ;;  %s3541_s17 = sphi %s3608_s17, %s21_s17  }
   0x2   : > { %p360_p1 = scmp.lt.s32.totalorder %s3541_s17, 3 }
   0x4   : > { %p361_p2 = pnand %p2898_p0, %p360_p1 }
   0x6   : > { %364 = sbr.rel (%p361_p2) target bundleno = 1740 (0x6cc), region = 64 }
   0xd   : > { %v3431_v0 = vld [vmem:[%s4901_s4] sm:$0xff]   ;;  %v3543_v1 = vmov 0.0   ;;  %vm571_vm0 = vcmask 1041408   ;;  %v3432_v2 = vld [vmem:[%s4901_s4 + $0x8] sm:$0xff]   ;;  %s410_s25 = smul.u32 6, %s2894_s18  ;;  %vm3544_vm1 = vmmov 0  }
   0xe   : > { %3120 = vmatprep.subr.bf16.mxu0 %v3543_v1  ;;  %3136 = vmatprep.subr.bf16.mxu1 %v3543_v1  ;;  %v441_v3 = vld [vmem:[%s4900_s3] sm:$0x3]  ;;  %vm479_vm2 = vcmask 261120   ;;  %vm561_vm3 = vcmask 31744   ;;  %v3441_v9 = vld [vmem:[%s4903_s6 + $0x8] sm:$0xff]   ;;  %v3443_v12 = vld [vmem:[%s4903_s6 + $0x10] sm:$0xff]  }
   0xf   : > { %3121 = vmatpush3.bf16.msra.mxu0 %v3431_v0  ;;  %v573_v4 = vsel %vm571_vm0, %v441_v3, 0  ;;  %3124 = vmatprep.mubr.msk.bf16.mxu0 %vm3544_vm1, %v3543_v1  ;;  %p411_p3 = scmp.lt.s32.totalorder %s410_s25, 11  ;;  %v3439_v5 = vld [vmem:[%s4903_s6] sm:$0xff]   ;;  %v3442_v10 = vld [vmem:[%s4904_s7 + $0x8] sm:$0xff]   ;;  %v3444_v14 = vld [vmem:[%s4904_s7 + $0x10] sm:$0xff]   ;;  %vm922_vm4 = vcmask 523264  }
  0x10   : > { %3122 = vmatprep.subr.bf16.mxu0 %v3543_v1  ;;  %3137 = vmatpush3.bf16.msra.mxu1 %v573_v4  ;;  %v3440_v6 = vld [vmem:[%s4904_s7] sm:$0xff]   ;;  %v3445_v15 = vld [vmem:[%s4903_s6 + $0x18] sm:$0xff]   ;;  %v3449_v21 = vld [vmem:[%s4903_s6 + $0x28] sm:$0xff]   ;;  %vm1153_vm5 = vcmask 64512   ;;  %s3545_s23 = smov 64   ;;  %s3546_s24 = smov 96  }
  0x11   : > { %3138 = vmatprep.mubr.msk.bf16.mxu1 %vm3544_vm1, %v3543_v1  ;;  %3150 = vmatprep.subr.bf16.mxu1 %v3543_v1  ;;  %s4984_s25 = smov (!%p411_p3, %s410_s25), 11  ;;  %v3446_v16 = vld [vmem:[%s4904_s7 + $0x18] sm:$0xff]   ;;  %v3447_v19 = vld [vmem:[%s4903_s6 + $0x20] sm:$0xff]   ;;  %v3450_v22 = vld [vmem:[%s4904_s7 + $0x28] sm:$0xff]   ;;  %vm2807_vm6 = vcmask 130048  }
  0x12   : > { %s2899_s26 = sshll.u32 %s4984_s25, 2  ;;  %v3448_v20 = vld [vmem:[%s4904_s7 + $0x20] sm:$0xff]   ;;  %v3451_v23 = vld [vmem:[%s4903_s6 + $0x30] sm:$0xff]   ;;  %v3453_v25 = vld [vmem:[%s4903_s6 + $0x38] sm:$0xff]   ;;  %s2901_s27 = sshll.u32 %s4984_s25, 3 }
  0x13   : > { %3123 = vmatpush3.bf16.msra.mxu0 %v3432_v2  ;;  %s3643_s12 = scalar_lea.vmem %s4898_s1, %s2899_s26  ;;  %s414_s18 = scalar_lea.vmem %s4897_s0, %s2899_s26  ;;  %v3452_v24 = vld [vmem:[%s4904_s7 + $0x30] sm:$0xff]   ;;  %v3454_v26 = vld [vmem:[%s4904_s7 + $0x38] sm:$0xff]   ;;  %v2917_v29 = vld [vmem:[%s4902_s5] ss:$0 sm:$0xff] }
  0x14   : > { %3178 = vmatprep.subr.bf16.mxu0 %v3543_v1  ;;  %v3433_v7 = vld [vmem:[%s3643_s12] sm:$0xff]   ;;  %v3435_v11 = vld [vmem:[%s3643_s12 + $0x8] sm:$0xff]   ;;  %v3437_v17 = vld [vmem:[%s3643_s12 + $0x10] sm:$0xff]   ;;  %s426_s30 = scalar_lea.vmem %s4899_s2, %s2901_s27  ;;  %s3547_s26 = smov 112  }
  0x15   : > { %v3434_v8 = vld [vmem:[%s414_s18] sm:$0xff]   ;;  %v3436_v13 = vld [vmem:[%s414_s18 + $0x8] sm:$0xff]   ;;  %v3438_v18 = vld [vmem:[%s414_s18 + $0x10] sm:$0xff]  }
  0x16   : > { %3125 = vmatmul.mubr.msk.bf16.vlgmr.msra.gmra.mrb[0].mxu0 %vm479_vm2, %v3433_v7  ;;  %3139 = vmatmul.mubr.msk.bf16.vlgmr.msra.gmra.mrb[0].mxu1 %vm561_vm3, %v3434_v8  ;;  %v2918_v39 = vld [vmem:[%s4902_s5 + $0x1] ss:$0 sm:$0xff]  ;;  %v2919_v45 = vld [vmem:[%s4902_s5 + $0x2] ss:$0 sm:$0xff] }
  0x17   : > { %3128 = vmatprep.mubr.msk.bf16.mxu0 %vm3544_vm1, %v3543_v1  ;;  %3142 = vmatprep.mubr.msk.bf16.mxu1 %vm3544_vm1, %v3543_v1 }
  0x18   : > { %3151 = vmatpush3.bf16.msra.mxu1 %v3439_v5  ;;  %3179 = vmatpush3.bf16.msra.mxu0 %v3440_v6 }
  0x19   : > { %3152 = vmatprep.subr.bf16.mxu1 %v3543_v1  ;;  %3180 = vmatprep.subr.bf16.mxu0 %v3543_v1 }
  0x1c   : > { %3153 = vmatpush3.bf16.msra.mxu1 %v3441_v9  ;;  %3181 = vmatpush3.bf16.msra.mxu0 %v3442_v10 }
  0x1d   : > { %3154 = vmatprep.subr.bf16.mxu1 %v3543_v1  ;;  %3182 = vmatprep.subr.bf16.mxu0 %v3543_v1 }
  0x1e   : > { %3129 = vmatmul.mubr.msk.bf16.gmra.mrb[4].mxu0 %vm479_vm2, %v3435_v11  ;;  %3143 = vmatmul.mubr.msk.bf16.gmra.mrb[4].mxu1 %vm561_vm3, %v3436_v13 }
  0x1f   : > { %3132 = vmatprep.mubr.msk.bf16.mxu0 %vm3544_vm1, %v3543_v1  ;;  %3146 = vmatprep.mubr.msk.bf16.mxu1 %vm3544_vm1, %v3543_v1 }
  0x20   : > { %3155 = vmatpush3.bf16.msra.mxu1 %v3443_v12  ;;  %3183 = vmatpush3.bf16.msra.mxu0 %v3444_v14 }
  0x21   : > { %3156 = vmatprep.subr.bf16.mxu1 %v3543_v1  ;;  %3184 = vmatprep.subr.bf16.mxu0 %v3543_v1 }
  0x24   : > { %3157 = vmatpush3.bf16.msra.mxu1 %v3445_v15  ;;  %3185 = vmatpush3.bf16.msra.mxu0 %v3446_v16 }
  0x25   : > { %3158 = vmatprep.subr.bf16.mxu1 %v3543_v1  ;;  %3186 = vmatprep.subr.bf16.mxu0 %v3543_v1 }
  0x26   : > { %3133 = vmatmul.mubr.msk.bf16.gmra.mrb[8].mxu0 %vm479_vm2, %v3437_v17  ;;  %3147 = vmatmul.mubr.msk.bf16.gmra.mrb[8].mxu1 %vm561_vm3, %v3438_v18 }
  0x27   : > { %3194 = vmatprep.mubr.msk.bf16.mxu0 %vm3544_vm1, %v3543_v1  ;;  %3166 = vmatprep.mubr.msk.bf16.mxu1 %vm3544_vm1, %v3543_v1 }
  0x28   : > { %3159 = vmatpush3.bf16.msra.mxu1 %v3447_v19  ;;  %3187 = vmatpush3.bf16.msra.mxu0 %v3448_v20 }
  0x29   : > { %3160 = vmatprep.subr.bf16.mxu1 %v3543_v1  ;;  %3188 = vmatprep.subr.bf16.mxu0 %v3543_v1 }
  0x2c   : > { %3161 = vmatpush3.bf16.msra.mxu1 %v3449_v21  ;;  %3189 = vmatpush3.bf16.msra.mxu0 %v3450_v22 }
  0x2d   : > { %3162 = vmatprep.subr.bf16.mxu1 %v3543_v1  ;;  %3190 = vmatprep.subr.bf16.mxu0 %v3543_v1 }
  0x30   : > { %3163 = vmatpush3.bf16.msra.mxu1 %v3451_v23  ;;  %3191 = vmatpush3.bf16.msra.mxu0 %v3452_v24  ;;  %v959_v24 = vld [vmem:[%s4905_s8] sm:$0xff] }
  0x31   : > { %3164 = vmatprep.subr.bf16.mxu1 %v3543_v1  ;;  %3192 = vmatprep.subr.bf16.mxu0 %v3543_v1 }
  0x34   : > { %3165 = vmatpush3.bf16.msra.mxu1 %v3453_v25  ;;  %3193 = vmatpush3.bf16.msra.mxu0 %v3454_v26  ;;  %v960_v25 = vld [vmem:[%s4905_s8 + $0x8] sm:$0xff] }
  0x35   : > { %v3402_v26 = vpack.c.bf16 %v960_v25, %v959_v24 }
  0x37   : > { %3403 = vmatprep.subr.bf16.mxu1 %v3402_v26 }
  0xe9   : > { %v523_v27 = vpop.f32.mrb[0].mxu0  ;;  %v609_v28 = vpop.f32.mrb[0].mxu1 }
  0xea   : > { %v3126_v30 = vpop.f32.mrb[1].mxu0  ;;  %v610_v31 = vadd.f32 %v609_v28, %v523_v27  ;;  %v3140_v32 = vpop.f32.mrb[1].mxu1 }
  0xeb   : > { %v526_v33 = vpop.f32.mrb[2].mxu0  ;;  %v612_v34 = vpop.f32.mrb[2].mxu1 }
  0xec   : > { %v3127_v35 = vpop.f32.mrb[3].mxu0  ;;  %v637_v36 = vadd.f32 %v2917_v29, %v610_v31  ;;  %v613_v37 = vadd.f32 %v612_v34, %v526_v33  ;;  %v3141_v38 = vpop.f32.mrb[3].mxu1 }
  0xee   : > { %v643_v40 = vmax.f32 %v637_v36, 0.0  ;;  %v638_v41 = vadd.f32 %v2917_v29, %v613_v37 }
  0xf0   : > { %v654_v42 = vmul.f32 %v2918_v39, %v643_v40  ;;  %v644_v43 = vmax.f32 %v638_v41, 0.0 }
  0xf1   : > { %v531_v44 = vpop.f32.mrb[4].mxu0  ;;  %v617_v46 = vpop.f32.mrb[4].mxu1 }
  0xf2   : > { %v3130_v47 = vpop.f32.mrb[5].mxu0  ;;  %v655_v48 = vmul.f32 %v2918_v39, %v644_v43  ;;  %v618_v49 = vadd.f32 %v617_v46, %v531_v44  ;;  %v3144_v50 = vpop.f32.mrb[5].mxu1  ;;  %v3737_v54 = vadd.f32 %v2919_v45, %v654_v42 }
  0xf3   : > { %v534_v51 = vpop.f32.mrb[6].mxu0  ;;  %v620_v52 = vpop.f32.mrb[6].mxu1 }
  0xf4   : > { %v3131_v53 = vpop.f32.mrb[7].mxu0  ;;  %v3739_v55 = vadd.f32 %v2919_v45, %v655_v48  ;;  %v639_v56 = vadd.f32 %v2917_v29, %v618_v49  ;;  %v621_v57 = vadd.f32 %v620_v52, %v534_v51  ;;  %v3145_v58 = vpop.f32.mrb[7].mxu1 }
  0xf6   : > { %v645_v59 = vmax.f32 %v639_v56, 0.0  ;;  %v640_v60 = vadd.f32 %v2917_v29, %v621_v57  ;;  %v671_v61 = vpack.c.bf16 %v3739_v55, %v3737_v54 }
  0xf8   : > { %v656_v62 = vmul.f32 %v2918_v39, %v645_v59  ;;  %v646_v63 = vmax.f32 %v640_v60, 0.0  ;;  %3167 = vmatmul.mubr.bf16.vlgmr.msra.gmra.mrb[12].mxu1 %v671_v61  ;;  %3195 = vmatmul.mubr.bf16.vlgmr.msra.gmra.mrb[12].mxu0 %v671_v61 }
  0xf9   : > { %v539_v0 = vpop.f32.mrb[8].mxu0  ;;  %v625_v2 = vpop.f32.mrb[8].mxu1  ;;  %3170 = vmatprep.mubr.msk.bf16.mxu1 %vm3544_vm1, %v3543_v1  ;;  %3198 = vmatprep.mubr.msk.bf16.mxu0 %vm3544_vm1, %v3543_v1 }
  0xfa   : > { %v3134_v3 = vpop.f32.mrb[9].mxu0  ;;  %v3747_v4 = vadd.f32 %v2919_v45, %v656_v62  ;;  %v657_v5 = vmul.f32 %v2918_v39, %v646_v63  ;;  %v626_v6 = vadd.f32 %v625_v2, %v539_v0  ;;  %v3148_v7 = vpop.f32.mrb[9].mxu1  ;;  %3405 = vmatpush3.bf16.msra.mxu1 %v3402_v26  ;;  %v961_v2 = vld [vmem:[%s4905_s8 + $0x10] sm:$0xff] }
  0xfb   : > { %v542_v8 = vpop.f32.mrb[10].mxu0  ;;  %v628_v9 = vpop.f32.mrb[10].mxu1  ;;  %v962_v3 = vld [vmem:[%s4905_s8 + $0x18] sm:$0xff]  ;;  %v964_v7 = vld [vmem:[%s4905_s8 + $0x28] sm:$0xff] }
  0xfc   : > { %v3135_v10 = vpop.f32.mrb[11].mxu0  ;;  %v3749_v11 = vadd.f32 %v2919_v45, %v657_v5  ;;  %v641_v12 = vadd.f32 %v2917_v29, %v626_v6  ;;  %v629_v13 = vadd.f32 %v628_v9, %v542_v8  ;;  %v3149_v14 = vpop.f32.mrb[11].mxu1  ;;  %v3406_v5 = vpack.c.bf16 %v962_v3, %v961_v2  ;;  %v963_v6 = vld [vmem:[%s4905_s8 + $0x20] sm:$0xff]  ;;  %v965_v9 = vld [vmem:[%s4905_s8 + $0x30] sm:$0xff] }
  0xfd   : > { %v3410_v8 = vpack.c.bf16 %v964_v7, %v963_v6  ;;  %v966_v10 = vld [vmem:[%s4905_s8 + $0x38] sm:$0xff] }
  0xfe   : > { %v647_v15 = vmax.f32 %v641_v12, 0.0  ;;  %v642_v16 = vadd.f32 %v2917_v29, %v629_v13  ;;  %v672_v17 = vpack.c.bf16 %v3749_v11, %v3747_v4  ;;  %3407 = vmatprep.subr.bf16.mxu1 %v3406_v5  ;;  %v3414_v12 = vpack.c.bf16 %v966_v10, %v965_v9  ;;  %v1152_v13 = vld [vmem:[%s4906_s9] sm:$0xff] }
  0xff   : > { %3409 = vmatpush3.bf16.msra.mxu1 %v3406_v5  ;;  %3231 = vmatprep.subr.mxu0 %v1152_v13 }
 0x100   : > { %v658_v18 = vmul.f32 %v2918_v39, %v647_v15  ;;  %v648_v19 = vmax.f32 %v642_v16, 0.0  ;;  %3171 = vmatmul.mubr.bf16.gmra.mrb[16].mxu1 %v672_v17  ;;  %3199 = vmatmul.mubr.bf16.gmra.mrb[16].mxu0 %v672_v17 }
 0x101   : > { %3174 = vmatprep.mubr.msk.bf16.mxu1 %vm3544_vm1, %v3543_v1  ;;  %3202 = vmatprep.mubr.msk.bf16.mxu0 %vm3544_vm1, %v3543_v1 }
 0x102   : > { %v3757_v20 = vadd.f32 %v2919_v45, %v658_v18  ;;  %v659_v21 = vmul.f32 %v2918_v39, %v648_v19  ;;  %3411 = vmatprep.subr.bf16.mxu1 %v3410_v8  ;;  %3232 = vmatpush3.msra.mxu0 %v1152_v13 }
 0x103   : > { %3413 = vmatpush3.bf16.msra.mxu1 %v3410_v8  ;;  %3262 = vmatprep.subr.bf16.mxu0 %v3543_v1 }
 0x104   : > { %v3759_v22 = vadd.f32 %v2919_v45, %v659_v21  ;;  %3415 = vmatprep.subr.bf16.mxu1 %v3414_v12 }
 0x106   : > { %v673_v23 = vpack.c.bf16 %v3759_v22, %v3757_v20 }
 0x107   : > { %3417 = vmatpush3.bf16.msra.mxu1 %v3414_v12 }
 0x108   : > { %3175 = vmatmul.mubr.bf16.gmra.mrb[20].mxu1 %v673_v23  ;;  %3203 = vmatmul.mubr.bf16.gmra.mrb[20].mxu0 %v673_v23 }
 0x109   : > { %3242 = vmatprep.subr.bf16.mxu1 %v3543_v1 }
 0x1cb   : > { %v772_v27 = vpop.f32.mrb[12].mxu1  ;;  %v893_v28 = vpop.f32.mrb[12].mxu0 }
 0x1cc   : > { %v916_v29 = vmul.f32 %v893_v28, %v772_v27  ;;  %v3168_v30 = vpop.f32.mrb[13].mxu1  ;;  %v3196_v31 = vpop.f32.mrb[13].mxu0 }
 0x1cd   : > { %v775_v32 = vpop.f32.mrb[14].mxu1  ;;  %v896_v33 = vpop.f32.mrb[14].mxu0 }
 0x1ce   : > { %v917_v34 = vmul.f32 %v896_v33, %v775_v32  ;;  %v3169_v35 = vpop.f32.mrb[15].mxu1  ;;  %v3197_v36 = vpop.f32.mrb[15].mxu0  ;;  %v923_v37 = vsel %vm922_vm4, %v916_v29, -inf }
 0x1cf   : > { %924 = vmax.xlane.f32.xlu0 %v923_v37 }
 0x1d0   : > { %v926_v38 = vsel %vm922_vm4, %v917_v34, -inf }
 0x1d3   : > { %v901_v39 = vpop.f32.mrb[16].mxu0  ;;  %927 = vmax.xlane.f32.xlu0 %v926_v38  ;;  %v780_v40 = vpop.f32.mrb[16].mxu1 }
 0x1d4   : > { %v918_v41 = vmul.f32 %v901_v39, %v780_v40  ;;  %v3172_v42 = vpop.f32.mrb[17].mxu1  ;;  %v3200_v43 = vpop.f32.mrb[17].mxu0  ;;  %v3455_v40 = vld [vmem:[%s4907_s10] sm:$0xff]  }
 0x1d5   : > { %v783_v44 = vpop.f32.mrb[18].mxu1  ;;  %v904_v45 = vpop.f32.mrb[18].mxu0  ;;  %v3459_v42 = vld [vmem:[%s4907_s10 + $0x10] sm:$0xff]   ;;  %v1080_v43 = vld [vmem:[%s426_s30] sm:$0xff] }
 0x1d6   : > { %v919_v46 = vmul.f32 %v904_v45, %v783_v44  ;;  %v3173_v47 = vpop.f32.mrb[19].mxu1  ;;  %v3201_v48 = vpop.f32.mrb[19].mxu0  ;;  %v929_v49 = vsel %vm922_vm4, %v918_v41, -inf  ;;  %v1081_v44 = vld [vmem:[%s426_s30 + $0x8] sm:$0xff]  ;;  %v1086_v45 = vsub.f32 0.0, %v1080_v43 }
 0x1d7   : > { %930 = vmax.xlane.f32.xlu1 %v929_v49  ;;  %v1082_v49 = vld [vmem:[%s426_s30 + $0x10] sm:$0xff] }
 0x1d8   : > { %v932_v50 = vsel %vm922_vm4, %v919_v46, -inf  ;;  %v2942_v47 = vmul.f32 -1.442695, %v1086_v45 }
 0x1db   : > { %v909_v51 = vpop.f32.mrb[20].mxu0  ;;  %933 = vmax.xlane.f32.xlu1 %v932_v50  ;;  %v788_v52 = vpop.f32.mrb[20].mxu1  ;;  %v1083_v50 = vld [vmem:[%s426_s30 + $0x18] sm:$0xff] }
 0x1dc   : > { %v920_v53 = vmul.f32 %v909_v51, %v788_v52  ;;  %v3176_v56 = vpop.f32.mrb[21].mxu1  ;;  %v3204_v57 = vpop.f32.mrb[21].mxu0  ;;  %v1088_v51 = vsub.f32 0.0, %v1082_v49  ;;  %v1089_v52 = vsub.f32 0.0, %v1083_v50 }
 0x1dd   : > { %v791_v58 = vpop.f32.mrb[22].mxu1  ;;  %v912_v59 = vpop.f32.mrb[22].mxu0 }
 0x1de   : > { %v921_v60 = vmul.f32 %v912_v59, %v791_v58  ;;  %v3205_v61 = vpop.f32.mrb[23].mxu0  ;;  %v935_v62 = vsel %vm922_vm4, %v920_v53, -inf  ;;  %v3177_v63 = vpop.f32.mrb[23].mxu1  ;;  %v2944_v56 = vmul.f32 -1.442695, %v1088_v51  ;;  %v1085_v58 = vld [vmem:[%s426_s30 + $0x28] sm:$0xff] }
 0x1df   : > { %936 = vmax.xlane.f32.xlu0 %v935_v62  ;;  %v2945_v59 = vmul.f32 -1.442695, %v1089_v52 }
 0x1e0   : > { %v938_v0 = vsel %vm922_vm4, %v921_v60, -inf }
 0x1e1   : > { %939 = vmax.xlane.f32.xlu1 %v938_v0 }
 0x25c   : > { %v925_v14 = vpop.xlane.xlu0 %924 }
 0x25d   : > { %v941_v15 = vsub.f32 %v916_v29, %v925_v14 }
 0x25f   : > { %v947_v16 = vmul.f32 1.442695, %v941_v15 }
 0x260   : > { %v928_v17 = vpop.xlane.xlu0 %927 }
 0x261   : > { %3487 = vpow2.f32 %v947_v16  ;;  %v942_v18 = vsub.f32 %v917_v34, %v928_v17 }
 0x263   : > { %v949_v19 = vmul.f32 1.442695, %v942_v18 }
 0x264   : > { %v931_v21 = vpop.xlane.xlu1 %930 }
 0x265   : > { %3489 = vpow2.f32 %v949_v19  ;;  %v943_v23 = vsub.f32 %v918_v41, %v931_v21  ;;  %v3457_v41 = vld [vmem:[%s4907_s10 + $0x8] sm:$0xff]  }
 0x267   : > { %v951_v24 = vmul.f32 1.442695, %v943_v23 }
 0x268   : > { %v934_v25 = vpop.xlane.xlu1 %933 }
 0x269   : > { %3491 = vpow2.f32 %v951_v24  ;;  %v944_v26 = vsub.f32 %v919_v46, %v934_v25  ;;  %v1087_v46 = vsub.f32 0.0, %v1081_v44 }
 0x26b   : > { %v3798_v27 = vpop.eup %3487  ;;  %v953_v28 = vmul.f32 1.442695, %v944_v26  ;;  %v2943_v48 = vmul.f32 -1.442695, %v1087_v46  ;;  %v3458_v46 = vld [vmem:[%s4907_s10 + $0x28] sm:$0xff]  }
 0x26c   : > { %3222 = vmatprep.mubr.msk.f32.mxu1 %vm922_vm4, %v3798_v27  ;;  %v937_v30 = vpop.xlane.xlu0 %936 }
 0x26d   : > { %3493 = vpow2.f32 %v953_v28  ;;  %v945_v29 = vsub.f32 %v920_v53, %v937_v30  ;;  %v1084_v53 = vld [vmem:[%s426_s30 + $0x20] sm:$0xff]  ;;  %s4844_s30 = scalar_lea.vmem %s4908_s11, %s2901_s27 }
 0x26e   : > { %v940_v31 = vpop.xlane.xlu1 %939  ;;  %v1090_v57 = vsub.f32 0.0, %v1084_v53  ;;  %v3460_v53 = vld [vmem:[%s4907_s10 + $0x30] sm:$0xff]  }
 0x26f   : > { %v3802_v32 = vpop.eup %3489  ;;  %v955_v33 = vmul.f32 1.442695, %v945_v29  ;;  %v946_v34 = vsub.f32 %v921_v60, %v940_v31  ;;  %v1091_v60 = vsub.f32 0.0, %v1085_v58 }
 0x270   : > { %3223 = vmatmul.mubr.msk.f32.vlgmr.msra.gmra.mrb[24].mxu1 %vm922_vm4, %v3802_v32  ;;  %v2946_v61 = vmul.f32 -1.442695, %v1090_v57 }
 0x271   : > { %3495 = vpow2.f32 %v955_v33  ;;  %v957_v35 = vmul.f32 1.442695, %v946_v34  ;;  %3243 = vmatpush3.bf16.msra.mxu1 %v3455_v40  ;;  %v2947_v0 = vmul.f32 -1.442695, %v1091_v60  ;;  %v3456_v40 = vld [vmem:[%s4907_s10 + $0x20] sm:$0xff]  }
 0x272   : > { %3244 = vmatprep.subr.bf16.mxu1 %v3543_v1 }
 0x273   : > { %v3806_v36 = vpop.eup %3491  ;;  %3497 = vpow2.f32 %v957_v35 }
 0x274   : > { %3225 = vmatprep.mubr.msk.f32.mxu1 %vm922_vm4, %v3806_v36  ;;  %3499 = vpow2.f32 %v2942_v47 }
 0x275   : > { %3245 = vmatpush3.bf16.msra.mxu1 %v3457_v41  ;;  %3501 = vpow2.f32 %v2943_v48 }
 0x276   : > { %3246 = vmatprep.subr.bf16.mxu1 %v3543_v1  ;;  %3503 = vpow2.f32 %v2944_v56 }
 0x277   : > { %v3810_v37 = vpop.eup %3493  ;;  %3505 = vpow2.f32 %v2945_v59 }
 0x278   : > { %3226 = vmatmul.mubr.msk.f32.gmra.mrb[26].mxu1 %vm922_vm4, %v3810_v37  ;;  %3507 = vpow2.f32 %v2946_v61 }
 0x279   : > { %3247 = vmatpush3.bf16.msra.mxu1 %v3459_v42  ;;  %3509 = vpow2.f32 %v2947_v0  ;;  %v3462_v0 = vld [vmem:[%s4907_s10 + $0x38] sm:$0xff]  }
 0x27a   : > { %3248 = vmatprep.subr.bf16.mxu1 %v3543_v1 }
 0x27b   : > { %v3814_v38 = vpop.eup %3495 }
 0x27c   : > { %3228 = vmatprep.mubr.msk.f32.mxu1 %vm922_vm4, %v3814_v38 }
 0x27d   : > { %v3818_v39 = vpop.eup %3497 }
 0x27e   : > { %3229 = vmatmul.mubr.msk.f32.gmra.mrb[28].mxu1 %vm922_vm4, %v3818_v39  ;;  %v3500_v62 = vpop.eup %3499 }
 0x27f   : > { %3250 = vmatprep.mubr.msk.bf16.mxu1 %vm3544_vm1, %v3543_v1  ;;  %v3502_v63 = vpop.eup %3501  ;;  %v1110_v2 = vadd.f32 1.0, %v3500_v62 }
 0x280   : > { %v1111_v3 = vadd.f32 1.0, %v3502_v63  ;;  %v3504_v5 = vpop.eup %3503  ;;  %v3461_v63 = vld [vmem:[%s4907_s10 + $0x18] sm:$0xff]  }
 0x281   : > { %3511 = vrcp.f32 %v1110_v2  ;;  %v3506_v6 = vpop.eup %3505  ;;  %v1112_v12 = vadd.f32 1.0, %v3504_v5  ;;  %3249 = vmatpush3.bf16.msra.mxu1 %v3461_v63 }
 0x282   : > { %3513 = vrcp.f32 %v1111_v3  ;;  %v3508_v13 = vpop.eup %3507  ;;  %v1113_v14 = vadd.f32 1.0, %v3506_v6  ;;  %3282 = vmatprep.subr.bf16.mxu1 %v3543_v1 }
 0x283   : > { %v3510_v15 = vpop.eup %3509  ;;  %v1114_v16 = vadd.f32 1.0, %v3508_v13 }
 0x284   : > { %v1115_v24 = vadd.f32 1.0, %v3510_v15 }
 0x28b   : > { %v3512_v17 = vpop.eup %3511 }
 0x28c   : > { %v3514_v19 = vpop.eup %3513  ;;  %v1128_v26 = vmul.f32 2.0, %v3512_v17 }
 0x28d   : > { %v1129_v28 = vmul.f32 2.0, %v3514_v19 }
 0x343   : > { %v3224_v7 = vpop.f32.mrb[24].mxu1 }
 0x344   : > { %v1135_v8 = vmax.f32 %v3224_v7, 1e-30  ;;  %v1051_v9 = vpop.f32.mrb[25].mxu1  ;;  %v3463_v7 = vld [vmem:[%s4907_s10 + $0x60] sm:$0xff]  }
 0x345   : > { %v1134_v10 = vmax.f32 %v1051_v9, 1e-30  ;;  %v3464_v9 = vld [vmem:[%s4907_s10 + $0x40] sm:$0xff]  }
 0x346   : > { %3515 = vrcp.f32 %v1135_v8 }
 0x347   : > { %3517 = vrcp.f32 %v1134_v10  ;;  %v3466_v10 = vld [vmem:[%s4907_s10 + $0x48] sm:$0xff]  }
 0x348   : > { %3519 = vrcp.f32 %v1112_v12 }
 0x349   : > { %3521 = vrcp.f32 %v1113_v14 }
 0x34a   : > { %3523 = vrcp.f32 %v1114_v16  ;;  %v3467_v16 = vld [vmem:[%s4907_s10 + $0x50] sm:$0xff]  }
 0x34b   : > { %v3227_v18 = vpop.f32.mrb[26].mxu1 }
 0x34c   : > { %v1137_v21 = vmax.f32 %v3227_v18, 1e-30  ;;  %v1061_v23 = vpop.f32.mrb[27].mxu1 }
 0x34d   : > { %v1136_v25 = vmax.f32 %v1061_v23, 1e-30  ;;  %v3470_v23 = vld [vmem:[%s4907_s10 + $0x78] sm:$0xff]  }
 0x34e   : > { %3525 = vrcp.f32 %v1137_v21  ;;  %v3469_v21 = vld [vmem:[%s4907_s10 + $0x58] sm:$0xff]  }
 0x34f   : > { %3527 = vrcp.f32 %v1136_v25  ;;  %v3473_v25 = vld [vmem:[%s4907_s10 + $0x88] sm:$0xff]  }
 0x350   : > { %v3516_v30 = vpop.eup %3515  ;;  %3529 = vrcp.f32 %v1115_v24  ;;  %v3472_v24 = vld [vmem:[%s4907_s10 + $0xa0] sm:$0xff]  }
 0x351   : > { %v3518_v29 = vpop.eup %3517  ;;  %v3230_v31 = vpop.f32.mrb[28].mxu1  ;;  %v1147_v42 = vmul.f32 %v3516_v30, %v1129_v28  ;;  %v3475_v28 = vld [vmem:[%s4907_s10 + $0x90] sm:$0xff]  }
 0x352   : > { %v1139_v33 = vmax.f32 %v3230_v31, 1e-30  ;;  %v1071_v34 = vpop.f32.mrb[29].mxu1  ;;  %v1146_v35 = vmul.f32 %v3518_v29, %v1128_v26  ;;  %v3520_v41 = vpop.eup %3519  ;;  %v3474_v26 = vld [vmem:[%s4907_s10 + $0xa8] sm:$0xff]   ;;  %v3476_v30 = vld [vmem:[%s4907_s10 + $0xb0] sm:$0xff]   ;;  %v3477_v29 = vld [vmem:[%s4907_s10 + $0x98] sm:$0xff]  }
 0x353   : > { %v1138_v43 = vmax.f32 %v1071_v34, 1e-30  ;;  %v3522_v44 = vpop.eup %3521  ;;  %v1130_v45 = vmul.f32 2.0, %v3520_v41  ;;  %v3478_v31 = vld [vmem:[%s4907_s10 + $0xb8] sm:$0xff]   ;;  %v3480_v34 = vld [vmem:[%s4907_s10 + $0xe0] sm:$0xff]   ;;  %v3483_v41 = vld [vmem:[%s4907_s10 + $0xd0] sm:$0xff]  }
 0x354   : > { %3531 = vrcp.f32 %v1139_v33  ;;  %3233 = vmatprep.mubr.msk.f32.mxu0 %vm1153_vm5, %v1146_v35  ;;  %v3524_v47 = vpop.eup %3523  ;;  %v1131_v48 = vmul.f32 2.0, %v3522_v44  ;;  %v3479_v33 = vld [vmem:[%s4907_s10 + $0xc0] sm:$0xff]   ;;  %v3481_v35 = vld [vmem:[%s4907_s10 + $0xc8] sm:$0xff]   ;;  %v3486_v44 = vld [vmem:[%s4907_s10 + $0xf8] sm:$0xff]  }
 0x355   : > { %3533 = vrcp.f32 %v1138_v43  ;;  %3234 = vmatmul.mubr.msk.f32.vlgmr.msra.gmra.mrb[24].mxu0 %vm1153_vm5, %v1147_v42  ;;  %v1132_v57 = vmul.f32 2.0, %v3524_v47  ;;  %v3484_v42 = vld [vmem:[%s4907_s10 + $0xf0] sm:$0xff]   ;;  %v3485_v43 = vld [vmem:[%s4907_s10 + $0xd8] sm:$0xff]  }
 0x356   : > { %3263 = vmatpush3.bf16.msra.mxu0 %v3456_v40  ;;  %v3482_v40 = vld [vmem:[%s4907_s10 + $0xe8] sm:$0xff]  }
 0x357   : > { %3264 = vmatprep.subr.bf16.mxu0 %v3543_v1 }
 0x358   : > { %v3526_v49 = vpop.eup %3525 }
 0x359   : > { %v3528_v50 = vpop.eup %3527  ;;  %v1149_v56 = vmul.f32 %v3526_v49, %v1131_v48 }
 0x35a   : > { %v3530_v51 = vpop.eup %3529  ;;  %v1148_v52 = vmul.f32 %v3528_v50, %v1130_v45  ;;  %3265 = vmatpush3.bf16.msra.mxu0 %v3458_v46 }
 0x35b   : > { %3266 = vmatprep.subr.bf16.mxu0 %v3543_v1  ;;  %v1133_v58 = vmul.f32 2.0, %v3530_v51 }
 0x35c   : > { %3236 = vmatprep.mubr.msk.f32.mxu0 %vm1153_vm5, %v1148_v52 }
 0x35d   : > { %3237 = vmatmul.mubr.msk.f32.gmra.mrb[26].mxu0 %vm1153_vm5, %v1149_v56 }
 0x35e   : > { %v3532_v59 = vpop.eup %3531  ;;  %3267 = vmatpush3.bf16.msra.mxu0 %v3460_v53 }
 0x35f   : > { %v3534_v60 = vpop.eup %3533  ;;  %3268 = vmatprep.subr.bf16.mxu0 %v3543_v1  ;;  %v1151_v62 = vmul.f32 %v3532_v59, %v1133_v58 }
 0x360   : > { %v1150_v61 = vmul.f32 %v3534_v60, %v1132_v57 }
 0x362   : > { %3239 = vmatprep.mubr.msk.f32.mxu0 %vm1153_vm5, %v1150_v61  ;;  %3269 = vmatpush3.bf16.msra.mxu0 %v3462_v0 }
 0x363   : > { %3240 = vmatmul.mubr.msk.f32.gmra.mrb[28].mxu0 %vm1153_vm5, %v1151_v62  ;;  %3302 = vmatprep.subr.bf16.mxu0 %v3543_v1 }
 0x364   : > { %3270 = vmatprep.mubr.msk.bf16.mxu0 %vm3544_vm1, %v3543_v1 }
 0x428   : > { %v3235_v2 = vpop.f32.mrb[24].mxu0 }
 0x429   : > { %v1268_v3 = vmul.f32 %v3802_v32, %v3235_v2  ;;  %v1238_v5 = vpop.f32.mrb[25].mxu0 }
 0x42a   : > { %v1267_v6 = vmul.f32 %v3798_v27, %v1238_v5  ;;  %v3465_v27 = vld [vmem:[%s4907_s10 + $0x68] sm:$0xff]  }
 0x42c   : > { %v3875_v8 = vpack.c.bf16 %v1268_v3, %v1267_v6 }
 0x42e   : > { %3251 = vmatmul.mubr.msk.bf16.vlgmr.msra.gmra.mrb[32].mxu1 %vm922_vm4, %v3875_v8  ;;  %3271 = vmatmul.mubr.msk.bf16.vlgmr.msra.gmra.mrb[32].mxu0 %vm922_vm4, %v3875_v8 }
 0x42f   : > { %3303 = vmatpush3.bf16.msra.mxu0 %v3463_v7  ;;  %3254 = vmatprep.mubr.msk.bf16.mxu1 %vm3544_vm1, %v3543_v1 }
 0x430   : > { %v3238_v32 = vpop.f32.mrb[26].mxu0  ;;  %3274 = vmatprep.mubr.msk.bf16.mxu0 %vm3544_vm1, %v3543_v1  ;;  %3283 = vmatpush3.bf16.msra.mxu1 %v3464_v9 }
 0x431   : > { %v1270_v12 = vmul.f32 %v3810_v37, %v3238_v32  ;;  %v1248_v13 = vpop.f32.mrb[27].mxu0  ;;  %3304 = vmatprep.subr.bf16.mxu0 %v3543_v1  ;;  %3284 = vmatprep.subr.bf16.mxu1 %v3543_v1  ;;  %v3468_v37 = vld [vmem:[%s4907_s10 + $0x70] sm:$0xff]  }
 0x432   : > { %v1269_v14 = vmul.f32 %v3806_v36, %v1248_v13 }
 0x433   : > { %3305 = vmatpush3.bf16.msra.mxu0 %v3465_v27 }
 0x434   : > { %v3898_v15 = vpack.c.bf16 %v1270_v12, %v1269_v14  ;;  %3285 = vmatpush3.bf16.msra.mxu1 %v3466_v10  ;;  %3306 = vmatprep.subr.bf16.mxu0 %v3543_v1 }
 0x435   : > { %3286 = vmatprep.subr.bf16.mxu1 %v3543_v1 }
 0x436   : > { %v3241_v17 = vpop.f32.mrb[28].mxu0  ;;  %3255 = vmatmul.mubr.msk.bf16.gmra.mrb[36].mxu1 %vm922_vm4, %v3898_v15  ;;  %3275 = vmatmul.mubr.msk.bf16.gmra.mrb[36].mxu0 %vm922_vm4, %v3898_v15 }
 0x437   : > { %v1272_v36 = vmul.f32 %v3818_v39, %v3241_v17  ;;  %v1258_v18 = vpop.f32.mrb[29].mxu0  ;;  %3258 = vmatprep.mubr.msk.bf16.mxu1 %vm3544_vm1, %v3543_v1  ;;  %3278 = vmatprep.mubr.msk.bf16.mxu0 %vm3544_vm1, %v3543_v1 }
 0x438   : > { %v1271_v19 = vmul.f32 %v3814_v38, %v1258_v18  ;;  %3287 = vmatpush3.bf16.msra.mxu1 %v3467_v16  ;;  %3307 = vmatpush3.bf16.msra.mxu0 %v3468_v37  ;;  %v3471_v38 = vld [vmem:[%s4907_s10 + $0x80] sm:$0xff]  }
 0x439   : > { %3288 = vmatprep.subr.bf16.mxu1 %v3543_v1  ;;  %3308 = vmatprep.subr.bf16.mxu0 %v3543_v1 }
 0x43a   : > { %v3926_v39 = vpack.c.bf16 %v1272_v36, %v1271_v19 }
 0x43c   : > { %3289 = vmatpush3.bf16.msra.mxu1 %v3469_v21  ;;  %3309 = vmatpush3.bf16.msra.mxu0 %v3470_v23 }
 0x43d   : > { %3322 = vmatprep.subr.bf16.mxu1 %v3543_v1  ;;  %3342 = vmatprep.subr.bf16.mxu0 %v3543_v1 }
 0x43e   : > { %3259 = vmatmul.mubr.msk.bf16.gmra.mrb[40].mxu1 %vm922_vm4, %v3926_v39  ;;  %3279 = vmatmul.mubr.msk.bf16.gmra.mrb[40].mxu0 %vm922_vm4, %v3926_v39 }
 0x43f   : > { %3290 = vmatprep.mubr.msk.bf16.mxu1 %vm3544_vm1, %v3543_v1  ;;  %3310 = vmatprep.mubr.msk.bf16.mxu0 %vm3544_vm1, %v3543_v1 }
 0x446   : > { %3291 = vmatmul.mubr.msk.bf16.vlgmr.msra.gmra.mrb[44].mxu1 %vm922_vm4, %v3875_v8  ;;  %3311 = vmatmul.mubr.msk.bf16.vlgmr.msra.gmra.mrb[44].mxu0 %vm922_vm4, %v3875_v8 }
 0x447   : > { %3294 = vmatprep.mubr.msk.bf16.mxu1 %vm3544_vm1, %v3543_v1  ;;  %3314 = vmatprep.mubr.msk.bf16.mxu0 %vm3544_vm1, %v3543_v1 }
 0x448   : > { %3323 = vmatpush3.bf16.msra.mxu1 %v3471_v38  ;;  %3343 = vmatpush3.bf16.msra.mxu0 %v3472_v24 }
 0x449   : > { %3324 = vmatprep.subr.bf16.mxu1 %v3543_v1  ;;  %3344 = vmatprep.subr.bf16.mxu0 %v3543_v1 }
 0x44c   : > { %3325 = vmatpush3.bf16.msra.mxu1 %v3473_v25  ;;  %3345 = vmatpush3.bf16.msra.mxu0 %v3474_v26 }
 0x44d   : > { %3326 = vmatprep.subr.bf16.mxu1 %v3543_v1  ;;  %3346 = vmatprep.subr.bf16.mxu0 %v3543_v1 }
 0x44e   : > { %3295 = vmatmul.mubr.msk.bf16.gmra.mrb[48].mxu1 %vm922_vm4, %v3898_v15  ;;  %3315 = vmatmul.mubr.msk.bf16.gmra.mrb[48].mxu0 %vm922_vm4, %v3898_v15 }
 0x44f   : > { %3298 = vmatprep.mubr.msk.bf16.mxu1 %vm3544_vm1, %v3543_v1  ;;  %3318 = vmatprep.mubr.msk.bf16.mxu0 %vm3544_vm1, %v3543_v1 }
 0x450   : > { %3327 = vmatpush3.bf16.msra.mxu1 %v3475_v28  ;;  %3347 = vmatpush3.bf16.msra.mxu0 %v3476_v30 }
 0x451   : > { %3328 = vmatprep.subr.bf16.mxu1 %v3543_v1  ;;  %3348 = vmatprep.subr.bf16.mxu0 %v3543_v1 }
 0x454   : > { %3329 = vmatpush3.bf16.msra.mxu1 %v3477_v29  ;;  %3349 = vmatpush3.bf16.msra.mxu0 %v3478_v31 }
 0x455   : > { %3362 = vmatprep.subr.bf16.mxu1 %v3543_v1  ;;  %3382 = vmatprep.subr.bf16.mxu0 %v3543_v1 }
 0x456   : > { %3299 = vmatmul.mubr.msk.bf16.gmra.mrb[52].mxu1 %vm922_vm4, %v3926_v39  ;;  %3319 = vmatmul.mubr.msk.bf16.gmra.mrb[52].mxu0 %vm922_vm4, %v3926_v39 }
 0x457   : > { %3330 = vmatprep.mubr.msk.bf16.mxu1 %vm3544_vm1, %v3543_v1  ;;  %3350 = vmatprep.mubr.msk.bf16.mxu0 %vm3544_vm1, %v3543_v1 }
 0x45e   : > { %3331 = vmatmul.mubr.msk.bf16.vlgmr.msra.gmra.mrb[56].mxu1 %vm922_vm4, %v3875_v8  ;;  %3351 = vmatmul.mubr.msk.bf16.vlgmr.msra.gmra.mrb[56].mxu0 %vm922_vm4, %v3875_v8 }
 0x45f   : > { %3334 = vmatprep.mubr.msk.bf16.mxu1 %vm3544_vm1, %v3543_v1  ;;  %3354 = vmatprep.mubr.msk.bf16.mxu0 %vm3544_vm1, %v3543_v1 }
 0x460   : > { %3363 = vmatpush3.bf16.msra.mxu1 %v3479_v33  ;;  %3383 = vmatpush3.bf16.msra.mxu0 %v3480_v34 }
 0x461   : > { %3364 = vmatprep.subr.bf16.mxu1 %v3543_v1  ;;  %3384 = vmatprep.subr.bf16.mxu0 %v3543_v1 }
 0x464   : > { %3365 = vmatpush3.bf16.msra.mxu1 %v3481_v35  ;;  %3385 = vmatpush3.bf16.msra.mxu0 %v3482_v40 }
 0x465   : > { %3366 = vmatprep.subr.bf16.mxu1 %v3543_v1  ;;  %3386 = vmatprep.subr.bf16.mxu0 %v3543_v1 }
 0x466   : > { %3335 = vmatmul.mubr.msk.bf16.gmra.mrb[60].mxu1 %vm922_vm4, %v3898_v15  ;;  %3355 = vmatmul.mubr.msk.bf16.gmra.mrb[60].mxu0 %vm922_vm4, %v3898_v15 }
 0x467   : > { %3338 = vmatprep.mubr.msk.bf16.mxu1 %vm3544_vm1, %v3543_v1  ;;  %3358 = vmatprep.mubr.msk.bf16.mxu0 %vm3544_vm1, %v3543_v1 }
 0x468   : > { %3367 = vmatpush3.bf16.msra.mxu1 %v3483_v41  ;;  %3387 = vmatpush3.bf16.msra.mxu0 %v3484_v42 }
 0x469   : > { %3368 = vmatprep.subr.bf16.mxu1 %v3543_v1  ;;  %3388 = vmatprep.subr.bf16.mxu0 %v3543_v1 }
 0x46c   : > { %3369 = vmatpush3.bf16.msra.mxu1 %v3485_v43  ;;  %3389 = vmatpush3.bf16.msra.mxu0 %v3486_v44 }
 0x46e   : > { %3339 = vmatmul.mubr.msk.bf16.gmra.mrb[64].mxu1 %vm922_vm4, %v3926_v39  ;;  %3359 = vmatmul.mubr.msk.bf16.gmra.mrb[64].mxu0 %vm922_vm4, %v3926_v39 }
 0x46f   : > { %3370 = vmatprep.mubr.msk.bf16.mxu1 %vm3544_vm1, %v3543_v1  ;;  %3390 = vmatprep.mubr.msk.bf16.mxu0 %vm3544_vm1, %v3543_v1 }
 0x476   : > { %3371 = vmatmul.mubr.msk.bf16.vlgmr.msra.gmra.mrb[68].mxu1 %vm922_vm4, %v3875_v8  ;;  %3391 = vmatmul.mubr.msk.bf16.vlgmr.msra.gmra.mrb[68].mxu0 %vm922_vm4, %v3875_v8 }
 0x477   : > { %3374 = vmatprep.mubr.msk.bf16.mxu1 %vm3544_vm1, %v3543_v1  ;;  %3394 = vmatprep.mubr.msk.bf16.mxu0 %vm3544_vm1, %v3543_v1 }
 0x47e   : > { %3375 = vmatmul.mubr.msk.bf16.gmra.mrb[72].mxu1 %vm922_vm4, %v3898_v15  ;;  %3395 = vmatmul.mubr.msk.bf16.gmra.mrb[72].mxu0 %vm922_vm4, %v3898_v15 }
 0x47f   : > { %3378 = vmatprep.mubr.msk.bf16.mxu1 %vm3544_vm1, %v3543_v1  ;;  %3398 = vmatprep.mubr.msk.bf16.mxu0 %vm3544_vm1, %v3543_v1 }
 0x486   : > { %3379 = vmatmul.mubr.msk.bf16.gmra.mrb[76].mxu1 %vm922_vm4, %v3926_v39  ;;  %3399 = vmatmul.mubr.msk.bf16.gmra.mrb[76].mxu0 %vm922_vm4, %v3926_v39 }
 0x501   : > { %v1351_v45 = vpop.f32.mrb[32].mxu1  ;;  %v1536_v46 = vpop.f32.mrb[32].mxu0 }
 0x502   : > { %v4069_v47 = vmul.f32 %v1351_v45, %v3737_v54  ;;  %v3252_v48 = vpop.f32.mrb[33].mxu1  ;;  %v3272_v49 = vpop.f32.mrb[33].mxu0  ;;  %v4077_v56 = vmul.f32 %v1536_v46, %v3737_v54 }
 0x503   : > { %v1354_v50 = vpop.f32.mrb[34].mxu1  ;;  %v1539_v51 = vpop.f32.mrb[34].mxu0 }
 0x504   : > { %v4072_v52 = vmul.f32 %v1354_v50, %v3739_v55  ;;  %1386 = vrot.lane.b32.xlu0 %v4069_v47, %s3545_s23  ;;  %v3253_v1 = vpop.f32.mrb[35].mxu1  ;;  %v3273_v53 = vpop.f32.mrb[35].mxu0  ;;  %v4082_v57 = vmul.f32 %v1539_v51, %v3739_v55 }
 0x506   : > { %1388 = vrot.lane.b32.xlu1 %v4072_v52, %s3545_s23 }
 0x508   : > { %1571 = vrot.lane.b32.xlu0 %v4077_v56, %s3545_s23 }
 0x509   : > { %v1359_v58 = vpop.f32.mrb[36].mxu1  ;;  %v1544_v59 = vpop.f32.mrb[36].mxu0 }
 0x50a   : > { %v4087_v60 = vmul.f32 %v1544_v59, %v3747_v4  ;;  %v3256_v61 = vpop.f32.mrb[37].mxu1  ;;  %1573 = vrot.lane.b32.xlu1 %v4082_v57, %s3545_s23  ;;  %v3276_v62 = vpop.f32.mrb[37].mxu0  ;;  %v4092_v2 = vmul.f32 %v1359_v58, %v3747_v4 }
 0x50b   : > { %v1362_v63 = vpop.f32.mrb[38].mxu1  ;;  %v1547_v0 = vpop.f32.mrb[38].mxu0 }
 0x50c   : > { %v3257_v3 = vpop.f32.mrb[39].mxu1  ;;  %1575 = vrot.lane.b32.xlu0 %v4087_v60, %s3545_s23  ;;  %v3277_v5 = vpop.f32.mrb[39].mxu0  ;;  %v4099_v6 = vmul.f32 %v1362_v63, %v3749_v11  ;;  %v4107_v13 = vmul.f32 %v1547_v0, %v3749_v11 }
 0x50e   : > { %1390 = vrot.lane.b32.xlu1 %v4092_v2, %s3545_s23 }
 0x511   : > { %v1367_v7 = vpop.f32.mrb[40].mxu1  ;;  %v1552_v8 = vpop.f32.mrb[40].mxu0 }
 0x512   : > { %v4102_v9 = vmul.f32 %v1367_v7, %v3757_v20  ;;  %1392 = vrot.lane.b32.xlu1 %v4099_v6, %s3545_s23  ;;  %v3260_v27 = vpop.f32.mrb[41].mxu1  ;;  %v3280_v32 = vpop.f32.mrb[41].mxu0  ;;  %v4112_v16 = vmul.f32 %v1552_v8, %v3757_v20 }
 0x513   : > { %v1370_v10 = vpop.f32.mrb[42].mxu1  ;;  %v1555_v12 = vpop.f32.mrb[42].mxu0 }
 0x514   : > { %v3281_v14 = vpop.f32.mrb[43].mxu0  ;;  %1394 = vrot.lane.b32.xlu0 %v4102_v9, %s3545_s23  ;;  %v3261_v15 = vpop.f32.mrb[43].mxu1  ;;  %v4117_v37 = vmul.f32 %v1370_v10, %v3759_v22  ;;  %v4127_v38 = vmul.f32 %v1555_v12, %v3759_v22 }
 0x516   : > { %1577 = vrot.lane.b32.xlu1 %v4107_v13, %s3545_s23 }
 0x518   : > { %1579 = vrot.lane.b32.xlu0 %v4112_v16, %s3545_s23 }
 0x519   : > { %v1727_v17 = vpop.f32.mrb[44].mxu1  ;;  %v1918_v36 = vpop.f32.mrb[44].mxu0 }
 0x51a   : > { %v4122_v18 = vmul.f32 %v1727_v17, %v3737_v54  ;;  %v3312_v19 = vpop.f32.mrb[45].mxu0  ;;  %1396 = vrot.lane.b32.xlu1 %v4117_v37, %s3545_s23  ;;  %v3292_v21 = vpop.f32.mrb[45].mxu1  ;;  %v4137_v28 = vmul.f32 %v1918_v36, %v3737_v54 }
 0x51b   : > { %v1730_v23 = vpop.f32.mrb[46].mxu1  ;;  %v1921_v39 = vpop.f32.mrb[46].mxu0 }
 0x51c   : > { %v3313_v24 = vpop.f32.mrb[47].mxu0  ;;  %1762 = vrot.lane.b32.xlu0 %v4122_v18, %s3545_s23  ;;  %v3293_v25 = vpop.f32.mrb[47].mxu1  ;;  %v4132_v26 = vmul.f32 %v1921_v39, %v3739_v55  ;;  %v4147_v41 = vmul.f32 %v1730_v23, %v3739_v55 }
 0x51e   : > { %1581 = vrot.lane.b32.xlu1 %v4127_v38, %s3545_s23 }
 0x520   : > { %1955 = vrot.lane.b32.xlu0 %v4132_v26, %s3545_s23 }
 0x521   : > { %v1735_v30 = vpop.f32.mrb[48].mxu1  ;;  %v1926_v29 = vpop.f32.mrb[48].mxu0 }
 0x522   : > { %v4142_v31 = vmul.f32 %v1735_v30, %v3747_v4  ;;  %v3316_v33 = vpop.f32.mrb[49].mxu0  ;;  %1953 = vrot.lane.b32.xlu1 %v4137_v28, %s3545_s23  ;;  %v3296_v34 = vpop.f32.mrb[49].mxu1  ;;  %v4157_v45 = vmul.f32 %v1926_v29, %v3747_v4 }
 0x523   : > { %v1738_v35 = vpop.f32.mrb[50].mxu1  ;;  %v1929_v40 = vpop.f32.mrb[50].mxu0 }
 0x524   : > { %v3317_v42 = vpop.f32.mrb[51].mxu0  ;;  %1766 = vrot.lane.b32.xlu0 %v4142_v31, %s3545_s23  ;;  %v3297_v43 = vpop.f32.mrb[51].mxu1  ;;  %v4152_v44 = vmul.f32 %v1929_v40, %v3749_v11  ;;  %v4167_v58 = vmul.f32 %v1738_v35, %v3749_v11 }
 0x526   : > { %1764 = vrot.lane.b32.xlu1 %v4147_v41, %s3545_s23 }
 0x528   : > { %1959 = vrot.lane.b32.xlu0 %v4152_v44, %s3545_s23 }
 0x529   : > { %v1743_v46 = vpop.f32.mrb[52].mxu1  ;;  %v1934_v48 = vpop.f32.mrb[52].mxu0 }
 0x52a   : > { %v4162_v49 = vmul.f32 %v1743_v46, %v3757_v20  ;;  %v3320_v50 = vpop.f32.mrb[53].mxu0  ;;  %1957 = vrot.lane.b32.xlu1 %v4157_v45, %s3545_s23  ;;  %v3300_v51 = vpop.f32.mrb[53].mxu1  ;;  %v4177_v63 = vmul.f32 %v1934_v48, %v3757_v20 }
 0x52b   : > { %v1746_v1 = vpop.f32.mrb[54].mxu1  ;;  %v1937_v53 = vpop.f32.mrb[54].mxu0 }
 0x52c   : > { %v3321_v59 = vpop.f32.mrb[55].mxu0  ;;  %1770 = vrot.lane.b32.xlu0 %v4162_v49, %s3545_s23  ;;  %v3301_v61 = vpop.f32.mrb[55].mxu1  ;;  %v4172_v62 = vmul.f32 %v1937_v53, %v3759_v22  ;;  %v4184_v32 = vmul.f32 %v1746_v1, %v3759_v22 }
 0x52e   : > { %1768 = vrot.lane.b32.xlu1 %v4167_v58, %s3545_s23 }
 0x530   : > { %1963 = vrot.lane.b32.xlu0 %v4172_v62, %s3545_s23 }
 0x531   : > { %v2109_v0 = vpop.f32.mrb[56].mxu1  ;;  %v2300_v3 = vpop.f32.mrb[56].mxu0 }
 0x532   : > { %v3352_v5 = vpop.f32.mrb[57].mxu0  ;;  %1961 = vrot.lane.b32.xlu1 %v4177_v63, %s3545_s23  ;;  %v3332_v7 = vpop.f32.mrb[57].mxu1  ;;  %v4194_v15 = vmul.f32 %v2109_v0, %v3737_v54  ;;  %v4204_v25 = vmul.f32 %v2300_v3, %v3737_v54 }
 0x533   : > { %v2112_v8 = vpop.f32.mrb[58].mxu1  ;;  %v2303_v27 = vpop.f32.mrb[58].mxu0 }
 0x534   : > { %v4187_v10 = vmul.f32 %v2112_v8, %v3739_v55  ;;  %v3333_v12 = vpop.f32.mrb[59].mxu1  ;;  %v3353_v14 = vpop.f32.mrb[59].mxu0  ;;  %v4197_v17 = vmul.f32 %v2303_v27, %v3739_v55 }
 0x536   : > { %1772 = vrot.lane.b32.xlu1 %v4184_v32, %s3545_s23  ;;  %2146 = vrot.lane.b32.xlu0 %v4187_v10, %s3545_s23 }
 0x539   : > { %v2117_v36 = vpop.f32.mrb[60].mxu1  ;;  %v2308_v19 = vpop.f32.mrb[60].mxu0 }
 0x53a   : > { %v3356_v21 = vpop.f32.mrb[61].mxu0  ;;  %2144 = vrot.lane.b32.xlu1 %v4194_v15, %s3545_s23  ;;  %2337 = vrot.lane.b32.xlu0 %v4197_v17, %s3545_s23  ;;  %v3336_v23 = vpop.f32.mrb[61].mxu1  ;;  %v4214_v34 = vmul.f32 %v2117_v36, %v3747_v4  ;;  %v4224_v51 = vmul.f32 %v2308_v19, %v3747_v4 }
 0x53b   : > { %v2120_v39 = vpop.f32.mrb[62].mxu1  ;;  %v2311_v24 = vpop.f32.mrb[62].mxu0 }
 0x53c   : > { %v4207_v30 = vmul.f32 %v2120_v39, %v3749_v11  ;;  %v3337_v29 = vpop.f32.mrb[63].mxu1  ;;  %v3357_v33 = vpop.f32.mrb[63].mxu0  ;;  %v4217_v35 = vmul.f32 %v2311_v24, %v3749_v11 }
 0x53e   : > { %2335 = vrot.lane.b32.xlu1 %v4204_v25, %s3545_s23  ;;  %2150 = vrot.lane.b32.xlu0 %v4207_v30, %s3545_s23 }
 0x541   : > { %v2125_v40 = vpop.f32.mrb[64].mxu1  ;;  %v2316_v42 = vpop.f32.mrb[64].mxu0 }
 0x542   : > { %v3360_v43 = vpop.f32.mrb[65].mxu0  ;;  %2148 = vrot.lane.b32.xlu1 %v4214_v34, %s3545_s23  ;;  %2341 = vrot.lane.b32.xlu0 %v4217_v35, %s3545_s23  ;;  %v3340_v46 = vpop.f32.mrb[65].mxu1  ;;  %v4234_v61 = vmul.f32 %v2125_v40, %v3757_v20  ;;  %v4244_v14 = vmul.f32 %v2316_v42, %v3757_v20 }
 0x543   : > { %v2128_v48 = vpop.f32.mrb[66].mxu1  ;;  %v2319_v50 = vpop.f32.mrb[66].mxu0 }
 0x544   : > { %v4227_v1 = vmul.f32 %v2128_v48, %v3759_v22  ;;  %v3341_v53 = vpop.f32.mrb[67].mxu1  ;;  %v3361_v59 = vpop.f32.mrb[67].mxu0  ;;  %v4237_v0 = vmul.f32 %v2319_v50, %v3759_v22 }
 0x546   : > { %2339 = vrot.lane.b32.xlu1 %v4224_v51, %s3545_s23  ;;  %2154 = vrot.lane.b32.xlu0 %v4227_v1, %s3545_s23 }
 0x549   : > { %v2491_v3 = vpop.f32.mrb[68].mxu1  ;;  %v2682_v5 = vpop.f32.mrb[68].mxu0 }
 0x54a   : > { %v3392_v7 = vpop.f32.mrb[69].mxu0  ;;  %2152 = vrot.lane.b32.xlu1 %v4234_v61, %s3545_s23  ;;  %2345 = vrot.lane.b32.xlu0 %v4237_v0, %s3545_s23  ;;  %v3372_v8 = vpop.f32.mrb[69].mxu1  ;;  %v4254_v23 = vmul.f32 %v2491_v3, %v3737_v54  ;;  %v4264_v46 = vmul.f32 %v2682_v5, %v3737_v54 }
 0x54b   : > { %v2494_v27 = vpop.f32.mrb[70].mxu1  ;;  %v2685_v12 = vpop.f32.mrb[70].mxu0 }
 0x54c   : > { %v4247_v36 = vmul.f32 %v2494_v27, %v3739_v55  ;;  %v3373_v19 = vpop.f32.mrb[71].mxu1  ;;  %v3393_v21 = vpop.f32.mrb[71].mxu0  ;;  %v4257_v39 = vmul.f32 %v2685_v12, %v3739_v55 }
 0x54e   : > { %2343 = vrot.lane.b32.xlu1 %v4244_v14, %s3545_s23  ;;  %2528 = vrot.lane.b32.xlu0 %v4247_v36, %s3545_s23 }
 0x551   : > { %v2499_v24 = vpop.f32.mrb[72].mxu1  ;;  %v2690_v29 = vpop.f32.mrb[72].mxu0 }
 0x552   : > { %v3396_v33 = vpop.f32.mrb[73].mxu0  ;;  %2526 = vrot.lane.b32.xlu1 %v4254_v23, %s3545_s23  ;;  %2719 = vrot.lane.b32.xlu0 %v4257_v39, %s3545_s23  ;;  %v3376_v40 = vpop.f32.mrb[73].mxu1  ;;  %v4274_v53 = vmul.f32 %v2499_v24, %v3747_v4  ;;  %v4284_v12 = vmul.f32 %v2690_v29, %v3747_v4 }
 0x553   : > { %v2502_v42 = vpop.f32.mrb[74].mxu1  ;;  %v2693_v43 = vpop.f32.mrb[74].mxu0 }
 0x554   : > { %v4267_v48 = vmul.f32 %v2502_v42, %v3749_v11  ;;  %v3377_v55 = vpop.f32.mrb[75].mxu1  ;;  %v3397_v50 = vpop.f32.mrb[75].mxu0  ;;  %v4277_v59 = vmul.f32 %v2693_v43, %v3749_v11 }
 0x556   : > { %2717 = vrot.lane.b32.xlu1 %v4264_v46, %s3545_s23  ;;  %2532 = vrot.lane.b32.xlu0 %v4267_v48, %s3545_s23 }
 0x559   : > { %v2507_v3 = vpop.f32.mrb[76].mxu1  ;;  %v2698_v54 = vpop.f32.mrb[76].mxu0 }
 0x55a   : > { %v3400_v5 = vpop.f32.mrb[77].mxu0  ;;  %2530 = vrot.lane.b32.xlu1 %v4274_v53, %s3545_s23  ;;  %2723 = vrot.lane.b32.xlu0 %v4277_v59, %s3545_s23  ;;  %v3380_v7 = vpop.f32.mrb[77].mxu1  ;;  %v4294_v24 = vmul.f32 %v2507_v3, %v3757_v20  ;;  %v4304_v4 = vmul.f32 %v2698_v54, %v3757_v20 }
 0x55b   : > { %v2510_v8 = vpop.f32.mrb[78].mxu1  ;;  %v2701_v27 = vpop.f32.mrb[78].mxu0 }
 0x55c   : > { %v4287_v19 = vmul.f32 %v2510_v8, %v3759_v22  ;;  %v3381_v11 = vpop.f32.mrb[79].mxu1  ;;  %v3401_v21 = vpop.f32.mrb[79].mxu0  ;;  %v4297_v33 = vmul.f32 %v2701_v27, %v3759_v22 }
 0x55e   : > { %2721 = vrot.lane.b32.xlu1 %v4284_v12, %s3545_s23  ;;  %2536 = vrot.lane.b32.xlu0 %v4287_v19, %s3545_s23 }
 0x562   : > { %2534 = vrot.lane.b32.xlu1 %v4294_v24, %s3545_s23  ;;  %2727 = vrot.lane.b32.xlu0 %v4297_v33, %s3545_s23 }
 0x566   : > { %2725 = vrot.lane.b32.xlu1 %v4304_v4, %s3545_s23 }
 0x576   : > { %v1387_v29 = vpop.permute.xlu0 %1386 }
 0x577   : > { %v4309_v40 = vadd.f32 %v1387_v29, %v4069_v47 }
 0x578   : > { %v1389_v42 = vpop.permute.xlu1 %1388 }
 0x579   : > { %v4312_v22 = vadd.f32 %v1389_v42, %v4072_v52  ;;  %1416 = vrot.lane.b32.xlu0 %v4309_v40, %s3546_s24 }
 0x57a   : > { %v1572_v43 = vpop.permute.xlu0 %1571 }
 0x57b   : > { %v4317_v55 = vadd.f32 %v1572_v43, %v4077_v56  ;;  %1418 = vrot.lane.b32.xlu1 %v4312_v22, %s3546_s24 }
 0x57c   : > { %v1574_v20 = vpop.permute.xlu1 %1573 }
 0x57d   : > { %v4322_v50 = vadd.f32 %v1574_v20, %v4082_v57  ;;  %1601 = vrot.lane.b32.xlu0 %v4317_v55, %s3546_s24 }
 0x57e   : > { %v1576_v3 = vpop.permute.xlu0 %1575 }
 0x57f   : > { %1603 = vrot.lane.b32.xlu1 %v4322_v50, %s3546_s24  ;;  %v4334_v54 = vadd.f32 %v1576_v3, %v4087_v60 }
 0x580   : > { %v1391_v47 = vpop.permute.xlu1 %1390 }
 0x581   : > { %v4329_v52 = vadd.f32 %v1391_v47, %v4092_v2 }
 0x583   : > { %1420 = vrot.lane.b32.xlu0 %v4329_v52, %s3546_s24 }
 0x584   : > { %v1393_v56 = vpop.permute.xlu1 %1392 }
 0x585   : > { %v4337_v57 = vadd.f32 %v1393_v56, %v4099_v6 }
 0x586   : > { %v1395_v5 = vpop.permute.xlu0 %1394 }
 0x587   : > { %1422 = vrot.lane.b32.xlu1 %v4337_v57, %s3546_s24  ;;  %1605 = vrot.lane.b32.xlu0 %v4334_v54, %s3546_s24  ;;  %v4344_v7 = vadd.f32 %v1395_v5, %v4102_v9 }
 0x588   : > { %v1578_v2 = vpop.permute.xlu1 %1577 }
 0x589   : > { %v4347_v8 = vadd.f32 %v1578_v2, %v4107_v13 }
 0x58a   : > { %v1580_v27 = vpop.permute.xlu0 %1579 }
 0x58b   : > { %1607 = vrot.lane.b32.xlu1 %v4347_v8, %s3546_s24  ;;  %1424 = vrot.lane.b32.xlu0 %v4344_v7, %s3546_s24  ;;  %v4354_v6 = vadd.f32 %v1580_v27, %v4112_v16 }
 0x58c   : > { %v1397_v60 = vpop.permute.xlu1 %1396 }
 0x58d   : > { %v4357_v11 = vadd.f32 %v1397_v60, %v4117_v37 }
 0x58e   : > { %v1763_v21 = vpop.permute.xlu0 %1762 }
 0x58f   : > { %1426 = vrot.lane.b32.xlu1 %v4357_v11, %s3546_s24  ;;  %1609 = vrot.lane.b32.xlu0 %v4354_v6, %s3546_s24  ;;  %v4364_v13 = vadd.f32 %v1763_v21, %v4122_v18 }
 0x590   : > { %v1582_v9 = vpop.permute.xlu1 %1581 }
 0x591   : > { %v4367_v29 = vadd.f32 %v1582_v9, %v4127_v38 }
 0x592   : > { %v1956_v42 = vpop.permute.xlu0 %1955 }
 0x593   : > { %1611 = vrot.lane.b32.xlu1 %v4367_v29, %s3546_s24  ;;  %1792 = vrot.lane.b32.xlu0 %v4364_v13, %s3546_s24  ;;  %v4374_v37 = vadd.f32 %v1956_v42, %v4132_v26 }
 0x594   : > { %v1954_v16 = vpop.permute.xlu1 %1953 }
 0x595   : > { %v4377_v43 = vadd.f32 %v1954_v16, %v4137_v28 }
 0x596   : > { %v1767_v20 = vpop.permute.xlu0 %1766 }
 0x597   : > { %1983 = vrot.lane.b32.xlu1 %v4377_v43, %s3546_s24  ;;  %1985 = vrot.lane.b32.xlu0 %v4374_v37, %s3546_s24  ;;  %v4384_v38 = vadd.f32 %v1767_v20, %v4142_v31 }
 0x598   : > { %v1765_v18 = vpop.permute.xlu1 %1764 }
 0x599   : > { %v4387_v47 = vadd.f32 %v1765_v18, %v4147_v41 }
 0x59a   : > { %v1960_v3 = vpop.permute.xlu0 %1959 }
 0x59b   : > { %1794 = vrot.lane.b32.xlu1 %v4387_v47, %s3546_s24  ;;  %1796 = vrot.lane.b32.xlu0 %v4384_v38, %s3546_s24  ;;  %v4394_v28 = vadd.f32 %v1960_v3, %v4152_v44 }
 0x59c   : > { %v1958_v26 = vpop.permute.xlu1 %1957 }
 0x59d   : > { %v4397_v56 = vadd.f32 %v1958_v26, %v4157_v45 }
 0x59e   : > { %v1771_v5 = vpop.permute.xlu0 %1770 }
 0x59f   : > { %1987 = vrot.lane.b32.xlu1 %v4397_v56, %s3546_s24  ;;  %1989 = vrot.lane.b32.xlu0 %v4394_v28, %s3546_s24  ;;  %v4404_v41 = vadd.f32 %v1771_v5, %v4162_v49 }
 0x5a0   : > { %v1769_v31 = vpop.permute.xlu1 %1768 }
 0x5a1   : > { %v4407_v2 = vadd.f32 %v1769_v31, %v4167_v58 }
 0x5a2   : > { %v1964_v27 = vpop.permute.xlu0 %1963 }
 0x5a3   : > { %1798 = vrot.lane.b32.xlu1 %v4407_v2, %s3546_s24  ;;  %1800 = vrot.lane.b32.xlu0 %v4404_v41, %s3546_s24  ;;  %v4414_v45 = vadd.f32 %v1964_v27, %v4172_v62 }
 0x5a4   : > { %v1962_v44 = vpop.permute.xlu1 %1961 }
 0x5a5   : > { %v4417_v60 = vadd.f32 %v1962_v44, %v4177_v63 }
 0x5a7   : > { %1991 = vrot.lane.b32.xlu1 %v4417_v60, %s3546_s24  ;;  %1993 = vrot.lane.b32.xlu0 %v4414_v45, %s3546_s24 }
 0x5a8   : > { %v1773_v49 = vpop.permute.xlu1 %1772  ;;  %v2147_v58 = vpop.permute.xlu0 %2146 }
 0x5a9   : > { %v4424_v21 = vadd.f32 %v1773_v49, %v4184_v32  ;;  %v4427_v9 = vadd.f32 %v2147_v58, %v4187_v10 }
 0x5ab   : > { %1802 = vrot.lane.b32.xlu1 %v4424_v21, %s3546_s24  ;;  %2176 = vrot.lane.b32.xlu0 %v4427_v9, %s3546_s24 }
 0x5ac   : > { %v2145_v62 = vpop.permute.xlu1 %2144  ;;  %v2338_v63 = vpop.permute.xlu0 %2337 }
 0x5ad   : > { %v4434_v42 = vadd.f32 %v2145_v62, %v4194_v15  ;;  %v4437_v16 = vadd.f32 %v2338_v63, %v4197_v17 }
 0x5af   : > { %2174 = vrot.lane.b32.xlu1 %v4434_v42, %s3546_s24  ;;  %2367 = vrot.lane.b32.xlu0 %v4437_v16, %s3546_s24 }
 0x5b0   : > { %v2336_v32 = vpop.permute.xlu1 %2335  ;;  %v2151_v10 = vpop.permute.xlu0 %2150 }
 0x5b1   : > { %v4444_v20 = vadd.f32 %v2336_v32, %v4204_v25  ;;  %v4447_v18 = vadd.f32 %v2151_v10, %v4207_v30 }
 0x5b3   : > { %2365 = vrot.lane.b32.xlu1 %v4444_v20, %s3546_s24  ;;  %2180 = vrot.lane.b32.xlu0 %v4447_v18, %s3546_s24 }
 0x5b4   : > { %v2149_v15 = vpop.permute.xlu1 %2148  ;;  %v2342_v17 = vpop.permute.xlu0 %2341 }
 0x5b5   : > { %v4454_v3 = vadd.f32 %v2149_v15, %v4214_v34  ;;  %v4457_v26 = vadd.f32 %v2342_v17, %v4217_v35 }
 0x5b7   : > { %2178 = vrot.lane.b32.xlu1 %v4454_v3, %s3546_s24  ;;  %2371 = vrot.lane.b32.xlu0 %v4457_v26, %s3546_s24 }
 0x5b8   : > { %v2340_v25 = vpop.permute.xlu1 %2339  ;;  %v2155_v30 = vpop.permute.xlu0 %2154 }
 0x5b9   : > { %v4464_v5 = vadd.f32 %v2340_v25, %v4224_v51  ;;  %v4467_v31 = vadd.f32 %v2155_v30, %v4227_v1 }
 0x5bb   : > { %2369 = vrot.lane.b32.xlu1 %v4464_v5, %s3546_s24  ;;  %2184 = vrot.lane.b32.xlu0 %v4467_v31, %s3546_s24 }
 0x5bc   : > { %v2153_v34 = vpop.permute.xlu1 %2152  ;;  %v2346_v35 = vpop.permute.xlu0 %2345 }
 0x5bd   : > { %v4474_v27 = vadd.f32 %v2153_v34, %v4234_v61  ;;  %v4477_v44 = vadd.f32 %v2346_v35, %v4237_v0 }
 0x5bf   : > { %2182 = vrot.lane.b32.xlu1 %v4474_v27, %s3546_s24  ;;  %2375 = vrot.lane.b32.xlu0 %v4477_v44, %s3546_s24 }
 0x5c0   : > { %v2344_v51 = vpop.permute.xlu1 %2343  ;;  %v2529_v1 = vpop.permute.xlu0 %2528 }
 0x5c1   : > { %v4484_v49 = vadd.f32 %v2344_v51, %v4244_v14  ;;  %v4487_v58 = vadd.f32 %v2529_v1, %v4247_v36 }
 0x5c3   : > { %2373 = vrot.lane.b32.xlu1 %v4484_v49, %s3546_s24  ;;  %2558 = vrot.lane.b32.xlu0 %v4487_v58, %s3546_s24 }
 0x5c4   : > { %v2527_v61 = vpop.permute.xlu1 %2526  ;;  %v2720_v0 = vpop.permute.xlu0 %2719 }
 0x5c5   : > { %v4494_v62 = vadd.f32 %v2527_v61, %v4254_v23  ;;  %v4497_v63 = vadd.f32 %v2720_v0, %v4257_v39 }
 0x5c7   : > { %2556 = vrot.lane.b32.xlu1 %v4494_v62, %s3546_s24  ;;  %2749 = vrot.lane.b32.xlu0 %v4497_v63, %s3546_s24 }
 0x5c8   : > { %v2718_v14 = vpop.permute.xlu1 %2717  ;;  %v2533_v36 = vpop.permute.xlu0 %2532 }
 0x5c9   : > { %v4504_v32 = vadd.f32 %v2718_v14, %v4264_v46  ;;  %v4507_v10 = vadd.f32 %v2533_v36, %v4267_v48 }
 0x5cb   : > { %2747 = vrot.lane.b32.xlu1 %v4504_v32, %s3546_s24  ;;  %2562 = vrot.lane.b32.xlu0 %v4507_v10, %s3546_s24 }
 0x5cc   : > { %v2531_v23 = vpop.permute.xlu1 %2530  ;;  %v2724_v39 = vpop.permute.xlu0 %2723 }
 0x5cd   : > { %v4514_v15 = vadd.f32 %v2531_v23, %v4274_v53  ;;  %v4517_v17 = vadd.f32 %v2724_v39, %v4277_v59 }
 0x5cf   : > { %2560 = vrot.lane.b32.xlu1 %v4514_v15, %s3546_s24  ;;  %2753 = vrot.lane.b32.xlu0 %v4517_v17, %s3546_s24 }
 0x5d0   : > { %v2722_v46 = vpop.permute.xlu1 %2721  ;;  %v2537_v48 = vpop.permute.xlu0 %2536 }
 0x5d1   : > { %v4524_v25 = vadd.f32 %v2722_v46, %v4284_v12  ;;  %v4527_v30 = vadd.f32 %v2537_v48, %v4287_v19 }
 0x5d3   : > { %2751 = vrot.lane.b32.xlu1 %v4524_v25, %s3546_s24  ;;  %2566 = vrot.lane.b32.xlu0 %v4527_v30, %s3546_s24 }
 0x5d4   : > { %v2535_v53 = vpop.permute.xlu1 %2534  ;;  %v2728_v59 = vpop.permute.xlu0 %2727 }
 0x5d5   : > { %v4534_v34 = vadd.f32 %v2535_v53, %v4294_v24  ;;  %v4537_v35 = vadd.f32 %v2728_v59, %v4297_v33 }
 0x5d7   : > { %2564 = vrot.lane.b32.xlu1 %v4534_v34, %s3546_s24  ;;  %2757 = vrot.lane.b32.xlu0 %v4537_v35, %s3546_s24 }
 0x5d8   : > { %v2726_v12 = vpop.permute.xlu1 %2725 }
 0x5d9   : > { %v4544_v19 = vadd.f32 %v2726_v12, %v4304_v4 }
 0x5db   : > { %2755 = vrot.lane.b32.xlu1 %v4544_v19, %s3546_s24 }
 0x5eb   : > { %v1417_v51 = vpop.permute.xlu0 %1416 }
 0x5ec   : > { %v4549_v24 = vadd.f32 %v1417_v51, %v4309_v40 }
 0x5ed   : > { %v1419_v1 = vpop.permute.xlu1 %1418 }
 0x5ee   : > { %v4552_v33 = vadd.f32 %v1419_v1, %v4312_v22  ;;  %1446 = vrot.lane.b32.xlu0 %v4549_v24, %s3547_s26 }
 0x5ef   : > { %v1602_v61 = vpop.permute.xlu0 %1601 }
 0x5f0   : > { %v4557_v0 = vadd.f32 %v1602_v61, %v4317_v55  ;;  %1448 = vrot.lane.b32.xlu1 %v4552_v33, %s3547_s26 }
 0x5f1   : > { %v1604_v4 = vpop.permute.xlu1 %1603 }
 0x5f2   : > { %v4562_v14 = vadd.f32 %v1604_v4, %v4322_v50  ;;  %1631 = vrot.lane.b32.xlu0 %v4557_v0, %s3547_s26 }
 0x5f4   : > { %1633 = vrot.lane.b32.xlu1 %v4562_v14, %s3547_s26 }
 0x5f5   : > { %v1421_v40 = vpop.permute.xlu0 %1420 }
 0x5f6   : > { %v4569_v22 = vadd.f32 %v1421_v40, %v4329_v52 }
 0x5f8   : > { %1450 = vrot.lane.b32.xlu0 %v4569_v22, %s3547_s26 }
 0x5f9   : > { %v1423_v55 = vpop.permute.xlu1 %1422  ;;  %v1606_v36 = vpop.permute.xlu0 %1605 }
 0x5fa   : > { %v4574_v23 = vadd.f32 %v1423_v55, %v4337_v57  ;;  %v4577_v50 = vadd.f32 %v1606_v36, %v4334_v54 }
 0x5fc   : > { %1452 = vrot.lane.b32.xlu1 %v4574_v23, %s3547_s26  ;;  %1635 = vrot.lane.b32.xlu0 %v4577_v50, %s3547_s26 }
 0x5fd   : > { %v1608_v39 = vpop.permute.xlu1 %1607  ;;  %v1425_v52 = vpop.permute.xlu0 %1424 }
 0x5fe   : > { %v4584_v46 = vadd.f32 %v1608_v39, %v4347_v8  ;;  %v4587_v48 = vadd.f32 %v1425_v52, %v4344_v7 }
 0x600   : > { %1637 = vrot.lane.b32.xlu1 %v4584_v46, %s3547_s26  ;;  %1454 = vrot.lane.b32.xlu0 %v4587_v48, %s3547_s26 }
 0x601   : > { %v1427_v54 = vpop.permute.xlu1 %1426  ;;  %v1610_v57 = vpop.permute.xlu0 %1609 }
 0x602   : > { %v4594_v53 = vadd.f32 %v1427_v54, %v4357_v11  ;;  %v4597_v59 = vadd.f32 %v1610_v57, %v4354_v6 }
 0x604   : > { %4929 = vst [vmem:[#allocation2_spill] sm:$0xff] %v4594_v53  ;;  %1456 = vrot.lane.b32.xlu1 %v4594_v53, %s3547_s26  ;;  %1639 = vrot.lane.b32.xlu0 %v4597_v59, %s3547_s26 }
 0x605   : > { %v1612_v7 = vpop.permute.xlu1 %1611  ;;  %v1793_v8 = vpop.permute.xlu0 %1792 }
 0x606   : > { %v4604_v12 = vadd.f32 %v1612_v7, %v4367_v29  ;;  %v4607_v51 = vadd.f32 %v1793_v8, %v4364_v13 }
 0x608   : > { %4930 = vst [vmem:[#allocation3_spill] sm:$0xff] %v4604_v12  ;;  %1641 = vrot.lane.b32.xlu1 %v4604_v12, %s3547_s26  ;;  %1822 = vrot.lane.b32.xlu0 %v4607_v51, %s3547_s26 }
 0x609   : > { %v1984_v6 = vpop.permute.xlu1 %1983  ;;  %v1986_v11 = vpop.permute.xlu0 %1985 }
 0x60a   : > { %v4614_v1 = vadd.f32 %v1984_v6, %v4377_v43  ;;  %v4629_v55 = vadd.f32 %v1986_v11, %v4374_v37 }
 0x60c   : > { %2013 = vrot.lane.b32.xlu0 %v4614_v1, %s3547_s26 }
 0x60d   : > { %v1795_v61 = vpop.permute.xlu1 %1794  ;;  %v1797_v29 = vpop.permute.xlu0 %1796 }
 0x60e   : > { %v4619_v4 = vadd.f32 %v1795_v61, %v4387_v47  ;;  %v4622_v13 = vadd.f32 %v1797_v29, %v4384_v38 }
 0x610   : > { %1824 = vrot.lane.b32.xlu1 %v4619_v4, %s3547_s26  ;;  %1826 = vrot.lane.b32.xlu0 %v4622_v13, %s3547_s26 }
 0x611   : > { %v1988_v40 = vpop.permute.xlu1 %1987  ;;  %v1990_v43 = vpop.permute.xlu0 %1989 }
 0x612   : > { %v4632_v36 = vadd.f32 %v1988_v40, %v4397_v56  ;;  %v4649_v54 = vadd.f32 %v1990_v43, %v4394_v28 }
 0x614   : > { %2015 = vrot.lane.b32.xlu1 %v4629_v55, %s3547_s26  ;;  %2017 = vrot.lane.b32.xlu0 %v4632_v36, %s3547_s26 }
 0x615   : > { %v1799_v38 = vpop.permute.xlu1 %1798  ;;  %v1801_v47 = vpop.permute.xlu0 %1800 }
 0x616   : > { %v4639_v39 = vadd.f32 %v1799_v38, %v4407_v2  ;;  %v4642_v52 = vadd.f32 %v1801_v47, %v4404_v41 }
 0x618   : > { %1828 = vrot.lane.b32.xlu1 %v4639_v39, %s3547_s26  ;;  %1830 = vrot.lane.b32.xlu0 %v4642_v52, %s3547_s26 }
 0x619   : > { %v1992_v37 = vpop.permute.xlu1 %1991  ;;  %v1994_v56 = vpop.permute.xlu0 %1993 }
 0x61a   : > { %v4652_v57 = vadd.f32 %v1992_v37, %v4417_v60  ;;  %v4664_v6 = vadd.f32 %v1994_v56, %v4414_v45 }
 0x61c   : > { %4931 = vst [vmem:[#allocation4_spill] sm:$0xff] %v4652_v57  ;;  %2019 = vrot.lane.b32.xlu1 %v4649_v54, %s3547_s26  ;;  %2021 = vrot.lane.b32.xlu0 %v4652_v57, %s3547_s26  ;;  %4933 = vst [vmem:[#allocation6_spill] sm:$0xff] %v4664_v6 }
 0x61d   : > { %v1803_v41 = vpop.permute.xlu1 %1802  ;;  %v2177_v2 = vpop.permute.xlu0 %2176 }
 0x61e   : > { %v4659_v7 = vadd.f32 %v1803_v41, %v4424_v21  ;;  %v4674_v61 = vadd.f32 %v2177_v2, %v4427_v9 }
 0x620   : > { %4932 = vst [vmem:[#allocation5_spill] sm:$0xff] %v4659_v7  ;;  %1832 = vrot.lane.b32.xlu1 %v4659_v7, %s3547_s26 }
 0x621   : > { %v2175_v8 = vpop.permute.xlu1 %2174  ;;  %v2368_v28 = vpop.permute.xlu0 %2367 }
 0x622   : > { %v4667_v60 = vadd.f32 %v2175_v8, %v4434_v42  ;;  %v4684_v40 = vadd.f32 %v2368_v28, %v4437_v16 }
 0x624   : > { %2204 = vrot.lane.b32.xlu0 %v4667_v60, %s3547_s26  ;;  %2023 = vrot.lane.b32.xlu1 %v4664_v6, %s3547_s26 }
 0x625   : > { %v2366_v11 = vpop.permute.xlu1 %2365  ;;  %v2181_v21 = vpop.permute.xlu0 %2180 }
 0x626   : > { %v4677_v29 = vadd.f32 %v2366_v11, %v4444_v20  ;;  %v4694_v38 = vadd.f32 %v2181_v21, %v4447_v18 }
 0x628   : > { %2395 = vrot.lane.b32.xlu0 %v4677_v29, %s3547_s26  ;;  %2206 = vrot.lane.b32.xlu1 %v4674_v61, %s3547_s26  ;;  %4934 = vst [vmem:[#allocation7_spill] sm:$0xff] %v4694_v38 }
 0x629   : > { %v2179_v45 = vpop.permute.xlu1 %2178  ;;  %v2372_v42 = vpop.permute.xlu0 %2371 }
 0x62a   : > { %v4687_v43 = vadd.f32 %v2179_v45, %v4454_v3  ;;  %v4704_v37 = vadd.f32 %v2372_v42, %v4457_v26 }
 0x62c   : > { %2208 = vrot.lane.b32.xlu0 %v4687_v43, %s3547_s26  ;;  %2397 = vrot.lane.b32.xlu1 %v4684_v40, %s3547_s26  ;;  %4935 = vst [vmem:[#allocation8_spill] sm:$0xff] %v4704_v37 }
 0x62d   : > { %v2370_v9 = vpop.permute.xlu1 %2369  ;;  %v2185_v20 = vpop.permute.xlu0 %2184 }
 0x62e   : > { %v4697_v47 = vadd.f32 %v2370_v9, %v4464_v5  ;;  %v4714_v41 = vadd.f32 %v2185_v20, %v4467_v31 }
 0x630   : > { %2399 = vrot.lane.b32.xlu0 %v4697_v47, %s3547_s26  ;;  %2210 = vrot.lane.b32.xlu1 %v4694_v38, %s3547_s26  ;;  %4937 = vst [vmem:[#allocation10_spill] sm:$0xff] %v4714_v41 }
 0x631   : > { %v2183_v16 = vpop.permute.xlu1 %2182  ;;  %v2376_v3 = vpop.permute.xlu0 %2375 }
 0x632   : > { %v4707_v56 = vadd.f32 %v2183_v16, %v4474_v27  ;;  %v4724_v8 = vadd.f32 %v2376_v3, %v4477_v44 }
 0x634   : > { %4936 = vst [vmem:[#allocation9_spill] sm:$0xff] %v4707_v56  ;;  %2212 = vrot.lane.b32.xlu0 %v4707_v56, %s3547_s26  ;;  %2401 = vrot.lane.b32.xlu1 %v4704_v37, %s3547_s26  ;;  %4939 = vst [vmem:[#allocation12_spill] sm:$0xff] %v4724_v8 }
 0x635   : > { %v2374_v18 = vpop.permute.xlu1 %2373  ;;  %v2559_v5 = vpop.permute.xlu0 %2558 }
 0x636   : > { %v4717_v2 = vadd.f32 %v2374_v18, %v4484_v49  ;;  %v4734_v11 = vadd.f32 %v2559_v5, %v4487_v58 }
 0x638   : > { %4938 = vst [vmem:[#allocation11_spill] sm:$0xff] %v4717_v2  ;;  %2403 = vrot.lane.b32.xlu0 %v4717_v2, %s3547_s26  ;;  %2214 = vrot.lane.b32.xlu1 %v4714_v41, %s3547_s26 }
 0x639   : > { %v2557_v26 = vpop.permute.xlu1 %2556  ;;  %v2750_v27 = vpop.permute.xlu0 %2749 }
 0x63a   : > { %v4727_v28 = vadd.f32 %v2557_v26, %v4494_v62  ;;  %v4744_v62 = vadd.f32 %v2750_v27, %v4497_v63 }
 0x63c   : > { %2586 = vrot.lane.b32.xlu0 %v4727_v28, %s3547_s26  ;;  %2405 = vrot.lane.b32.xlu1 %v4724_v8, %s3547_s26  ;;  %4940 = vst [vmem:[#allocation13_spill] sm:$0xff] %v4744_v62 }
 0x63d   : > { %v2748_v31 = vpop.permute.xlu1 %2747  ;;  %v2563_v49 = vpop.permute.xlu0 %2562 }
 0x63e   : > { %v4737_v21 = vadd.f32 %v2748_v31, %v4504_v32  ;;  %v4754_v32 = vadd.f32 %v2563_v49, %v4507_v10 }
 0x640   : > { %2777 = vrot.lane.b32.xlu0 %v4737_v21, %s3547_s26  ;;  %2588 = vrot.lane.b32.xlu1 %v4734_v11, %s3547_s26  ;;  %4942 = vst [vmem:[#allocation15_spill] sm:$0xff] %v4754_v32 }
 0x641   : > { %v2561_v44 = vpop.permute.xlu1 %2560  ;;  %v2754_v42 = vpop.permute.xlu0 %2753 }
 0x642   : > { %v4747_v45 = vadd.f32 %v2561_v44, %v4514_v15  ;;  %v4764_v20 = vadd.f32 %v2754_v42, %v4517_v17 }
 0x644   : > { %4941 = vst [vmem:[#allocation14_spill] sm:$0xff] %v4747_v45  ;;  %2590 = vrot.lane.b32.xlu0 %v4747_v45, %s3547_s26  ;;  %2779 = vrot.lane.b32.xlu1 %v4744_v62, %s3547_s26  ;;  %4944 = vst [vmem:[#allocation17_spill] sm:$0xff] %v4764_v20 }
 0x645   : > { %v2752_v58 = vpop.permute.xlu1 %2751  ;;  %v2567_v63 = vpop.permute.xlu0 %2566 }
 0x646   : > { %v4757_v9 = vadd.f32 %v2752_v58, %v4524_v25  ;;  %v4774_v25 = vadd.f32 %v2567_v63, %v4527_v30 }
 0x648   : > { %4943 = vst [vmem:[#allocation16_spill] sm:$0xff] %v4757_v9  ;;  %2781 = vrot.lane.b32.xlu0 %v4757_v9, %s3547_s26  ;;  %2592 = vrot.lane.b32.xlu1 %v4754_v32, %s3547_s26  ;;  %4946 = vst [vmem:[#allocation19_spill] sm:$0xff] %v4774_v25 }
 0x649   : > { %v2565_v15 = vpop.permute.xlu1 %2564  ;;  %v2758_v18 = vpop.permute.xlu0 %2757 }
 0x64a   : > { %v4767_v16 = vadd.f32 %v2565_v15, %v4534_v34  ;;  %v4784_v17 = vadd.f32 %v2758_v18, %v4537_v35 }
 0x64c   : > { %4945 = vst [vmem:[#allocation18_spill] sm:$0xff] %v4767_v16  ;;  %2594 = vrot.lane.b32.xlu0 %v4767_v16, %s3547_s26  ;;  %2783 = vrot.lane.b32.xlu1 %v4764_v20, %s3547_s26  ;;  %4948 = vst [vmem:[#allocation21_spill] sm:$0xff] %v4784_v17 }
 0x64d   : > { %v2756_v10 = vpop.permute.xlu1 %2755 }
 0x64e   : > { %v4777_v3 = vadd.f32 %v2756_v10, %v4544_v19 }
 0x650   : > { %4947 = vst [vmem:[#allocation20_spill] sm:$0xff] %v4777_v3  ;;  %2785 = vrot.lane.b32.xlu0 %v4777_v3, %s3547_s26  ;;  %2596 = vrot.lane.b32.xlu1 %v4774_v25, %s3547_s26 }
 0x654   : > { %2787 = vrot.lane.b32.xlu1 %v4784_v17, %s3547_s26 }
 0x660   : > { %v1447_v34 = vpop.permute.xlu0 %1446 }
 0x661   : > { %v1464_v12 = vadd.f32 %v1447_v34, %v4549_v24 }
 0x662   : > { %v1449_v5 = vpop.permute.xlu1 %1448 }
 0x664   : > { %v1632_v30 = vpop.permute.xlu0 %1631 }
 0x665   : > { %v1649_v37 = vadd.f32 %v1632_v30, %v4557_v0 }
 0x666   : > { %v1634_v26 = vpop.permute.xlu1 %1633 }
 0x66a   : > { %v1451_v27 = vpop.permute.xlu0 %1450 }
 0x66e   : > { %v1453_v19 = vpop.permute.xlu1 %1452  ;;  %v1636_v31 = vpop.permute.xlu0 %1635 }
 0x66f   : > { %v1651_v24 = vadd.f32 %v1636_v31, %v4577_v50  ;;  %v4957_v31 = vld [vmem:[#allocation7_spill] sm:$0xff] }
 0x672   : > { %v1638_v49 = vpop.permute.xlu1 %1637  ;;  %v4788_v44 = vpop.permute.xlu0 %1454 }
 0x676   : > { %v4790_v42 = vpop.permute.xlu0 %1639  ;;  %v4792_v58 = vpop.permute.xlu1 %1456 }
 0x677   : > { %4949 = vst [vmem:[#allocation22_spill] sm:$0xff] %v4792_v58 }
 0x67a   : > { %v1823_v63 = vpop.permute.xlu0 %1822  ;;  %v4794_v35 = vpop.permute.xlu1 %1641 }
 0x67b   : > { %4950 = vst [vmem:[#allocation23_spill] sm:$0xff] %v4794_v35 }
 0x67e   : > { %v2014_v15 = vpop.permute.xlu0 %2013 }
 0x67f   : > { %v2031_v45 = vadd.f32 %v2014_v15, %v4614_v1  ;;  %v1466_v1 = vadd.f32 %v1451_v27, %v4569_v22  ;;  %v4962_v15 = vld [vmem:[#allocation4_spill] sm:$0xff] }
 0x681   : > { %v1657_v50 = vmax.f32 %v1466_v1, %v1651_v24  ;;  %v4967_v1 = vld [vmem:[#allocation5_spill] sm:$0xff] }
 0x682   : > { %v1825_v10 = vpop.permute.xlu1 %1824  ;;  %v1827_v18 = vpop.permute.xlu0 %1826 }
 0x683   : > { %v1841_v30 = vadd.f32 %v1825_v10, %v4619_v4 }
 0x686   : > { %v2016_v17 = vpop.permute.xlu1 %2015  ;;  %v2018_v3 = vpop.permute.xlu0 %2017 }
 0x68a   : > { %v1829_v25 = vpop.permute.xlu1 %1828  ;;  %v4796_v8 = vpop.permute.xlu0 %1830 }
 0x68b   : > { %4951 = vst [vmem:[#allocation24_spill] sm:$0xff] %v4796_v8  ;;  %v1465_v8 = vadd.f32 %v1449_v5, %v4552_v33  ;;  %v1653_v5 = vadd.f32 %v4790_v42, %v4597_v59 }
 0x68e   : > { %v2020_v16 = vpop.permute.xlu1 %2019  ;;  %v4798_v20 = vpop.permute.xlu0 %2021 }
 0x68f   : > { %4952 = vst [vmem:[#allocation25_spill] sm:$0xff] %v4798_v20  ;;  %v1840_v20 = vadd.f32 %v1823_v63, %v4607_v51  ;;  %v4959_v63 = vld [vmem:[#allocation14_spill] sm:$0xff] }
 0x692   : > { %v4800_v41 = vpop.permute.xlu1 %1832  ;;  %v4956_v59 = vld [vmem:[#allocation24_spill] sm:$0xff] }
 0x693   : > { %4953 = vst [vmem:[#allocation26_spill] sm:$0xff] %v4800_v41  ;;  %v1655_v41 = vmax.f32 %v1464_v12, %v1649_v37  ;;  %v2032_v12 = vadd.f32 %v2016_v17, %v4629_v55  ;;  %v1842_v37 = vadd.f32 %v1827_v18, %v4622_v13  ;;  %v2033_v55 = vadd.f32 %v2018_v3, %v4632_v36 }
 0x694   : > { %v1467_v13 = vadd.f32 %v1453_v19, %v4574_v23  ;;  %v2034_v23 = vadd.f32 %v2020_v16, %v4649_v54  ;;  %v4958_v54 = vld [vmem:[#allocation13_spill] sm:$0xff] }
 0x695   : > { %v1846_v0 = vmax.f32 %v1655_v41, %v1840_v20 }
 0x696   : > { %v4802_v2 = vpop.permute.xlu1 %2023  ;;  %v2205_v6 = vpop.permute.xlu0 %2204  ;;  %v4963_v10 = vld [vmem:[#allocation25_spill] sm:$0xff] }
 0x697   : > { %4954 = vst [vmem:[#allocation27_spill] sm:$0xff] %v4802_v2  ;;  %v1650_v2 = vadd.f32 %v1634_v26, %v4562_v14  ;;  %v2037_v51 = vmax.f32 %v1846_v0, %v2031_v45  ;;  %v1843_v45 = vadd.f32 %v1829_v25, %v4639_v39 }
 0x699   : > { %v1656_v34 = vmax.f32 %v1465_v8, %v1650_v2  ;;  %v1848_v8 = vmax.f32 %v1657_v50, %v1842_v37 }
 0x69a   : > { %v2207_v9 = vpop.permute.xlu1 %2206  ;;  %v2396_v32 = vpop.permute.xlu0 %2395  ;;  %v4968_v37 = vld [vmem:[#allocation26_spill] sm:$0xff] }
 0x69b   : > { %v2413_v14 = vadd.f32 %v2396_v32, %v4677_v29  ;;  %v1847_v41 = vmax.f32 %v1656_v34, %v1841_v30  ;;  %v2223_v4 = vadd.f32 %v2207_v9, %v4674_v61  ;;  %v4964_v30 = vld [vmem:[#allocation8_spill] sm:$0xff]  ;;  %v4965_v34 = vld [vmem:[#allocation2_spill] sm:$0xff] }
 0x69d   : > { %v2038_v2 = vmax.f32 %v1847_v41, %v2032_v12  ;;  %v4969_v41 = vld [vmem:[#allocation9_spill] sm:$0xff] }
 0x69e   : > { %v2398_v56 = vpop.permute.xlu1 %2397  ;;  %v2209_v7 = vpop.permute.xlu0 %2208 }
 0x69f   : > { %v2414_v22 = vadd.f32 %v2398_v56, %v4684_v40  ;;  %v2224_v32 = vadd.f32 %v2209_v7, %v4687_v43  ;;  %v2039_v40 = vmax.f32 %v1848_v8, %v2033_v55  ;;  %v1468_v56 = vadd.f32 %v4788_v44, %v4587_v48  ;;  %v4961_v48 = vld [vmem:[#allocation23_spill] sm:$0xff] }
 0x6a1   : > { %v2230_v25 = vmax.f32 %v2039_v40, %v2224_v32  ;;  %v4974_v32 = vld [vmem:[#allocation27_spill] sm:$0xff] }
 0x6a2   : > { %v2211_v58 = vpop.permute.xlu1 %2210  ;;  %v2400_v53 = vpop.permute.xlu0 %2399 }
 0x6a3   : > { %v2415_v7 = vadd.f32 %v2400_v53, %v4697_v47  ;;  %v1659_v47 = vmax.f32 %v1468_v56, %v1653_v5 }
 0x6a5   : > { %v2421_v0 = vmax.f32 %v2230_v25, %v2415_v7 }
 0x6a6   : > { %v4805_v57 = vpop.permute.xlu1 %2401  ;;  %v4807_v35 = vpop.permute.xlu0 %2212 }
 0x6a7   : > { %4955 = vst [vmem:[#allocation28_spill] sm:$0xff] %v4807_v35  ;;  %v2222_v35 = vadd.f32 %v2205_v6, %v4667_v60  ;;  %v1652_v60 = vadd.f32 %v1638_v49, %v4584_v46  ;;  %v2225_v49 = vadd.f32 %v2211_v58, %v4957_v31  ;;  %v2416_v58 = vadd.f32 %v4805_v57, %v4964_v30 }
 0x6a9   : > { %v2228_v20 = vmax.f32 %v2037_v51, %v2222_v35  ;;  %v1658_v3 = vmax.f32 %v1467_v13, %v1652_v60  ;;  %v4960_v35 = vld [vmem:[#allocation3_spill] sm:$0xff]  ;;  %v4966_v51 = vld [vmem:[#allocation22_spill] sm:$0xff] }
 0x6aa   : > { %v4813_v62 = vpop.permute.xlu1 %2214  ;;  %v4815_v38 = vpop.permute.xlu0 %2403  ;;  %v1654_v44 = vadd.f32 %v4961_v48, %v4960_v35  ;;  %v1469_v12 = vadd.f32 %v4966_v51, %v4965_v34 }
 0x6ab   : > { %v2419_v29 = vmax.f32 %v2228_v20, %v2413_v14 }
 0x6ac   : > { %v1660_v13 = vmax.f32 %v1469_v12, %v1654_v44 }
 0x6ae   : > { %v4825_v26 = vpop.permute.xlu1 %2405  ;;  %v2587_v33 = vpop.permute.xlu0 %2586  ;;  %v4970_v20 = vld [vmem:[#allocation28_spill] sm:$0xff] }
 0x6af   : > { %v2604_v6 = vadd.f32 %v2587_v33, %v4727_v28  ;;  %v2229_v28 = vmax.f32 %v2038_v2, %v2223_v4  ;;  %v1845_v33 = vadd.f32 %v4968_v37, %v4967_v1  ;;  %v2226_v4 = vadd.f32 %v4970_v20, %v4969_v41  ;;  %v4971_v2 = vld [vmem:[#allocation15_spill] sm:$0xff] }
 0x6b1   : > { %v2610_v17 = vmax.f32 %v2419_v29, %v2604_v6  ;;  %v2420_v39 = vmax.f32 %v2229_v28, %v2414_v22  ;;  %v4972_v29 = vld [vmem:[#allocation16_spill] sm:$0xff]  ;;  %v4975_v28 = vld [vmem:[#allocation11_spill] sm:$0xff] }
 0x6b2   : > { %v2589_v61 = vpop.permute.xlu1 %2588  ;;  %v2778_v9 = vpop.permute.xlu0 %2777 }
 0x6b3   : > { %v2605_v46 = vadd.f32 %v2589_v61, %v4734_v11  ;;  %v2795_v36 = vadd.f32 %v2778_v9, %v4737_v21  ;;  %v1849_v11 = vmax.f32 %v1658_v3, %v1843_v45  ;;  %v1844_v21 = vadd.f32 %v4956_v59, %v4642_v52  ;;  %v4973_v45 = vld [vmem:[#allocation6_spill] sm:$0xff] }
 0x6b4   : > { %v2035_v52 = vadd.f32 %v4963_v10, %v4962_v15  ;;  %v2036_v61 = vadd.f32 %v4974_v32, %v4973_v45  ;;  %v4982_v15 = vld [vmem:[#allocation21_spill] sm:$0xff] }
 0x6b5   : > { %v2801_v43 = vmax.f32 %v2610_v17, %v2795_v36  ;;  %v2611_v42 = vmax.f32 %v2420_v39, %v2605_v46  ;;  %v2040_v18 = vmax.f32 %v1849_v11, %v2034_v23  ;;  %v1850_v14 = vmax.f32 %v1659_v47, %v1844_v21  ;;  %v4976_v23 = vld [vmem:[#allocation10_spill] sm:$0xff] }
 0x6b6   : > { %v2780_v27 = vpop.permute.xlu1 %2779  ;;  %v2591_v19 = vpop.permute.xlu0 %2590  ;;  %v2417_v17 = vadd.f32 %v4815_v38, %v4975_v28  ;;  %v1851_v36 = vmax.f32 %v1660_v13, %v1845_v33  ;;  %v2227_v39 = vadd.f32 %v4813_v62, %v4976_v23  ;;  %v4978_v11 = vld [vmem:[#allocation18_spill] sm:$0xff]  ;;  %v4979_v38 = vld [vmem:[#allocation12_spill] sm:$0xff] }
 0x6b7   : > { %2808 = vst.msk [vmem:[%s4844_s30] sm:$0xff] %vm2807_vm6, %v2801_v43  ;;  %v2796_v16 = vadd.f32 %v2780_v27, %v4958_v54  ;;  %v2606_v53 = vadd.f32 %v2591_v19, %v4959_v63  ;;  %v2231_v60 = vmax.f32 %v2040_v18, %v2225_v49  ;;  %v2041_v8 = vmax.f32 %v1850_v14, %v2035_v52  ;;  %v4977_v43 = vld [vmem:[#allocation17_spill] sm:$0xff]  ;;  %v4980_v54 = vld [vmem:[#allocation19_spill] sm:$0xff]  ;;  %v4981_v63 = vld [vmem:[#allocation20_spill] sm:$0xff] }
 0x6b8   : > { %v2042_v21 = vmax.f32 %v1851_v36, %v2036_v61  ;;  %v2418_v27 = vadd.f32 %v4825_v26, %v4979_v38 }
 0x6b9   : > { %v2802_v24 = vmax.f32 %v2611_v42, %v2796_v16  ;;  %v2612_v55 = vmax.f32 %v2421_v0, %v2606_v53  ;;  %v2422_v9 = vmax.f32 %v2231_v60, %v2416_v58  ;;  %v2232_v3 = vmax.f32 %v2041_v8, %v2226_v4 }
 0x6ba   : > { %v2593_v6 = vpop.permute.xlu1 %2592  ;;  %v2782_v50 = vpop.permute.xlu0 %2781  ;;  %v2233_v42 = vmax.f32 %v2042_v21, %v2227_v39 }
 0x6bb   : > { %2809 = vst.msk [vmem:[%s4844_s30 + $0x8] sm:$0xff] %vm2807_vm6, %v2802_v24  ;;  %v2607_v57 = vadd.f32 %v2593_v6, %v4971_v2  ;;  %v2797_v22 = vadd.f32 %v2782_v50, %v4972_v29  ;;  %v2423_v25 = vmax.f32 %v2232_v3, %v2417_v17 }
 0x6bc   : > { %v2424_v47 = vmax.f32 %v2233_v42, %v2418_v27 }
 0x6bd   : > { %v2803_v46 = vmax.f32 %v2612_v55, %v2797_v22  ;;  %v2613_v7 = vmax.f32 %v2422_v9, %v2607_v57 }
 0x6be   : > { %v2784_v5 = vpop.permute.xlu1 %2783  ;;  %v2595_v40 = vpop.permute.xlu0 %2594 }
 0x6bf   : > { %2810 = vst.msk [vmem:[%s4844_s30 + $0x10] sm:$0xff] %vm2807_vm6, %v2803_v46  ;;  %v2798_v56 = vadd.f32 %v2784_v5, %v4977_v43  ;;  %v2608_v59 = vadd.f32 %v2595_v40, %v4978_v11 }
 0x6c1   : > { %v2804_v19 = vmax.f32 %v2613_v7, %v2798_v56  ;;  %v2614_v62 = vmax.f32 %v2423_v25, %v2608_v59 }
 0x6c2   : > { %v2597_v31 = vpop.permute.xlu1 %2596  ;;  %v2786_v49 = vpop.permute.xlu0 %2785 }
 0x6c3   : > { %2811 = vst.msk [vmem:[%s4844_s30 + $0x18] sm:$0xff] %vm2807_vm6, %v2804_v19  ;;  %v2609_v16 = vadd.f32 %v2597_v31, %v4980_v54  ;;  %v2799_v53 = vadd.f32 %v2786_v49, %v4981_v63 }
 0x6c5   : > { %v2805_v35 = vmax.f32 %v2614_v62, %v2799_v53  ;;  %v2615_v44 = vmax.f32 %v2424_v47, %v2609_v16 }
 0x6c6   : > { %v2788_v48 = vpop.permute.xlu1 %2787 }
 0x6c7   : > { %2812 = vst.msk [vmem:[%s4844_s30 + $0x20] sm:$0xff] %vm2807_vm6, %v2805_v35  ;;  %v2800_v26 = vadd.f32 %v2788_v48, %v4982_v15 }
 0x6c9   : > { %v2806_v10 = vmax.f32 %v2615_v44, %v2800_v26 }
 0x6cb   : > { %2813 = vst.msk [vmem:[%s4844_s30 + $0x28] sm:$0xff] %vm2807_vm6, %v2806_v10 }
 0x6cc PF: > { %s21_s17 = sadd.s32 1, %s3541_s17  }
 0x6cd   : > { %p18_p4 = scmp.ge.s32.totalorder %s21_s17, 4  }
 0x6cf   :  { %20 = sbr.rel (!%p18_p4) target bundleno = 1 (0x1), region = 100 }

// kernel: tile.73
= control target key start
LH: loop header
LB: loop body
LE: loop exit
PB: predicated region body
PF: predicated region fallthrough
CT: control target
= control target key end

     0   :  { %s22_s0 = inlined_call_operand.vmem [shape: f32[32], index: 0, kind: input, shape index: {}]   ;;  %s23_s1 = inlined_call_operand.vmem [shape: f32[8,32], index: 1, kind: output, shape index: {}]  }
   0x1   :  { %v4_v0 = vld [vmem:[%s22_s0] ss:$0 sm:$0xff] }
   0x2   :  { %5 = vst [vmem:[%s23_s1] sm:$0xff] %v4_v0 }

// kernel: plain_gcn_forward.3
= control target key start
LH: loop header
LB: loop body
LE: loop exit
PB: predicated region body
PF: predicated region fallthrough
CT: control target
= control target key end

     0   :  { %s3818_s17 = smov 0   ;;  %s5080_s0 = inlined_call_operand.vmem [shape: bf16[96,16], index: 0, kind: input, shape index: {}]   ;;  %s5081_s1 = inlined_call_operand.vmem [shape: bf16[96,128], index: 1, kind: input, shape index: {}]   ;;  %s5082_s2 = inlined_call_operand.vmem [shape: f32[96,8], index: 2, kind: input, shape index: {}]   ;;  %s5083_s3 = inlined_call_operand.vmem [shape: bf16[16,256], index: 3, kind: input, shape index: {}]   ;;  %s5084_s4 = inlined_call_operand.vmem [shape: bf16[128,256], index: 4, kind: input, shape index: {}]   ;;  %s5085_s5 = inlined_call_operand.vmem [shape: f32[8,256], index: 5, kind: input, shape index: {}]   ;;  %s5086_s6 = inlined_call_operand.vmem [shape: bf16[256,64], index: 6, kind: input, shape index: {}]   ;;  %s5087_s7 = inlined_call_operand.vmem [shape: bf16[256,64], index: 7, kind: input, shape index: {}]   ;;  %s5088_s8 = inlined_call_operand.vmem [shape: f32[64,8], index: 8, kind: input, shape index: {}]   ;;  %s5089_s9 = inlined_call_operand.vmem [shape: f32[8,64], index: 9, kind: input, shape index: {}]   ;;  %s5090_s10 = inlined_call_operand.vmem [shape: bf16[512,256], index: 10, kind: input, shape index: {}]   ;;  %s5091_s11 = inlined_call_operand.vmem [shape: f32[96,32], index: 11, kind: output, shape index: {}]  }
   0x1 LB: > { %s3196_s18 = sadd.s32 4294967295, %s3753_s17   ;;  %p3200_p0 = scmp.ge.s32.totalorder %s3753_s17, 1  ;;  %s3753_s17 = sphi %s3818_s17, %s21_s17  }
   0x2   : > { %p360_p1 = scmp.lt.s32.totalorder %s3753_s17, 3 }
   0x4   : > { %p361_p2 = pnand %p3200_p0, %p360_p1 }
   0x6   : > { %364 = sbr.rel (%p361_p2) target bundleno = 1709 (0x6ad), region = 64 }
   0xd   : > { %v3538_v0 = vld [vmem:[%s5084_s4 + $0x4] ss:$8 sps:$4 sm:$0xff]   ;;  %s410_s21 = smul.u32 6, %s3196_s18  ;;  %v3540_v1 = vld [vmem:[%s5084_s4] ss:$8 sps:$4 sm:$0xff]   ;;  %v3755_v2 = vmov 0   ;;  %v726_v42 = vlaneseq }
   0xe   : > { %595 = vmatprep.mubr.bf16.mxu0 %v3755_v2  ;;  %563 = vmatprep.subr.bf16.mxu0 %v3538_v0  ;;  %v3541_v3 = vld [vmem:[%s5084_s4 + $0x14] ss:$8 sps:$4 sm:$0xff]   ;;  %v3543_v4 = vld [vmem:[%s5084_s4 + $0x10] ss:$8 sps:$4 sm:$0xff]   ;;  %v3544_v5 = vld [vmem:[%s5084_s4 + $0x24] ss:$8 sps:$4 sm:$0xff]  }
   0xf   : > { %p411_p3 = scmp.lt.s32.totalorder %s410_s21, 11  ;;  %564 = vmatpush1.bf16.msra.mxu0 %v3540_v1  ;;  %v3546_v6 = vld [vmem:[%s5084_s4 + $0x20] ss:$8 sps:$4 sm:$0xff]   ;;  %v3547_v7 = vld [vmem:[%s5084_s4 + $0x34] ss:$8 sps:$4 sm:$0xff]   ;;  %vm651_vm0 = vcmask 130048  }
  0x10   : > { %565 = vmatprep.subr.bf16.mxu0 %v3541_v3  ;;  %v3549_v8 = vld [vmem:[%s5084_s4 + $0x30] ss:$8 sps:$4 sm:$0xff]   ;;  %v3550_v9 = vld [vmem:[%s5084_s4 + $0x44] ss:$8 sps:$4 sm:$0xff]   ;;  %v3552_v10 = vld [vmem:[%s5084_s4 + $0x40] ss:$8 sps:$4 sm:$0xff]  }
  0x11   : > { %s5168_s21 = smov (!%p411_p3, %s410_s21), 11  ;;  %v3553_v11 = vld [vmem:[%s5084_s4 + $0x54] ss:$8 sps:$4 sm:$0xff]   ;;  %v3555_v12 = vld [vmem:[%s5084_s4 + $0x50] ss:$8 sps:$4 sm:$0xff]   ;;  %v3571_v14 = vld [vmem:[%s5086_s6 + $0x40] sm:$0xff]  }
  0x12   : > { %s3201_s30 = sshll.u32 %s5168_s21, 2  ;;  %v3556_v13 = vld [vmem:[%s5084_s4 + $0x64] ss:$8 sps:$4 sm:$0xff]   ;;  %3374 = vmatprep.subr.bf16.mxu1 %v3571_v14  ;;  %v3575_v18 = vld [vmem:[%s5086_s6 + $0x50] sm:$0xff]   ;;  %v3558_v19 = vld [vmem:[%s5084_s4 + $0x60] ss:$8 sps:$4 sm:$0xff]  }
  0x13   : > { %566 = vmatpush1.bf16.msra.mxu0 %v3543_v4  ;;  %s3854_s19 = scalar_lea.vmem %s5081_s1, %s3201_s30  ;;  %s3865_s27 = scalar_lea.vmem %s5080_s0, %s3201_s30  ;;  %v3572_v15 = vld [vmem:[%s5086_s6] sm:$0xff]   ;;  %v3573_v16 = vld [vmem:[%s5086_s6 + $0x48] sm:$0xff]   ;;  %v3559_v20 = vld [vmem:[%s5084_s4 + $0x74] ss:$8 sps:$4 sm:$0xff]   ;;  %v727_v43 = vshrl.u32 %v726_v42, 7  ;;  %vm1192_vm1 = vcmask 523264  }
  0x14   : > { %567 = vmatprep.subr.bf16.mxu0 %v3544_v5  ;;  %3375 = vmatpush3.bf16.msra.mxu1 %v3572_v15  ;;  %v3574_v17 = vld [vmem:[%s5086_s6 + $0x8] sm:$0xff]   ;;  %v3561_v21 = vld [vmem:[%s5084_s4 + $0x70] ss:$8 sps:$4 sm:$0xff]   ;;  %v3562_v26 = vld [vmem:[%s3854_s19] sm:$0xff]   ;;  %s3203_s15 = sshll.u32 %s5168_s21, 3  ;;  %vm1423_vm2 = vcmask 64512  }
  0x15   : > { %3376 = vmatprep.subr.bf16.mxu1 %v3573_v16  ;;  %v3576_v22 = vld [vmem:[%s5086_s6 + $0x10] sm:$0xff]   ;;  %v3565_v23 = vld [vmem:[%s5083_s3 + $0x4] ss:$8 sps:$4 sm:$0xff]   ;;  %v3577_v24 = vld [vmem:[%s5086_s6 + $0x58] sm:$0xff]   ;;  %v728_v44 = vsub.s32 0, %v727_v43  ;;  %v732_v46 = vsub.s32 1, %v727_v43  ;;  %s426_s30 = scalar_lea.vmem %s5082_s2, %s3203_s15  ;;  %s5026_s26 = scalar_lea.vmem %s5091_s11, %s3203_s15 }
  0x16   : > { %v3578_v25 = vld [vmem:[%s5086_s6 + $0x18] sm:$0xff]   ;;  %v3579_v27 = vld [vmem:[%s5086_s6 + $0x60] sm:$0xff]   ;;  %v3566_v30 = vld [vmem:[%s3854_s19 + $0x8] sm:$0xff]   ;;  %s3757_s23 = smov 96   ;;  %vm3109_vm3 = vcmask 261120  }
  0x17   : > { %568 = vmatpush1.bf16.msra.mxu0 %v3546_v6  ;;  %v3563_v28 = vld [vmem:[%s5083_s3] ss:$8 sps:$4 sm:$0xff]   ;;  %v3567_v31 = vld [vmem:[%s3854_s19 + $0x10] sm:$0xff]   ;;  %v3585_v39 = vld [vmem:[%s5086_s6 + $0x78] sm:$0xff]   ;;  %s3756_s19 = smov 64  }
  0x18   : > { %569 = vmatprep.subr.bf16.mxu0 %v3547_v7  ;;  %3377 = vmatpush3.bf16.msra.mxu1 %v3574_v17  ;;  %v3580_v29 = vld [vmem:[%s5086_s6 + $0x20] sm:$0xff]   ;;  %v3569_v33 = vld [vmem:[%s3865_s27 + $0x8] sm:$0xff]   ;;  %v3570_v34 = vld [vmem:[%s3865_s27 + $0x10] sm:$0xff]  }
  0x19   : > { %3378 = vmatprep.subr.bf16.mxu1 %v3575_v18  ;;  %v3568_v32 = vld [vmem:[%s3865_s27] sm:$0xff]   ;;  %v3581_v35 = vld [vmem:[%s5086_s6 + $0x68] sm:$0xff]   ;;  %v3583_v37 = vld [vmem:[%s5086_s6 + $0x70] sm:$0xff]  }
  0x1a   : > { %v3582_v36 = vld [vmem:[%s5086_s6 + $0x28] sm:$0xff]   ;;  %v3584_v38 = vld [vmem:[%s5086_s6 + $0x30] sm:$0xff]   ;;  %v3586_v40 = vld [vmem:[%s5086_s6 + $0x38] sm:$0xff]  }
  0x1b   : > { %570 = vmatpush1.bf16.msra.mxu0 %v3549_v8  ;;  %v3587_v41 = vld [vmem:[%s5087_s7 + $0x40] sm:$0xff]  }
  0x1c   : > { %571 = vmatprep.subr.bf16.mxu0 %v3550_v9  ;;  %3379 = vmatpush3.bf16.msra.mxu1 %v3576_v22  ;;  %v724_v45 = vld [vmem:[%s5085_s5] ss:$8 sm:$0x3]  ;;  %v3232_v49 = vld [vmem:[%s5085_s5 + $0x1] ss:$8 sm:$0x3] }
  0x1d   : > { %3380 = vmatprep.subr.bf16.mxu1 %v3577_v24  ;;  %v3959_v47 = vrot.slane %v724_v45, %v728_v44  ;;  %v3961_v48 = vrot.slane %v724_v45, %v732_v46  ;;  %v3968_v54 = vrot.slane %v3232_v49, %v732_v46  ;;  %v3970_v57 = vrot.slane %v3232_v49, %v728_v44  ;;  %v3233_v58 = vld [vmem:[%s5085_s5 + $0x2] ss:$8 sm:$0x3] }
  0x1e   : > { %v3978_v1 = vrot.slane %v3233_v58, %v732_v46  ;;  %v3981_v5 = vrot.slane %v3233_v58, %v728_v44 }
  0x1f   : > { %572 = vmatpush1.bf16.msra.mxu0 %v3552_v10 }
  0x20   : > { %573 = vmatprep.subr.bf16.mxu0 %v3553_v11  ;;  %3381 = vmatpush3.bf16.msra.mxu1 %v3578_v25 }
  0x21   : > { %3382 = vmatprep.subr.bf16.mxu1 %v3579_v27 }
  0x23   : > { %574 = vmatpush1.bf16.msra.mxu0 %v3555_v12 }
  0x24   : > { %575 = vmatprep.subr.bf16.mxu0 %v3556_v13  ;;  %3383 = vmatpush3.bf16.msra.mxu1 %v3580_v29 }
  0x25   : > { %3384 = vmatprep.subr.bf16.mxu1 %v3581_v35 }
  0x27   : > { %576 = vmatpush1.bf16.msra.mxu0 %v3558_v19 }
  0x28   : > { %577 = vmatprep.subr.bf16.mxu0 %v3559_v20  ;;  %3385 = vmatpush3.bf16.msra.mxu1 %v3582_v36 }
  0x29   : > { %3386 = vmatprep.subr.bf16.mxu1 %v3583_v37  ;;  %v3591_v37 = vld [vmem:[%s5087_s7 + $0x50] sm:$0xff]  }
  0x2b   : > { %578 = vmatpush1.bf16.msra.mxu0 %v3561_v21 }
  0x2c   : > { %661 = vmatprep.subr.bf16.mxu0 %v3565_v23  ;;  %3387 = vmatpush3.bf16.msra.mxu1 %v3584_v38  ;;  %v3588_v23 = vld [vmem:[%s5087_s7] sm:$0xff]  }
  0x2d   : > { %3388 = vmatprep.subr.bf16.mxu1 %v3585_v39 }
  0x2e   : > { %596 = vmatmul.mubr.bf16.vlgmr.msra.gmra.mrb[0].mxu0 %v3562_v26  ;;  %v3589_v26 = vld [vmem:[%s5087_s7 + $0x48] sm:$0xff]  }
  0x2f   : > { %662 = vmatpush1.bf16.msra.mxu0 %v3563_v28  ;;  %605 = vmatprep.mubr.bf16.mxu0 %v3755_v2 }
  0x30   : > { %3389 = vmatpush3.bf16.msra.mxu1 %v3586_v40 }
  0x31   : > { %3408 = vmatprep.subr.bf16.mxu1 %v3587_v41 }
  0x36   : > { %606 = vmatmul.mubr.bf16.gmra.mrb[4].mxu0 %v3566_v30 }
  0x37   : > { %615 = vmatprep.mubr.bf16.mxu0 %v3755_v2 }
  0x3e   : > { %616 = vmatmul.mubr.bf16.gmra.mrb[8].mxu0 %v3567_v31 }
  0x3f   : > { %693 = vmatprep.mubr.bf16.mxu0 %v3755_v2 }
  0x46   : > { %3229 = vmatmul.mubr.msk.bf16.vlgmr.msra.gmra.mrb[0].mxu0 %vm651_vm0, %v3568_v32 }
  0x47   : > { %703 = vmatprep.mubr.bf16.mxu0 %v3755_v2 }
  0x4e   : > { %3230 = vmatmul.mubr.msk.bf16.gmra.mrb[4].mxu0 %vm651_vm0, %v3569_v33  ;;  %v3590_v33 = vld [vmem:[%s5087_s7 + $0x8] sm:$0xff]  }
  0x4f   : > { %713 = vmatprep.mubr.bf16.mxu0 %v3755_v2 }
  0x56   : > { %3231 = vmatmul.mubr.msk.bf16.gmra.mrb[8].mxu0 %vm651_vm0, %v3570_v34 }
 0x119   : > { %v695_v50 = vpop.f32.mrb[0].mxu0 }
 0x11a   : > { %v736_v51 = vadd.f32 %v3959_v47, %v695_v50  ;;  %v697_v52 = vpop.f32.mrb[1].mxu0 }
 0x11b   : > { %v737_v53 = vadd.f32 %v3961_v48, %v697_v52  ;;  %v699_v55 = vpop.f32.mrb[2].mxu0 }
 0x11c   : > { %v748_v56 = vmax.f32 %v736_v51, 0.0  ;;  %v738_v59 = vadd.f32 %v3959_v47, %v699_v55  ;;  %v701_v60 = vpop.f32.mrb[3].mxu0  ;;  %v3592_v51 = vld [vmem:[%s5087_s7 + $0x10] sm:$0xff]  }
 0x11d   : > { %v749_v61 = vmax.f32 %v737_v53, 0.0  ;;  %v739_v62 = vadd.f32 %v3961_v48, %v701_v60  ;;  %v3594_v60 = vld [vmem:[%s5087_s7 + $0x18] sm:$0xff]  }
 0x11e   : > { %v750_v63 = vmax.f32 %v738_v59, 0.0  ;;  %v773_v4 = vmul.f32 %v3970_v57, %v748_v56 }
 0x11f   : > { %v774_v0 = vmul.f32 %v3968_v54, %v749_v61  ;;  %v751_v3 = vmax.f32 %v739_v62, 0.0  ;;  %v3595_v62 = vld [vmem:[%s5087_s7 + $0x60] sm:$0xff]  }
 0x120   : > { %v775_v6 = vmul.f32 %v3970_v57, %v750_v63  ;;  %v3997_v16 = vadd.f32 %v3981_v5, %v773_v4 }
 0x121   : > { %v776_v7 = vmul.f32 %v3968_v54, %v751_v3  ;;  %v705_v8 = vpop.f32.mrb[4].mxu0  ;;  %v3990_v12 = vadd.f32 %v3978_v1, %v774_v0  ;;  %v3596_v3 = vld [vmem:[%s5087_s7 + $0x20] sm:$0xff]  }
 0x122   : > { %v3986_v9 = vadd.f32 %v3981_v5, %v775_v6  ;;  %v740_v10 = vadd.f32 %v3959_v47, %v705_v8  ;;  %v707_v11 = vpop.f32.mrb[5].mxu0  ;;  %v3599_v6 = vld [vmem:[%s5087_s7 + $0x70] sm:$0xff]   ;;  %v3601_v8 = vld [vmem:[%s5087_s7 + $0x78] sm:$0xff]  }
 0x123   : > { %v3993_v13 = vadd.f32 %v3978_v1, %v776_v7  ;;  %v741_v14 = vadd.f32 %v3961_v48, %v707_v11  ;;  %v709_v15 = vpop.f32.mrb[6].mxu0  ;;  %v3600_v7 = vld [vmem:[%s5087_s7 + $0x30] sm:$0xff]   ;;  %v1229_v11 = vld [vmem:[%s5088_s8] sm:$0xff] }
 0x124   : > { %v752_v17 = vmax.f32 %v740_v10, 0.0  ;;  %v742_v18 = vadd.f32 %v3959_v47, %v709_v15  ;;  %v711_v19 = vpop.f32.mrb[7].mxu0  ;;  %v4008_v25 = vpack.c.bf16 %v3986_v9, %v3997_v16  ;;  %v3602_v10 = vld [vmem:[%s5087_s7 + $0x38] sm:$0xff]  }
 0x125   : > { %v753_v20 = vmax.f32 %v741_v14, 0.0  ;;  %v743_v21 = vadd.f32 %v3961_v48, %v711_v19  ;;  %v811_v22 = vpack.c.bf16 %v3993_v13, %v3990_v12  ;;  %v1230_v14 = vld [vmem:[%s5088_s8 + $0x8] sm:$0xff] }
 0x126   : > { %v754_v24 = vmax.f32 %v742_v18, 0.0  ;;  %v777_v29 = vmul.f32 %v3970_v57, %v752_v17  ;;  %v3499_v15 = vpack.c.bf16 %v1230_v14, %v1229_v11  ;;  %v1231_v11 = vld [vmem:[%s5088_s8 + $0x10] sm:$0xff]  ;;  %v1232_v14 = vld [vmem:[%s5088_s8 + $0x18] sm:$0xff] }
 0x127   : > { %v778_v27 = vmul.f32 %v3968_v54, %v753_v20  ;;  %v755_v28 = vmax.f32 %v743_v21, 0.0  ;;  %976 = vmatprep.mubr.bf16.mxu1 %v811_v22 }
 0x128   : > { %v779_v30 = vmul.f32 %v3970_v57, %v754_v24  ;;  %977 = vmatmul.mubr.bf16.vlgmr.msra.gmra.mrb[0].mxu1 %v4008_v25  ;;  %v4036_v42 = vadd.f32 %v3981_v5, %v777_v29  ;;  %3500 = vmatprep.subr.bf16.mxu0 %v3499_v15 }
 0x129   : > { %v780_v31 = vmul.f32 %v3968_v54, %v755_v28  ;;  %3409 = vmatpush3.bf16.msra.mxu1 %v3588_v23  ;;  %v715_v32 = vpop.f32.mrb[8].mxu0  ;;  %v4029_v38 = vadd.f32 %v3978_v1, %v778_v27  ;;  %3502 = vmatpush3.bf16.msra.mxu0 %v3499_v15  ;;  %v3503_v15 = vpack.c.bf16 %v1232_v14, %v1231_v11  ;;  %v1354_v11 = vld [vmem:[%s426_s30 + $0x20] sm:$0xff] }
 0x12a   : > { %v4022_v34 = vadd.f32 %v3981_v5, %v779_v30  ;;  %v744_v35 = vadd.f32 %v3959_v47, %v715_v32  ;;  %v717_v36 = vpop.f32.mrb[9].mxu0  ;;  %3410 = vmatprep.subr.bf16.mxu1 %v3589_v26 }
 0x12b   : > { %v4032_v39 = vadd.f32 %v3978_v1, %v780_v31  ;;  %v745_v40 = vadd.f32 %v3961_v48, %v717_v36  ;;  %v719_v41 = vpop.f32.mrb[10].mxu0  ;;  %3504 = vmatprep.subr.bf16.mxu0 %v3503_v15 }
 0x12c   : > { %v756_v43 = vmax.f32 %v744_v35, 0.0  ;;  %v746_v44 = vadd.f32 %v3959_v47, %v719_v41  ;;  %v721_v45 = vpop.f32.mrb[11].mxu0  ;;  %v812_v53 = vpack.c.bf16 %v4022_v34, %v4036_v42  ;;  %v3593_v47 = vld [vmem:[%s5087_s7 + $0x58] sm:$0xff]  }
 0x12d   : > { %v757_v46 = vmax.f32 %v745_v40, 0.0  ;;  %v747_v49 = vadd.f32 %v3961_v48, %v721_v45  ;;  %3411 = vmatpush3.bf16.msra.mxu1 %v3590_v33  ;;  %v813_v50 = vpack.c.bf16 %v4032_v39, %v4029_v38  ;;  %3506 = vmatpush3.bf16.msra.mxu0 %v3503_v15  ;;  %v1360_v15 = vsub.f32 0.0, %v1354_v11  ;;  %v3612_v11 = vld [vmem:[%s5090_s10 + $0x50] ss:$8 sps:$4 sm:$0xff]  }
 0x12e   : > { %v758_v52 = vmax.f32 %v746_v44, 0.0  ;;  %3412 = vmatprep.subr.bf16.mxu1 %v3591_v37  ;;  %v781_v56 = vmul.f32 %v3970_v57, %v756_v43 }
 0x12f   : > { %v782_v55 = vmul.f32 %v3968_v54, %v757_v46  ;;  %v759_v48 = vmax.f32 %v747_v49, 0.0  ;;  %984 = vmatprep.mubr.bf16.mxu1 %v813_v50 }
 0x130   : > { %v783_v58 = vmul.f32 %v3970_v57, %v758_v52  ;;  %985 = vmatmul.mubr.bf16.gmra.mrb[4].mxu1 %v812_v53 }
 0x131   : > { %v784_v59 = vmul.f32 %v3968_v54, %v759_v48  ;;  %3413 = vmatpush3.bf16.msra.mxu1 %v3592_v51  ;;  %v4064_v63 = vadd.f32 %v3978_v1, %v782_v55  ;;  %v4070_v54 = vadd.f32 %v3981_v5, %v781_v56 }
 0x132   : > { %v4058_v61 = vadd.f32 %v3981_v5, %v783_v58  ;;  %3414 = vmatprep.subr.bf16.mxu1 %v3593_v47  ;;  %v3598_v5 = vld [vmem:[%s5087_s7 + $0x28] sm:$0xff]  }
 0x133   : > { %v4067_v57 = vadd.f32 %v3978_v1, %v784_v59  ;;  %v3597_v1 = vld [vmem:[%s5087_s7 + $0x68] sm:$0xff]  }
 0x134   : > { %v814_v4 = vpack.c.bf16 %v4058_v61, %v4070_v54 }
 0x135   : > { %3415 = vmatpush3.bf16.msra.mxu1 %v3594_v60  ;;  %v815_v0 = vpack.c.bf16 %v4067_v57, %v4064_v63 }
 0x136   : > { %3416 = vmatprep.subr.bf16.mxu1 %v3595_v62 }
 0x137   : > { %992 = vmatprep.mubr.bf16.mxu1 %v815_v0 }
 0x138   : > { %993 = vmatmul.mubr.bf16.gmra.mrb[8].mxu1 %v814_v4 }
 0x139   : > { %3417 = vmatpush3.bf16.msra.mxu1 %v3596_v3  ;;  %1161 = vmatprep.mubr.bf16.mxu1 %v811_v22 }
 0x13a   : > { %3418 = vmatprep.subr.bf16.mxu1 %v3597_v1 }
 0x13d   : > { %3419 = vmatpush3.bf16.msra.mxu1 %v3598_v5 }
 0x13e   : > { %3420 = vmatprep.subr.bf16.mxu1 %v3599_v6 }
 0x141   : > { %3421 = vmatpush3.bf16.msra.mxu1 %v3600_v7 }
 0x142   : > { %3422 = vmatprep.subr.bf16.mxu1 %v3601_v8 }
 0x145   : > { %3423 = vmatpush3.bf16.msra.mxu1 %v3602_v10 }
 0x148   : > { %1162 = vmatmul.mubr.bf16.vlgmr.msra.gmra.mrb[12].mxu1 %v4008_v25 }
 0x149   : > { %1169 = vmatprep.mubr.bf16.mxu1 %v813_v50 }
 0x150   : > { %1170 = vmatmul.mubr.bf16.gmra.mrb[16].mxu1 %v812_v53 }
 0x151   : > { %1177 = vmatprep.mubr.bf16.mxu1 %v815_v0 }
 0x158   : > { %1178 = vmatmul.mubr.bf16.gmra.mrb[20].mxu1 %v814_v4 }
 0x1fb   : > { %v3390_v17 = vpop.f32.mrb[0].mxu1 }
 0x1fc   : > { %v3391_v18 = vpop.f32.mrb[1].mxu1 }
 0x1fd   : > { %v3392_v19 = vadd.f32 %v3391_v18, %v3390_v17  ;;  %v3393_v20 = vpop.f32.mrb[2].mxu1  ;;  %v1233_v17 = vld [vmem:[%s5088_s8 + $0x20] sm:$0xff]  ;;  %v1234_v18 = vld [vmem:[%s5088_s8 + $0x28] sm:$0xff] }
 0x1fe   : > { %v3394_v21 = vpop.f32.mrb[3].mxu1 }
 0x1ff   : > { %v3395_v22 = vadd.f32 %v3394_v21, %v3393_v20  ;;  %v1235_v20 = vld [vmem:[%s5088_s8 + $0x30] sm:$0xff]  ;;  %v1236_v21 = vld [vmem:[%s5088_s8 + $0x38] sm:$0xff] }
 0x203   : > { %v3396_v23 = vpop.f32.mrb[4].mxu1 }
 0x204   : > { %v3397_v24 = vpop.f32.mrb[5].mxu1 }
 0x205   : > { %v3398_v25 = vadd.f32 %v3397_v24, %v3396_v23  ;;  %v3399_v26 = vpop.f32.mrb[6].mxu1  ;;  %v1422_v23 = vld [vmem:[%s5089_s9] sm:$0xff] }
 0x206   : > { %v3400_v27 = vpop.f32.mrb[7].mxu1  ;;  %3488 = vmatprep.subr.mxu1 %v1422_v23 }
 0x207   : > { %v3401_v28 = vadd.f32 %v3400_v27, %v3399_v26  ;;  %3489 = vmatpush3.msra.mxu1 %v1422_v23 }
 0x20b   : > { %v3402_v29 = vpop.f32.mrb[8].mxu1 }
 0x20c   : > { %v3403_v30 = vpop.f32.mrb[9].mxu1 }
 0x20d   : > { %v3404_v31 = vadd.f32 %v3403_v30, %v3402_v29  ;;  %v3405_v32 = vpop.f32.mrb[10].mxu1 }
 0x20e   : > { %v3406_v33 = vpop.f32.mrb[11].mxu1 }
 0x20f   : > { %v3407_v35 = vadd.f32 %v3406_v33, %v3405_v32 }
 0x21b   : > { %v3424_v36 = vpop.f32.mrb[12].mxu1 }
 0x21c   : > { %v3425_v37 = vpop.f32.mrb[13].mxu1 }
 0x21d   : > { %v3426_v40 = vadd.f32 %v3425_v37, %v3424_v36  ;;  %v3427_v41 = vpop.f32.mrb[14].mxu1 }
 0x21e   : > { %v3428_v43 = vpop.f32.mrb[15].mxu1 }
 0x21f   : > { %v3429_v44 = vadd.f32 %v3428_v43, %v3427_v41  ;;  %v1186_v45 = vmul.f32 %v3426_v40, %v3392_v19  ;;  %v3507_v19 = vpack.c.bf16 %v1234_v18, %v1233_v17  ;;  %v1355_v17 = vld [vmem:[%s426_s30 + $0x28] sm:$0xff] }
 0x221   : > { %v1193_v46 = vsel %vm1192_vm1, %v1186_v45, -inf  ;;  %v1187_v49 = vmul.f32 %v3429_v44, %v3395_v22  ;;  %3508 = vmatprep.subr.bf16.mxu0 %v3507_v19  ;;  %v3511_v22 = vpack.c.bf16 %v1236_v21, %v1235_v20  ;;  %v3276_v20 = vmul.f32 -1.442695, %v1360_v15 }
 0x222   : > { %1194 = vmax.xlane.f32.xlu0 %v1193_v46  ;;  %3510 = vmatpush3.bf16.msra.mxu0 %v3507_v19  ;;  %v1361_v19 = vsub.f32 0.0, %v1355_v17  ;;  %v3620_v17 = vld [vmem:[%s5090_s10 + $0x64] ss:$8 sps:$4 sm:$0xff]  }
 0x223   : > { %v3430_v50 = vpop.f32.mrb[16].mxu1  ;;  %v1196_v47 = vsel %vm1192_vm1, %v1187_v49, -inf  ;;  %3512 = vmatprep.subr.bf16.mxu0 %v3511_v22 }
 0x224   : > { %v3431_v51 = vpop.f32.mrb[17].mxu1  ;;  %v3277_v23 = vmul.f32 -1.442695, %v1361_v19 }
 0x225   : > { %v3432_v52 = vadd.f32 %v3431_v51, %v3430_v50  ;;  %v3433_v53 = vpop.f32.mrb[18].mxu1 }
 0x226   : > { %v3434_v55 = vpop.f32.mrb[19].mxu1  ;;  %1197 = vmax.xlane.f32.xlu0 %v1196_v47  ;;  %3514 = vmatpush3.bf16.msra.mxu0 %v3511_v22  ;;  %v3603_v47 = vld [vmem:[%s5090_s10] ss:$8 sps:$4 sm:$0xff]  }
 0x227   : > { %v3435_v48 = vadd.f32 %v3434_v55, %v3433_v53  ;;  %v1188_v56 = vmul.f32 %v3432_v52, %v3398_v25  ;;  %v3605_v55 = vld [vmem:[%s5090_s10 + $0x4] ss:$8 sps:$4 sm:$0xff]  }
 0x228   : > { %1603 = vmatprep.subr.bf16.mxu0 %v3605_v55 }
 0x229   : > { %v1199_v58 = vsel %vm1192_vm1, %v1188_v56, -inf  ;;  %v1189_v59 = vmul.f32 %v3435_v48, %v3401_v28  ;;  %v3608_v48 = vld [vmem:[%s5090_s10 + $0x44] ss:$8 sps:$4 sm:$0xff]  }
 0x22a   : > { %1200 = vmax.xlane.f32.xlu1 %v1199_v58  ;;  %1792 = vmatprep.subr.bf16.mxu1 %v3608_v48  ;;  %v3609_v58 = vld [vmem:[%s5090_s10 + $0x10] ss:$8 sps:$4 sm:$0xff]  }
 0x22b   : > { %v3436_v60 = vpop.f32.mrb[20].mxu1  ;;  %v1202_v4 = vsel %vm1192_vm1, %v1189_v59, -inf }
 0x22c   : > { %v3437_v62 = vpop.f32.mrb[21].mxu1 }
 0x22d   : > { %v3438_v0 = vadd.f32 %v3437_v62, %v3436_v60  ;;  %v3439_v3 = vpop.f32.mrb[22].mxu1  ;;  %v3615_v60 = vld [vmem:[%s5090_s10 + $0x20] ss:$8 sps:$4 sm:$0xff]  }
 0x22e   : > { %v3440_v1 = vpop.f32.mrb[23].mxu1  ;;  %1203 = vmax.xlane.f32.xlu1 %v1202_v4  ;;  %v1350_v62 = vld [vmem:[%s426_s30] sm:$0xff] }
 0x22f   : > { %v3441_v5 = vadd.f32 %v3440_v1, %v3439_v3  ;;  %v1190_v6 = vmul.f32 %v3438_v0, %v3404_v31  ;;  %v1351_v0 = vld [vmem:[%s426_s30 + $0x8] sm:$0xff]  ;;  %v1356_v3 = vsub.f32 0.0, %v1350_v62 }
 0x230   : > { %v1357_v4 = vsub.f32 0.0, %v1351_v0 }
 0x231   : > { %v1205_v7 = vsel %vm1192_vm1, %v1190_v6, -inf  ;;  %v1191_v8 = vmul.f32 %v3441_v5, %v3407_v35  ;;  %v3272_v1 = vmul.f32 -1.442695, %v1356_v3 }
 0x232   : > { %1206 = vmax.xlane.f32.xlu0 %v1205_v7  ;;  %v3273_v5 = vmul.f32 -1.442695, %v1357_v4  ;;  %v1353_v7 = vld [vmem:[%s426_s30 + $0x18] sm:$0xff]  ;;  %v3606_v4 = vld [vmem:[%s5090_s10 + $0x40] ss:$8 sps:$4 sm:$0xff]  }
 0x233   : > { %v1208_v10 = vsel %vm1192_vm1, %v1191_v8, -inf }
 0x234   : > { %1209 = vmax.xlane.f32.xlu1 %v1208_v10  ;;  %v1359_v10 = vsub.f32 0.0, %v1353_v7  ;;  %v3614_v7 = vld [vmem:[%s5090_s10 + $0x54] ss:$8 sps:$4 sm:$0xff]  }
 0x236   : > { %v3275_v18 = vmul.f32 -1.442695, %v1359_v10 }
 0x2af   : > { %v1195_v24 = vpop.xlane.xlu0 %1194 }
 0x2b0   : > { %v1211_v25 = vsub.f32 %v1186_v45, %v1195_v24 }
 0x2b2   : > { %v1217_v26 = vmul.f32 1.442695, %v1211_v25 }
 0x2b3   : > { %v1198_v27 = vpop.xlane.xlu0 %1197 }
 0x2b4   : > { %3699 = vpow2.f32 %v1217_v26  ;;  %v1212_v28 = vsub.f32 %v1187_v49, %v1198_v27 }
 0x2b6   : > { %v1219_v29 = vmul.f32 1.442695, %v1212_v28 }
 0x2b7   : > { %v1201_v30 = vpop.xlane.xlu1 %1200 }
 0x2b8   : > { %3701 = vpow2.f32 %v1219_v29  ;;  %v1213_v31 = vsub.f32 %v1188_v56, %v1201_v30  ;;  %v3611_v56 = vld [vmem:[%s5090_s10 + $0x14] ss:$8 sps:$4 sm:$0xff]  }
 0x2ba   : > { %v1221_v32 = vmul.f32 1.442695, %v1213_v31 }
 0x2bb   : > { %v1204_v33 = vpop.xlane.xlu1 %1203 }
 0x2bc   : > { %3703 = vpow2.f32 %v1221_v32  ;;  %v1214_v35 = vsub.f32 %v1189_v59, %v1204_v33  ;;  %v3617_v59 = vld [vmem:[%s5090_s10 + $0x24] ss:$8 sps:$4 sm:$0xff]  }
 0x2be   : > { %v4131_v36 = vpop.eup %3699  ;;  %v1223_v37 = vmul.f32 1.442695, %v1214_v35 }
 0x2bf   : > { %3479 = vmatprep.mubr.msk.f32.mxu0 %vm1192_vm1, %v4131_v36  ;;  %v1207_v40 = vpop.xlane.xlu0 %1206 }
 0x2c0   : > { %3705 = vpow2.f32 %v1223_v37  ;;  %v1215_v41 = vsub.f32 %v1190_v6, %v1207_v40  ;;  %v1352_v6 = vld [vmem:[%s426_s30 + $0x10] sm:$0xff] }
 0x2c1   : > { %v1210_v43 = vpop.xlane.xlu1 %1209 }
 0x2c2   : > { %v4135_v44 = vpop.eup %3701  ;;  %v1225_v45 = vmul.f32 1.442695, %v1215_v41  ;;  %v1216_v46 = vsub.f32 %v1191_v8, %v1210_v43  ;;  %v1358_v8 = vsub.f32 0.0, %v1352_v6 }
 0x2c3   : > { %3480 = vmatmul.mubr.msk.f32.vlgmr.msra.gmra.mrb[12].mxu0 %vm1192_vm1, %v4135_v44 }
 0x2c4   : > { %3707 = vpow2.f32 %v1225_v45  ;;  %v1227_v49 = vmul.f32 1.442695, %v1216_v46  ;;  %1604 = vmatpush1.bf16.msra.mxu0 %v3603_v47  ;;  %v3274_v14 = vmul.f32 -1.442695, %v1358_v8 }
 0x2c5   : > { %1605 = vmatprep.subr.bf16.mxu0 %v3611_v56 }
 0x2c6   : > { %v4139_v50 = vpop.eup %3703  ;;  %3709 = vpow2.f32 %v1227_v49 }
 0x2c7   : > { %3482 = vmatprep.mubr.msk.f32.mxu0 %vm1192_vm1, %v4139_v50  ;;  %3711 = vpow2.f32 %v3272_v1 }
 0x2c8   : > { %1606 = vmatpush1.bf16.msra.mxu0 %v3609_v58  ;;  %3713 = vpow2.f32 %v3273_v5 }
 0x2c9   : > { %1607 = vmatprep.subr.bf16.mxu0 %v3617_v59  ;;  %3715 = vpow2.f32 %v3274_v14 }
 0x2ca   : > { %v4143_v51 = vpop.eup %3705  ;;  %3717 = vpow2.f32 %v3275_v18 }
 0x2cb   : > { %3483 = vmatmul.mubr.msk.f32.gmra.mrb[14].mxu0 %vm1192_vm1, %v4143_v51  ;;  %3719 = vpow2.f32 %v3276_v20 }
 0x2cc   : > { %1608 = vmatpush1.bf16.msra.mxu0 %v3615_v60  ;;  %3721 = vpow2.f32 %v3277_v23 }
 0x2ce   : > { %v4147_v52 = vpop.eup %3707 }
 0x2cf   : > { %3485 = vmatprep.mubr.msk.f32.mxu0 %vm1192_vm1, %v4147_v52 }
 0x2d0   : > { %v4151_v53 = vpop.eup %3709 }
 0x2d1   : > { %3486 = vmatmul.mubr.msk.f32.gmra.mrb[16].mxu0 %vm1192_vm1, %v4151_v53  ;;  %v3712_v21 = vpop.eup %3711 }
 0x2d2   : > { %1635 = vmatprep.mubr.bf16.mxu0 %v3755_v2  ;;  %v3714_v22 = vpop.eup %3713  ;;  %v1380_v24 = vadd.f32 1.0, %v3712_v21 }
 0x2d3   : > { %v1381_v25 = vadd.f32 1.0, %v3714_v22  ;;  %v3716_v26 = vpop.eup %3715  ;;  %v3618_v22 = vld [vmem:[%s5090_s10 + $0x60] ss:$8 sps:$4 sm:$0xff]  }
 0x2d4   : > { %3723 = vrcp.f32 %v1380_v24  ;;  %v3718_v27 = vpop.eup %3717  ;;  %v1382_v32 = vadd.f32 1.0, %v3716_v26 }
 0x2d5   : > { %3725 = vrcp.f32 %v1381_v25  ;;  %v3720_v33 = vpop.eup %3719  ;;  %v1383_v35 = vadd.f32 1.0, %v3718_v27 }
 0x2d6   : > { %v3722_v37 = vpop.eup %3721  ;;  %v1384_v40 = vadd.f32 1.0, %v3720_v33  ;;  %v3624_v33 = vld [vmem:[%s5090_s10 + $0x70] ss:$8 sps:$4 sm:$0xff]  }
 0x2d7   : > { %v1385_v47 = vadd.f32 1.0, %v3722_v37  ;;  %v3632_v37 = vld [vmem:[%s5090_s10 + $0x84] ss:$8 sps:$4 sm:$0xff]  }
 0x2de   : > { %v3724_v41 = vpop.eup %3723 }
 0x2df   : > { %v3726_v45 = vpop.eup %3725  ;;  %v1398_v48 = vmul.f32 2.0, %v3724_v41 }
 0x2e0   : > { %v1399_v56 = vmul.f32 2.0, %v3726_v45 }
 0x396   : > { %v3481_v28 = vpop.f32.mrb[12].mxu0 }
 0x397   : > { %v1405_v29 = vmax.f32 %v3481_v28, 1e-30  ;;  %v1321_v30 = vpop.f32.mrb[13].mxu0 }
 0x398   : > { %v1404_v31 = vmax.f32 %v1321_v30, 1e-30  ;;  %v3623_v30 = vld [vmem:[%s5090_s10 + $0x34] ss:$8 sps:$4 sm:$0xff]  }
 0x399   : > { %3727 = vrcp.f32 %v1405_v29  ;;  %1609 = vmatprep.subr.bf16.mxu0 %v3623_v30  ;;  %v3677_v30 = vld [vmem:[%s5090_s10 + $0x184] ss:$8 sps:$4 sm:$0xff]  }
 0x39a   : > { %3729 = vrcp.f32 %v1404_v31  ;;  %v3626_v31 = vld [vmem:[%s5090_s10 + $0x74] ss:$8 sps:$4 sm:$0xff]  }
 0x39b   : > { %3731 = vrcp.f32 %v1382_v32  ;;  %v3621_v32 = vld [vmem:[%s5090_s10 + $0x30] ss:$8 sps:$4 sm:$0xff]  }
 0x39c   : > { %3733 = vrcp.f32 %v1383_v35  ;;  %1610 = vmatpush1.bf16.msra.mxu0 %v3621_v32  ;;  %v3629_v35 = vld [vmem:[%s5090_s10 + $0xc4] ss:$8 sps:$4 sm:$0xff]   ;;  %v3675_v32 = vld [vmem:[%s5090_s10 + $0x180] ss:$8 sps:$4 sm:$0xff]  }
 0x39d   : > { %3735 = vrcp.f32 %v1384_v40  ;;  %1987 = vmatprep.subr.bf16.mxu0 %v3632_v37  ;;  %v3686_v37 = vld [vmem:[%s5090_s10 + $0x1d4] ss:$8 sps:$4 sm:$0xff]  }
 0x39e   : > { %v3484_v43 = vpop.f32.mrb[14].mxu0 }
 0x39f   : > { %v1407_v46 = vmax.f32 %v3484_v43, 1e-30  ;;  %v1331_v49 = vpop.f32.mrb[15].mxu0 }
 0x3a0   : > { %v1406_v55 = vmax.f32 %v1331_v49, 1e-30  ;;  %v3627_v49 = vld [vmem:[%s5090_s10 + $0xc0] ss:$8 sps:$4 sm:$0xff]  }
 0x3a1   : > { %3737 = vrcp.f32 %v1407_v46 }
 0x3a2   : > { %3739 = vrcp.f32 %v1406_v55  ;;  %v3635_v55 = vld [vmem:[%s5090_s10 + $0x94] ss:$8 sps:$4 sm:$0xff]  }
 0x3a3   : > { %v3728_v58 = vpop.eup %3727  ;;  %3741 = vrcp.f32 %v1385_v47  ;;  %v3630_v47 = vld [vmem:[%s5090_s10 + $0x80] ss:$8 sps:$4 sm:$0xff]  }
 0x3a4   : > { %v3730_v59 = vpop.eup %3729  ;;  %v3487_v60 = vpop.f32.mrb[16].mxu0  ;;  %v1417_v5 = vmul.f32 %v3728_v58, %v1399_v56  ;;  %v3636_v56 = vld [vmem:[%s5090_s10 + $0xd0] ss:$8 sps:$4 sm:$0xff]  }
 0x3a5   : > { %v1409_v62 = vmax.f32 %v3487_v60, 1e-30  ;;  %v1341_v0 = vpop.f32.mrb[17].mxu0  ;;  %v1416_v3 = vmul.f32 %v3730_v59, %v1398_v48  ;;  %v3732_v1 = vpop.eup %3731  ;;  %v3633_v48 = vld [vmem:[%s5090_s10 + $0x90] ss:$8 sps:$4 sm:$0xff]  }
 0x3a6   : > { %v1408_v6 = vmax.f32 %v1341_v0, 1e-30  ;;  %v3734_v8 = vpop.eup %3733  ;;  %v1400_v10 = vmul.f32 2.0, %v3732_v1  ;;  %v3641_v60 = vld [vmem:[%s5090_s10 + $0xa4] ss:$8 sps:$4 sm:$0xff]  }
 0x3a7   : > { %3743 = vrcp.f32 %v1409_v62  ;;  %3490 = vmatprep.mubr.msk.f32.mxu1 %vm1423_vm2, %v1416_v3  ;;  %v3736_v14 = vpop.eup %3735  ;;  %v1401_v15 = vmul.f32 2.0, %v3734_v8  ;;  %v3644_v62 = vld [vmem:[%s5090_s10 + $0xe4] ss:$8 sps:$4 sm:$0xff]   ;;  %v3647_v1 = vld [vmem:[%s5090_s10 + $0xb4] ss:$8 sps:$4 sm:$0xff]  }
 0x3a8   : > { %3745 = vrcp.f32 %v1408_v6  ;;  %3491 = vmatmul.mubr.msk.f32.vlgmr.msra.gmra.mrb[24].mxu1 %vm1423_vm2, %v1417_v5  ;;  %v1402_v24 = vmul.f32 2.0, %v3736_v14 }
 0x3a9   : > { %1793 = vmatpush1.bf16.msra.mxu1 %v3606_v4  ;;  %v3642_v4 = vld [vmem:[%s5090_s10 + $0xe0] ss:$8 sps:$4 sm:$0xff]  }
 0x3aa   : > { %1794 = vmatprep.subr.bf16.mxu1 %v3614_v7 }
 0x3ab   : > { %v3738_v18 = vpop.eup %3737 }
 0x3ac   : > { %v3740_v19 = vpop.eup %3739  ;;  %v1419_v23 = vmul.f32 %v3738_v18, %v1401_v15  ;;  %v3651_v15 = vld [vmem:[%s5090_s10 + $0x100] ss:$8 sps:$4 sm:$0xff]   ;;  %v3659_v18 = vld [vmem:[%s5090_s10 + $0x114] ss:$8 sps:$4 sm:$0xff]  }
 0x3ad   : > { %v3742_v20 = vpop.eup %3741  ;;  %v1418_v21 = vmul.f32 %v3740_v19, %v1400_v10  ;;  %1795 = vmatpush1.bf16.msra.mxu1 %v3612_v11  ;;  %v3645_v10 = vld [vmem:[%s5090_s10 + $0xb0] ss:$8 sps:$4 sm:$0xff]   ;;  %v3662_v19 = vld [vmem:[%s5090_s10 + $0x154] ss:$8 sps:$4 sm:$0xff]  }
 0x3ae   : > { %1796 = vmatprep.subr.bf16.mxu1 %v3620_v17  ;;  %v1403_v25 = vmul.f32 2.0, %v3742_v20  ;;  %v3648_v11 = vld [vmem:[%s5090_s10 + $0xf0] ss:$8 sps:$4 sm:$0xff]   ;;  %v3654_v17 = vld [vmem:[%s5090_s10 + $0x140] ss:$8 sps:$4 sm:$0xff]  }
 0x3af   : > { %3493 = vmatprep.mubr.msk.f32.mxu1 %vm1423_vm2, %v1418_v21  ;;  %v3657_v20 = vld [vmem:[%s5090_s10 + $0x110] ss:$8 sps:$4 sm:$0xff]  }
 0x3b0   : > { %3494 = vmatmul.mubr.msk.f32.gmra.mrb[26].mxu1 %vm1423_vm2, %v1419_v23  ;;  %v3660_v21 = vld [vmem:[%s5090_s10 + $0x150] ss:$8 sps:$4 sm:$0xff]   ;;  %v3668_v23 = vld [vmem:[%s5090_s10 + $0x164] ss:$8 sps:$4 sm:$0xff]  }
 0x3b1   : > { %v3744_v26 = vpop.eup %3743  ;;  %1797 = vmatpush1.bf16.msra.mxu1 %v3618_v22  ;;  %v3665_v22 = vld [vmem:[%s5090_s10 + $0x124] ss:$8 sps:$4 sm:$0xff]  }
 0x3b2   : > { %v3746_v27 = vpop.eup %3745  ;;  %v1421_v29 = vmul.f32 %v3744_v26, %v1403_v25  ;;  %1798 = vmatprep.subr.bf16.mxu1 %v3626_v31  ;;  %v3666_v25 = vld [vmem:[%s5090_s10 + $0x160] ss:$8 sps:$4 sm:$0xff]   ;;  %v3671_v26 = vld [vmem:[%s5090_s10 + $0x134] ss:$8 sps:$4 sm:$0xff]   ;;  %v3680_v31 = vld [vmem:[%s5090_s10 + $0x1c4] ss:$8 sps:$4 sm:$0xff]  }
 0x3b3   : > { %v1420_v28 = vmul.f32 %v3746_v27, %v1402_v24  ;;  %v3663_v24 = vld [vmem:[%s5090_s10 + $0x120] ss:$8 sps:$4 sm:$0xff]   ;;  %v3674_v27 = vld [vmem:[%s5090_s10 + $0x174] ss:$8 sps:$4 sm:$0xff]  }
 0x3b5   : > { %3496 = vmatprep.mubr.msk.f32.mxu1 %vm1423_vm2, %v1420_v28  ;;  %1799 = vmatpush1.bf16.msra.mxu1 %v3624_v33  ;;  %v3669_v28 = vld [vmem:[%s5090_s10 + $0x130] ss:$8 sps:$4 sm:$0xff]   ;;  %v3678_v33 = vld [vmem:[%s5090_s10 + $0x1c0] ss:$8 sps:$4 sm:$0xff]  }
 0x3b6   : > { %3497 = vmatmul.mubr.msk.f32.gmra.mrb[28].mxu1 %vm1423_vm2, %v1421_v29  ;;  %2182 = vmatprep.subr.bf16.mxu1 %v3629_v35  ;;  %v3672_v29 = vld [vmem:[%s5090_s10 + $0x170] ss:$8 sps:$4 sm:$0xff]   ;;  %v3683_v35 = vld [vmem:[%s5090_s10 + $0x194] ss:$8 sps:$4 sm:$0xff]  }
 0x3b7   : > { %1824 = vmatprep.mubr.bf16.mxu1 %v3755_v2 }
 0x47b   : > { %v3492_v40 = vpop.f32.mrb[24].mxu1 }
 0x47c   : > { %v1538_v41 = vmul.f32 %v4135_v44, %v3492_v40  ;;  %v1508_v43 = vpop.f32.mrb[25].mxu1  ;;  %v3638_v44 = vld [vmem:[%s5090_s10 + $0xd4] ss:$8 sps:$4 sm:$0xff]   ;;  %v3681_v40 = vld [vmem:[%s5090_s10 + $0x190] ss:$8 sps:$4 sm:$0xff]  }
 0x47d   : > { %v1537_v45 = vmul.f32 %v4131_v36, %v1508_v43  ;;  %v3689_v43 = vld [vmem:[%s5090_s10 + $0x1a4] ss:$8 sps:$4 sm:$0xff]  }
 0x47f   : > { %v4225_v46 = vpack.c.bf16 %v1538_v41, %v1537_v45  ;;  %v3684_v41 = vld [vmem:[%s5090_s10 + $0x1d0] ss:$8 sps:$4 sm:$0xff]   ;;  %v3692_v45 = vld [vmem:[%s5090_s10 + $0x1e4] ss:$8 sps:$4 sm:$0xff]  }
 0x481   : > { %3292 = vmatmul.mubr.msk.bf16.vlgmr.msra.gmra.mrb[20].mxu0 %vm1192_vm1, %v4225_v46  ;;  %3303 = vmatmul.mubr.msk.bf16.vlgmr.msra.gmra.mrb[32].mxu1 %vm1192_vm1, %v4225_v46 }
 0x482   : > { %1645 = vmatprep.mubr.bf16.mxu0 %v3755_v2  ;;  %1834 = vmatprep.mubr.bf16.mxu1 %v3755_v2 }
 0x483   : > { %v3495_v36 = vpop.f32.mrb[26].mxu1  ;;  %2183 = vmatpush1.bf16.msra.mxu1 %v3627_v49  ;;  %1988 = vmatpush1.bf16.msra.mxu0 %v3630_v47  ;;  %v3687_v49 = vld [vmem:[%s5090_s10 + $0x1a0] ss:$8 sps:$4 sm:$0xff]  }
 0x484   : > { %v1540_v58 = vmul.f32 %v4143_v51, %v3495_v36  ;;  %v1518_v59 = vpop.f32.mrb[27].mxu1  ;;  %1989 = vmatprep.subr.bf16.mxu0 %v3635_v55  ;;  %2184 = vmatprep.subr.bf16.mxu1 %v3638_v44  ;;  %v3639_v51 = vld [vmem:[%s5090_s10 + $0xa0] ss:$8 sps:$4 sm:$0xff]   ;;  %v3695_v55 = vld [vmem:[%s5090_s10 + $0x1b4] ss:$8 sps:$4 sm:$0xff]  }
 0x485   : > { %v1539_v0 = vmul.f32 %v4139_v50, %v1518_v59  ;;  %v3650_v50 = vld [vmem:[%s5090_s10 + $0xf4] ss:$8 sps:$4 sm:$0xff]   ;;  %v3690_v47 = vld [vmem:[%s5090_s10 + $0x1e0] ss:$8 sps:$4 sm:$0xff]   ;;  %v3693_v36 = vld [vmem:[%s5090_s10 + $0x1b0] ss:$8 sps:$4 sm:$0xff]  }
 0x486   : > { %v3698_v44 = vld [vmem:[%s5090_s10 + $0x1f4] ss:$8 sps:$4 sm:$0xff]  }
 0x487   : > { %v4259_v3 = vpack.c.bf16 %v1540_v58, %v1539_v0  ;;  %1990 = vmatpush1.bf16.msra.mxu0 %v3633_v48  ;;  %2185 = vmatpush1.bf16.msra.mxu1 %v3636_v56  ;;  %v3696_v48 = vld [vmem:[%s5090_s10 + $0x1f0] ss:$8 sps:$4 sm:$0xff]  }
 0x488   : > { %1991 = vmatprep.subr.bf16.mxu0 %v3641_v60  ;;  %2186 = vmatprep.subr.bf16.mxu1 %v3644_v62 }
 0x489   : > { %v3498_v5 = vpop.f32.mrb[28].mxu1  ;;  %3293 = vmatmul.mubr.msk.bf16.gmra.mrb[24].mxu0 %vm1192_vm1, %v4259_v3  ;;  %3304 = vmatmul.mubr.msk.bf16.gmra.mrb[36].mxu1 %vm1192_vm1, %v4259_v3 }
 0x48a   : > { %v1542_v6 = vmul.f32 %v4151_v53, %v3498_v5  ;;  %v1528_v7 = vpop.f32.mrb[29].mxu1  ;;  %1655 = vmatprep.mubr.bf16.mxu0 %v3755_v2  ;;  %1844 = vmatprep.mubr.bf16.mxu1 %v3755_v2  ;;  %v3653_v53 = vld [vmem:[%s5090_s10 + $0x104] ss:$8 sps:$4 sm:$0xff]  }
 0x48b   : > { %v1541_v8 = vmul.f32 %v4147_v52, %v1528_v7  ;;  %1992 = vmatpush1.bf16.msra.mxu0 %v3639_v51  ;;  %2187 = vmatpush1.bf16.msra.mxu1 %v3642_v4  ;;  %v3656_v52 = vld [vmem:[%s5090_s10 + $0x144] ss:$8 sps:$4 sm:$0xff]  }
 0x48c   : > { %1993 = vmatprep.subr.bf16.mxu0 %v3647_v1  ;;  %2188 = vmatprep.subr.bf16.mxu1 %v3650_v50 }
 0x48d   : > { %v4293_v14 = vpack.c.bf16 %v1542_v6, %v1541_v8 }
 0x48f   : > { %1994 = vmatpush1.bf16.msra.mxu0 %v3645_v10  ;;  %2189 = vmatpush1.bf16.msra.mxu1 %v3648_v11 }
 0x490   : > { %2377 = vmatprep.subr.bf16.mxu0 %v3653_v53  ;;  %2572 = vmatprep.subr.bf16.mxu1 %v3656_v52 }
 0x491   : > { %3294 = vmatmul.mubr.msk.bf16.gmra.mrb[28].mxu0 %vm1192_vm1, %v4293_v14  ;;  %3305 = vmatmul.mubr.msk.bf16.gmra.mrb[40].mxu1 %vm1192_vm1, %v4293_v14 }
 0x492   : > { %2019 = vmatprep.mubr.bf16.mxu0 %v3755_v2  ;;  %2214 = vmatprep.mubr.bf16.mxu1 %v3755_v2 }
 0x499   : > { %3314 = vmatmul.mubr.msk.bf16.vlgmr.msra.gmra.mrb[32].mxu0 %vm1192_vm1, %v4225_v46  ;;  %3325 = vmatmul.mubr.msk.bf16.vlgmr.msra.gmra.mrb[44].mxu1 %vm1192_vm1, %v4225_v46 }
 0x49a   : > { %2029 = vmatprep.mubr.bf16.mxu0 %v3755_v2  ;;  %2224 = vmatprep.mubr.bf16.mxu1 %v3755_v2 }
 0x49b   : > { %2378 = vmatpush1.bf16.msra.mxu0 %v3651_v15  ;;  %2573 = vmatpush1.bf16.msra.mxu1 %v3654_v17 }
 0x49c   : > { %2379 = vmatprep.subr.bf16.mxu0 %v3659_v18  ;;  %2574 = vmatprep.subr.bf16.mxu1 %v3662_v19 }
 0x49f   : > { %2380 = vmatpush1.bf16.msra.mxu0 %v3657_v20  ;;  %2575 = vmatpush1.bf16.msra.mxu1 %v3660_v21 }
 0x4a0   : > { %2381 = vmatprep.subr.bf16.mxu0 %v3665_v22  ;;  %2576 = vmatprep.subr.bf16.mxu1 %v3668_v23 }
 0x4a1   : > { %3315 = vmatmul.mubr.msk.bf16.gmra.mrb[36].mxu0 %vm1192_vm1, %v4259_v3  ;;  %3326 = vmatmul.mubr.msk.bf16.gmra.mrb[48].mxu1 %vm1192_vm1, %v4259_v3 }
 0x4a2   : > { %2039 = vmatprep.mubr.bf16.mxu0 %v3755_v2  ;;  %2234 = vmatprep.mubr.bf16.mxu1 %v3755_v2 }
 0x4a3   : > { %2382 = vmatpush1.bf16.msra.mxu0 %v3663_v24  ;;  %2577 = vmatpush1.bf16.msra.mxu1 %v3666_v25 }
 0x4a4   : > { %2383 = vmatprep.subr.bf16.mxu0 %v3671_v26  ;;  %2578 = vmatprep.subr.bf16.mxu1 %v3674_v27 }
 0x4a7   : > { %2384 = vmatpush1.bf16.msra.mxu0 %v3669_v28  ;;  %2579 = vmatpush1.bf16.msra.mxu1 %v3672_v29 }
 0x4a8   : > { %2767 = vmatprep.subr.bf16.mxu0 %v3677_v30  ;;  %2962 = vmatprep.subr.bf16.mxu1 %v3680_v31 }
 0x4a9   : > { %3316 = vmatmul.mubr.msk.bf16.gmra.mrb[40].mxu0 %vm1192_vm1, %v4293_v14  ;;  %3327 = vmatmul.mubr.msk.bf16.gmra.mrb[52].mxu1 %vm1192_vm1, %v4293_v14 }
 0x4aa   : > { %2409 = vmatprep.mubr.bf16.mxu0 %v3755_v2  ;;  %2604 = vmatprep.mubr.bf16.mxu1 %v3755_v2 }
 0x4b1   : > { %3336 = vmatmul.mubr.msk.bf16.vlgmr.msra.gmra.mrb[44].mxu0 %vm1192_vm1, %v4225_v46  ;;  %3347 = vmatmul.mubr.msk.bf16.vlgmr.msra.gmra.mrb[56].mxu1 %vm1192_vm1, %v4225_v46 }
 0x4b2   : > { %2419 = vmatprep.mubr.bf16.mxu0 %v3755_v2  ;;  %2614 = vmatprep.mubr.bf16.mxu1 %v3755_v2 }
 0x4b3   : > { %2768 = vmatpush1.bf16.msra.mxu0 %v3675_v32  ;;  %2963 = vmatpush1.bf16.msra.mxu1 %v3678_v33 }
 0x4b4   : > { %2769 = vmatprep.subr.bf16.mxu0 %v3683_v35  ;;  %2964 = vmatprep.subr.bf16.mxu1 %v3686_v37 }
 0x4b7   : > { %2770 = vmatpush1.bf16.msra.mxu0 %v3681_v40  ;;  %2965 = vmatpush1.bf16.msra.mxu1 %v3684_v41 }
 0x4b8   : > { %2771 = vmatprep.subr.bf16.mxu0 %v3689_v43  ;;  %2966 = vmatprep.subr.bf16.mxu1 %v3692_v45 }
 0x4b9   : > { %3337 = vmatmul.mubr.msk.bf16.gmra.mrb[48].mxu0 %vm1192_vm1, %v4259_v3  ;;  %3348 = vmatmul.mubr.msk.bf16.gmra.mrb[60].mxu1 %vm1192_vm1, %v4259_v3 }
 0x4ba   : > { %2429 = vmatprep.mubr.bf16.mxu0 %v3755_v2  ;;  %2624 = vmatprep.mubr.bf16.mxu1 %v3755_v2 }
 0x4bb   : > { %2772 = vmatpush1.bf16.msra.mxu0 %v3687_v49  ;;  %2967 = vmatpush1.bf16.msra.mxu1 %v3690_v47 }
 0x4bc   : > { %2773 = vmatprep.subr.bf16.mxu0 %v3695_v55  ;;  %2968 = vmatprep.subr.bf16.mxu1 %v3698_v44 }
 0x4bf   : > { %2774 = vmatpush1.bf16.msra.mxu0 %v3693_v36  ;;  %2969 = vmatpush1.bf16.msra.mxu1 %v3696_v48 }
 0x4c1   : > { %3338 = vmatmul.mubr.msk.bf16.gmra.mrb[52].mxu0 %vm1192_vm1, %v4293_v14  ;;  %3349 = vmatmul.mubr.msk.bf16.gmra.mrb[64].mxu1 %vm1192_vm1, %v4293_v14 }
 0x4c2   : > { %2799 = vmatprep.mubr.bf16.mxu0 %v3755_v2  ;;  %2994 = vmatprep.mubr.bf16.mxu1 %v3755_v2 }
 0x4c9   : > { %3358 = vmatmul.mubr.msk.bf16.vlgmr.msra.gmra.mrb[56].mxu0 %vm1192_vm1, %v4225_v46  ;;  %3369 = vmatmul.mubr.msk.bf16.vlgmr.msra.gmra.mrb[68].mxu1 %vm1192_vm1, %v4225_v46 }
 0x4ca   : > { %2809 = vmatprep.mubr.bf16.mxu0 %v3755_v2  ;;  %3004 = vmatprep.mubr.bf16.mxu1 %v3755_v2 }
 0x4d1   : > { %3359 = vmatmul.mubr.msk.bf16.gmra.mrb[60].mxu0 %vm1192_vm1, %v4259_v3  ;;  %3370 = vmatmul.mubr.msk.bf16.gmra.mrb[72].mxu1 %vm1192_vm1, %v4259_v3 }
 0x4d2   : > { %2819 = vmatprep.mubr.bf16.mxu0 %v3755_v2  ;;  %3014 = vmatprep.mubr.bf16.mxu1 %v3755_v2 }
 0x4d9   : > { %3360 = vmatmul.mubr.msk.bf16.gmra.mrb[64].mxu0 %vm1192_vm1, %v4293_v14  ;;  %3371 = vmatmul.mubr.msk.bf16.gmra.mrb[76].mxu1 %vm1192_vm1, %v4293_v14 }
 0x554   : > { %v1637_v46 = vpop.f32.mrb[20].mxu0  ;;  %v1826_v56 = vpop.f32.mrb[32].mxu1 }
 0x555   : > { %v1666_v58 = vmul.f32 %v1637_v46, %v3997_v16  ;;  %v1855_v59 = vmul.f32 %v1826_v56, %v3997_v16  ;;  %v1639_v60 = vpop.f32.mrb[21].mxu0  ;;  %v1828_v62 = vpop.f32.mrb[33].mxu1 }
 0x556   : > { %v1667_v0 = vmul.f32 %v1639_v60, %v3990_v12  ;;  %v1856_v3 = vmul.f32 %v1828_v62, %v3990_v12  ;;  %v1641_v51 = vpop.f32.mrb[22].mxu0  ;;  %v1830_v2 = vpop.f32.mrb[34].mxu1 }
 0x557   : > { %v1668_v4 = vmul.f32 %v1641_v51, %v3986_v9  ;;  %v1857_v1 = vmul.f32 %v1830_v2, %v3986_v9  ;;  %v1643_v50 = vpop.f32.mrb[23].mxu0  ;;  %v1832_v5 = vpop.f32.mrb[35].mxu1 }
 0x558   : > { %v4449_v6 = vadd.f32 %v1667_v0, %v1666_v58  ;;  %v4451_v7 = vadd.f32 %v1856_v3, %v1855_v59  ;;  %v1669_v8 = vmul.f32 %v1643_v50, %v3993_v13  ;;  %v1858_v10 = vmul.f32 %v1832_v5, %v3993_v13 }
 0x55a   : > { %v4455_v11 = vadd.f32 %v1669_v8, %v1668_v4  ;;  %v4457_v53 = vadd.f32 %v1858_v10, %v1857_v1  ;;  %1690 = vrot.lane.b32.xlu0 %v4449_v6, %s3756_s19 }
 0x55c   : > { %1692 = vrot.lane.b32.xlu1 %v4455_v11, %s3756_s19  ;;  %v1647_v52 = vpop.f32.mrb[24].mxu0  ;;  %v1836_v14 = vpop.f32.mrb[36].mxu1 }
 0x55d   : > { %v1670_v15 = vmul.f32 %v1647_v52, %v4036_v42  ;;  %v1859_v17 = vmul.f32 %v1836_v14, %v4036_v42  ;;  %v1649_v18 = vpop.f32.mrb[25].mxu0  ;;  %v1838_v19 = vpop.f32.mrb[37].mxu1 }
 0x55e   : > { %v1671_v20 = vmul.f32 %v1649_v18, %v4029_v38  ;;  %v1860_v21 = vmul.f32 %v1838_v19, %v4029_v38  ;;  %v1651_v22 = vpop.f32.mrb[26].mxu0  ;;  %1879 = vrot.lane.b32.xlu0 %v4451_v7, %s3756_s19  ;;  %v1840_v23 = vpop.f32.mrb[38].mxu1 }
 0x55f   : > { %v1672_v24 = vmul.f32 %v1651_v22, %v4022_v34  ;;  %v1861_v25 = vmul.f32 %v1840_v23, %v4022_v34  ;;  %v1653_v26 = vpop.f32.mrb[27].mxu0  ;;  %v1842_v27 = vpop.f32.mrb[39].mxu1 }
 0x560   : > { %v4471_v28 = vadd.f32 %v1671_v20, %v1670_v15  ;;  %v4473_v29 = vadd.f32 %v1860_v21, %v1859_v17  ;;  %v1673_v30 = vmul.f32 %v1653_v26, %v4032_v39  ;;  %v1862_v31 = vmul.f32 %v1842_v27, %v4032_v39  ;;  %1881 = vrot.lane.b32.xlu1 %v4457_v53, %s3756_s19 }
 0x562   : > { %v4479_v32 = vadd.f32 %v1673_v30, %v1672_v24  ;;  %v4481_v33 = vadd.f32 %v1862_v31, %v1861_v25  ;;  %1883 = vrot.lane.b32.xlu0 %v4473_v29, %s3756_s19 }
 0x564   : > { %1694 = vrot.lane.b32.xlu1 %v4471_v28, %s3756_s19  ;;  %v1657_v35 = vpop.f32.mrb[28].mxu0  ;;  %v1846_v37 = vpop.f32.mrb[40].mxu1 }
 0x565   : > { %v1674_v40 = vmul.f32 %v1657_v35, %v4070_v54  ;;  %v1863_v41 = vmul.f32 %v1846_v37, %v4070_v54  ;;  %v1659_v43 = vpop.f32.mrb[29].mxu0  ;;  %v1848_v45 = vpop.f32.mrb[41].mxu1 }
 0x566   : > { %v1675_v49 = vmul.f32 %v1659_v43, %v4064_v63  ;;  %v1864_v47 = vmul.f32 %v1848_v45, %v4064_v63  ;;  %v1661_v55 = vpop.f32.mrb[30].mxu0  ;;  %v1850_v44 = vpop.f32.mrb[42].mxu1 }
 0x567   : > { %v1676_v36 = vmul.f32 %v1661_v55, %v4058_v61  ;;  %v1865_v48 = vmul.f32 %v1850_v44, %v4058_v61  ;;  %v1663_v46 = vpop.f32.mrb[31].mxu0  ;;  %v1852_v56 = vpop.f32.mrb[43].mxu1 }
 0x568   : > { %v4493_v58 = vadd.f32 %v1675_v49, %v1674_v40  ;;  %v4495_v59 = vadd.f32 %v1864_v47, %v1863_v41  ;;  %v1677_v60 = vmul.f32 %v1663_v46, %v4067_v57  ;;  %v1866_v62 = vmul.f32 %v1852_v56, %v4067_v57  ;;  %1696 = vrot.lane.b32.xlu1 %v4479_v32, %s3756_s19 }
 0x56a   : > { %v4501_v0 = vadd.f32 %v1677_v60, %v1676_v36  ;;  %v4503_v3 = vadd.f32 %v1866_v62, %v1865_v48  ;;  %1698 = vrot.lane.b32.xlu0 %v4493_v58, %s3756_s19 }
 0x56c   : > { %1885 = vrot.lane.b32.xlu1 %v4481_v33, %s3756_s19  ;;  %v2021_v51 = vpop.f32.mrb[32].mxu0  ;;  %v2216_v2 = vpop.f32.mrb[44].mxu1 }
 0x56d   : > { %v2050_v4 = vmul.f32 %v2021_v51, %v3997_v16  ;;  %v2245_v1 = vmul.f32 %v2216_v2, %v3997_v16  ;;  %v2023_v50 = vpop.f32.mrb[33].mxu0  ;;  %v2218_v5 = vpop.f32.mrb[45].mxu1 }
 0x56e   : > { %v2051_v8 = vmul.f32 %v2023_v50, %v3990_v12  ;;  %v2246_v10 = vmul.f32 %v2218_v5, %v3990_v12  ;;  %v2220_v52 = vpop.f32.mrb[46].mxu1  ;;  %1887 = vrot.lane.b32.xlu0 %v4495_v59, %s3756_s19  ;;  %v2025_v14 = vpop.f32.mrb[34].mxu0 }
 0x56f   : > { %v2247_v15 = vmul.f32 %v2220_v52, %v3986_v9  ;;  %v2052_v17 = vmul.f32 %v2025_v14, %v3986_v9  ;;  %v2027_v18 = vpop.f32.mrb[35].mxu0  ;;  %v2222_v19 = vpop.f32.mrb[47].mxu1 }
 0x570   : > { %v4517_v20 = vadd.f32 %v2051_v8, %v2050_v4  ;;  %v4519_v21 = vadd.f32 %v2246_v10, %v2245_v1  ;;  %v2053_v22 = vmul.f32 %v2027_v18, %v3993_v13  ;;  %v2248_v23 = vmul.f32 %v2222_v19, %v3993_v13  ;;  %1700 = vrot.lane.b32.xlu1 %v4501_v0, %s3756_s19 }
 0x572   : > { %v4525_v24 = vadd.f32 %v2053_v22, %v2052_v17  ;;  %v4527_v25 = vadd.f32 %v2248_v23, %v2247_v15  ;;  %2074 = vrot.lane.b32.xlu0 %v4517_v20, %s3756_s19 }
 0x574   : > { %v2031_v26 = vpop.f32.mrb[36].mxu0  ;;  %v2226_v27 = vpop.f32.mrb[48].mxu1  ;;  %1889 = vrot.lane.b32.xlu1 %v4503_v3, %s3756_s19 }
 0x575   : > { %v2054_v30 = vmul.f32 %v2031_v26, %v4036_v42  ;;  %v2249_v31 = vmul.f32 %v2226_v27, %v4036_v42  ;;  %v2033_v35 = vpop.f32.mrb[37].mxu0  ;;  %v2228_v37 = vpop.f32.mrb[49].mxu1 }
 0x576   : > { %v2055_v40 = vmul.f32 %v2033_v35, %v4029_v38  ;;  %v2250_v41 = vmul.f32 %v2228_v37, %v4029_v38  ;;  %v2230_v43 = vpop.f32.mrb[50].mxu1  ;;  %2271 = vrot.lane.b32.xlu0 %v4527_v25, %s3756_s19  ;;  %v2035_v45 = vpop.f32.mrb[38].mxu0 }
 0x577   : > { %v2251_v49 = vmul.f32 %v2230_v43, %v4022_v34  ;;  %v2056_v47 = vmul.f32 %v2035_v45, %v4022_v34  ;;  %v2037_v55 = vpop.f32.mrb[39].mxu0  ;;  %v2232_v44 = vpop.f32.mrb[51].mxu1 }
 0x578   : > { %v4541_v36 = vadd.f32 %v2055_v40, %v2054_v30  ;;  %v4543_v48 = vadd.f32 %v2250_v41, %v2249_v31  ;;  %v2057_v46 = vmul.f32 %v2037_v55, %v4032_v39  ;;  %v2252_v56 = vmul.f32 %v2232_v44, %v4032_v39  ;;  %2269 = vrot.lane.b32.xlu1 %v4519_v21, %s3756_s19 }
 0x57a   : > { %v4549_v60 = vadd.f32 %v2057_v46, %v2056_v47  ;;  %v4551_v62 = vadd.f32 %v2252_v56, %v2251_v49  ;;  %2078 = vrot.lane.b32.xlu0 %v4541_v36, %s3756_s19 }
 0x57c   : > { %v2041_v51 = vpop.f32.mrb[40].mxu0  ;;  %v2236_v2 = vpop.f32.mrb[52].mxu1  ;;  %2076 = vrot.lane.b32.xlu1 %v4525_v24, %s3756_s19 }
 0x57d   : > { %v2058_v4 = vmul.f32 %v2041_v51, %v4070_v54  ;;  %v2253_v1 = vmul.f32 %v2236_v2, %v4070_v54  ;;  %v2043_v50 = vpop.f32.mrb[41].mxu0  ;;  %v2238_v5 = vpop.f32.mrb[53].mxu1 }
 0x57e   : > { %v2059_v8 = vmul.f32 %v2043_v50, %v4064_v63  ;;  %v2254_v10 = vmul.f32 %v2238_v5, %v4064_v63  ;;  %v2240_v52 = vpop.f32.mrb[54].mxu1  ;;  %2275 = vrot.lane.b32.xlu0 %v4551_v62, %s3756_s19  ;;  %v2045_v14 = vpop.f32.mrb[42].mxu0 }
 0x57f   : > { %v2255_v15 = vmul.f32 %v2240_v52, %v4058_v61  ;;  %v2060_v17 = vmul.f32 %v2045_v14, %v4058_v61  ;;  %v2047_v18 = vpop.f32.mrb[43].mxu0  ;;  %v2242_v19 = vpop.f32.mrb[55].mxu1 }
 0x580   : > { %v4565_v22 = vadd.f32 %v2059_v8, %v2058_v4  ;;  %v4567_v23 = vadd.f32 %v2254_v10, %v2253_v1  ;;  %v2061_v26 = vmul.f32 %v2047_v18, %v4067_v57  ;;  %v2256_v27 = vmul.f32 %v2242_v19, %v4067_v57  ;;  %2273 = vrot.lane.b32.xlu1 %v4543_v48, %s3756_s19 }
 0x582   : > { %v4573_v30 = vadd.f32 %v2061_v26, %v2060_v17  ;;  %v4575_v31 = vadd.f32 %v2256_v27, %v2255_v15  ;;  %2082 = vrot.lane.b32.xlu0 %v4565_v22, %s3756_s19 }
 0x584   : > { %v2411_v35 = vpop.f32.mrb[44].mxu0  ;;  %v2606_v37 = vpop.f32.mrb[56].mxu1  ;;  %2080 = vrot.lane.b32.xlu1 %v4549_v60, %s3756_s19 }
 0x585   : > { %v2440_v40 = vmul.f32 %v2411_v35, %v3997_v16  ;;  %v2635_v41 = vmul.f32 %v2606_v37, %v3997_v16  ;;  %v2413_v43 = vpop.f32.mrb[45].mxu0  ;;  %v2608_v45 = vpop.f32.mrb[57].mxu1 }
 0x586   : > { %v2441_v49 = vmul.f32 %v2413_v43, %v3990_v12  ;;  %v2636_v47 = vmul.f32 %v2608_v45, %v3990_v12  ;;  %v2610_v55 = vpop.f32.mrb[58].mxu1  ;;  %2279 = vrot.lane.b32.xlu0 %v4575_v31, %s3756_s19  ;;  %v2415_v44 = vpop.f32.mrb[46].mxu0 }
 0x587   : > { %v2637_v46 = vmul.f32 %v2610_v55, %v3986_v9  ;;  %v2442_v56 = vmul.f32 %v2415_v44, %v3986_v9  ;;  %v2417_v51 = vpop.f32.mrb[47].mxu0  ;;  %v2612_v2 = vpop.f32.mrb[59].mxu1 }
 0x588   : > { %v4589_v4 = vadd.f32 %v2441_v49, %v2440_v40  ;;  %v4591_v1 = vadd.f32 %v2636_v47, %v2635_v41  ;;  %v2443_v50 = vmul.f32 %v2417_v51, %v3993_v13  ;;  %v2638_v5 = vmul.f32 %v2612_v2, %v3993_v13  ;;  %2277 = vrot.lane.b32.xlu1 %v4567_v23, %s3756_s19 }
 0x58a   : > { %v4597_v8 = vadd.f32 %v2443_v50, %v2442_v56  ;;  %v4599_v10 = vadd.f32 %v2638_v5, %v2637_v46 }
 0x58c   : > { %v2616_v52 = vpop.f32.mrb[60].mxu1  ;;  %2466 = vrot.lane.b32.xlu0 %v4597_v8, %s3756_s19  ;;  %v2421_v14 = vpop.f32.mrb[48].mxu0  ;;  %2084 = vrot.lane.b32.xlu1 %v4573_v30, %s3756_s19 }
 0x58d   : > { %v2639_v15 = vmul.f32 %v2616_v52, %v4036_v42  ;;  %v2444_v17 = vmul.f32 %v2421_v14, %v4036_v42  ;;  %v2423_v18 = vpop.f32.mrb[49].mxu0  ;;  %v2618_v19 = vpop.f32.mrb[61].mxu1 }
 0x58e   : > { %v2445_v26 = vmul.f32 %v2423_v18, %v4029_v38  ;;  %v2640_v27 = vmul.f32 %v2618_v19, %v4029_v38  ;;  %v2425_v35 = vpop.f32.mrb[50].mxu0  ;;  %v2620_v37 = vpop.f32.mrb[62].mxu1 }
 0x58f   : > { %v2446_v40 = vmul.f32 %v2425_v35, %v4022_v34  ;;  %v2641_v41 = vmul.f32 %v2620_v37, %v4022_v34  ;;  %v2427_v43 = vpop.f32.mrb[51].mxu0  ;;  %v2622_v45 = vpop.f32.mrb[63].mxu1 }
 0x590   : > { %v4611_v49 = vadd.f32 %v2445_v26, %v2444_v17  ;;  %v4613_v47 = vadd.f32 %v2640_v27, %v2639_v15  ;;  %v2447_v55 = vmul.f32 %v2427_v43, %v4032_v39  ;;  %v2642_v44 = vmul.f32 %v2622_v45, %v4032_v39  ;;  %2661 = vrot.lane.b32.xlu0 %v4599_v10, %s3756_s19 }
 0x591   : > { %2464 = vrot.lane.b32.xlu1 %v4589_v4, %s3756_s19 }
 0x592   : > { %v4621_v46 = vadd.f32 %v2447_v55, %v2446_v40  ;;  %v4623_v56 = vadd.f32 %v2642_v44, %v2641_v41 }
 0x594   : > { %v2626_v51 = vpop.f32.mrb[64].mxu1  ;;  %2470 = vrot.lane.b32.xlu0 %v4621_v46, %s3756_s19  ;;  %v2431_v2 = vpop.f32.mrb[52].mxu0 }
 0x595   : > { %v2643_v50 = vmul.f32 %v2626_v51, %v4070_v54  ;;  %v2448_v5 = vmul.f32 %v2431_v2, %v4070_v54  ;;  %2659 = vrot.lane.b32.xlu1 %v4591_v1, %s3756_s19  ;;  %v2433_v52 = vpop.f32.mrb[53].mxu0  ;;  %v2628_v14 = vpop.f32.mrb[65].mxu1 }
 0x596   : > { %v2449_v15 = vmul.f32 %v2433_v52, %v4064_v63  ;;  %v2644_v17 = vmul.f32 %v2628_v14, %v4064_v63  ;;  %v2435_v18 = vpop.f32.mrb[54].mxu0  ;;  %v2630_v19 = vpop.f32.mrb[66].mxu1 }
 0x597   : > { %v2450_v26 = vmul.f32 %v2435_v18, %v4058_v61  ;;  %v2645_v27 = vmul.f32 %v2630_v19, %v4058_v61  ;;  %v2437_v35 = vpop.f32.mrb[55].mxu0  ;;  %v2632_v37 = vpop.f32.mrb[67].mxu1 }
 0x598   : > { %v4635_v40 = vadd.f32 %v2449_v15, %v2448_v5  ;;  %v4637_v41 = vadd.f32 %v2644_v17, %v2643_v50  ;;  %v2451_v43 = vmul.f32 %v2437_v35, %v4067_v57  ;;  %v2646_v45 = vmul.f32 %v2632_v37, %v4067_v57  ;;  %2665 = vrot.lane.b32.xlu0 %v4623_v56, %s3756_s19 }
 0x599   : > { %2468 = vrot.lane.b32.xlu1 %v4611_v49, %s3756_s19 }
 0x59a   : > { %v4645_v55 = vadd.f32 %v2451_v43, %v2450_v26  ;;  %v4647_v44 = vadd.f32 %v2646_v45, %v2645_v27 }
 0x59c   : > { %v2801_v51 = vpop.f32.mrb[56].mxu0  ;;  %v2996_v2 = vpop.f32.mrb[68].mxu1  ;;  %2474 = vrot.lane.b32.xlu0 %v4645_v55, %s3756_s19 }
 0x59d   : > { %v2830_v50 = vmul.f32 %v2801_v51, %v3997_v16  ;;  %v3025_v5 = vmul.f32 %v2996_v2, %v3997_v16  ;;  %2663 = vrot.lane.b32.xlu1 %v4613_v47, %s3756_s19  ;;  %v2803_v52 = vpop.f32.mrb[57].mxu0  ;;  %v2998_v14 = vpop.f32.mrb[69].mxu1 }
 0x59e   : > { %v2831_v15 = vmul.f32 %v2803_v52, %v3990_v12  ;;  %v3026_v17 = vmul.f32 %v2998_v14, %v3990_v12  ;;  %v2805_v18 = vpop.f32.mrb[58].mxu0  ;;  %v3000_v19 = vpop.f32.mrb[70].mxu1 }
 0x59f   : > { %v2832_v26 = vmul.f32 %v2805_v18, %v3986_v9  ;;  %v3027_v27 = vmul.f32 %v3000_v19, %v3986_v9  ;;  %v2807_v35 = vpop.f32.mrb[59].mxu0  ;;  %v3002_v37 = vpop.f32.mrb[71].mxu1 }
 0x5a0   : > { %v4659_v43 = vadd.f32 %v2831_v15, %v2830_v50  ;;  %v4661_v16 = vadd.f32 %v3026_v17, %v3025_v5  ;;  %v2833_v45 = vmul.f32 %v2807_v35, %v3993_v13  ;;  %v3028_v51 = vmul.f32 %v3002_v37, %v3993_v13  ;;  %2669 = vrot.lane.b32.xlu0 %v4647_v44, %s3756_s19 }
 0x5a1   : > { %2472 = vrot.lane.b32.xlu1 %v4635_v40, %s3756_s19 }
 0x5a2   : > { %v4669_v12 = vadd.f32 %v2833_v45, %v2832_v26  ;;  %v4671_v2 = vadd.f32 %v3028_v51, %v3027_v27 }
 0x5a4   : > { %v2811_v9 = vpop.f32.mrb[60].mxu0  ;;  %v3006_v52 = vpop.f32.mrb[72].mxu1  ;;  %2856 = vrot.lane.b32.xlu0 %v4669_v12, %s3756_s19 }
 0x5a5   : > { %v2834_v50 = vmul.f32 %v2811_v9, %v4036_v42  ;;  %v3029_v5 = vmul.f32 %v3006_v52, %v4036_v42  ;;  %2667 = vrot.lane.b32.xlu1 %v4637_v41, %s3756_s19  ;;  %v2813_v13 = vpop.f32.mrb[61].mxu0  ;;  %v3008_v14 = vpop.f32.mrb[73].mxu1 }
 0x5a6   : > { %v2835_v15 = vmul.f32 %v2813_v13, %v4029_v38  ;;  %v3030_v17 = vmul.f32 %v3008_v14, %v4029_v38  ;;  %v2815_v18 = vpop.f32.mrb[62].mxu0  ;;  %v3010_v19 = vpop.f32.mrb[74].mxu1 }
 0x5a7   : > { %v2836_v26 = vmul.f32 %v2815_v18, %v4022_v34  ;;  %v3031_v27 = vmul.f32 %v3010_v19, %v4022_v34  ;;  %v2817_v35 = vpop.f32.mrb[63].mxu0  ;;  %v3012_v37 = vpop.f32.mrb[75].mxu1 }
 0x5a8   : > { %v4683_v45 = vadd.f32 %v2835_v15, %v2834_v50  ;;  %v4685_v42 = vadd.f32 %v3030_v17, %v3029_v5  ;;  %v2837_v51 = vmul.f32 %v2817_v35, %v4032_v39  ;;  %v3032_v9 = vmul.f32 %v3012_v37, %v4032_v39  ;;  %3051 = vrot.lane.b32.xlu0 %v4671_v2, %s3756_s19 }
 0x5a9   : > { %2854 = vrot.lane.b32.xlu1 %v4659_v43, %s3756_s19 }
 0x5aa   : > { %v4693_v38 = vadd.f32 %v2837_v51, %v2836_v26  ;;  %v4695_v52 = vadd.f32 %v3032_v9, %v3031_v27 }
 0x5ac   : > { %v2821_v34 = vpop.f32.mrb[64].mxu0  ;;  %v3016_v13 = vpop.f32.mrb[76].mxu1  ;;  %2860 = vrot.lane.b32.xlu0 %v4693_v38, %s3756_s19 }
 0x5ad   : > { %v2838_v50 = vmul.f32 %v2821_v34, %v4070_v54  ;;  %v3033_v5 = vmul.f32 %v3016_v13, %v4070_v54  ;;  %3049 = vrot.lane.b32.xlu1 %v4661_v16, %s3756_s19  ;;  %v2823_v39 = vpop.f32.mrb[65].mxu0  ;;  %v3018_v14 = vpop.f32.mrb[77].mxu1 }
 0x5ae   : > { %v2839_v15 = vmul.f32 %v2823_v39, %v4064_v63  ;;  %v3034_v17 = vmul.f32 %v3018_v14, %v4064_v63  ;;  %v2825_v18 = vpop.f32.mrb[66].mxu0  ;;  %v3020_v19 = vpop.f32.mrb[78].mxu1 }
 0x5af   : > { %v2840_v26 = vmul.f32 %v2825_v18, %v4058_v61  ;;  %v3035_v27 = vmul.f32 %v3020_v19, %v4058_v61  ;;  %v2827_v35 = vpop.f32.mrb[67].mxu0  ;;  %v3022_v37 = vpop.f32.mrb[79].mxu1 }
 0x5b0   : > { %v4707_v51 = vadd.f32 %v2839_v15, %v2838_v50  ;;  %v4709_v54 = vadd.f32 %v3034_v17, %v3033_v5  ;;  %v2841_v9 = vmul.f32 %v2827_v35, %v4067_v57  ;;  %v3036_v34 = vmul.f32 %v3022_v37, %v4067_v57  ;;  %3055 = vrot.lane.b32.xlu0 %v4695_v52, %s3756_s19 }
 0x5b1   : > { %2858 = vrot.lane.b32.xlu1 %v4683_v45, %s3756_s19 }
 0x5b2   : > { %v4717_v63 = vadd.f32 %v2841_v9, %v2840_v26  ;;  %v4719_v13 = vadd.f32 %v3036_v34, %v3035_v27 }
 0x5b4   : > { %2864 = vrot.lane.b32.xlu0 %v4717_v63, %s3756_s19 }
 0x5b5   : > { %3053 = vrot.lane.b32.xlu1 %v4685_v42, %s3756_s19 }
 0x5b8   : > { %3059 = vrot.lane.b32.xlu0 %v4719_v13, %s3756_s19 }
 0x5b9   : > { %2862 = vrot.lane.b32.xlu1 %v4707_v51, %s3756_s19 }
 0x5bd   : > { %3057 = vrot.lane.b32.xlu1 %v4709_v54, %s3756_s19 }
 0x5cc   : > { %v1691_v61 = vpop.permute.xlu0 %1690 }
 0x5cd   : > { %v4732_v57 = vadd.f32 %v1691_v61, %v4449_v6 }
 0x5ce   : > { %v1693_v50 = vpop.permute.xlu1 %1692 }
 0x5cf   : > { %v4735_v5 = vadd.f32 %v1693_v50, %v4455_v11  ;;  %1720 = vrot.lane.b32.xlu0 %v4732_v57, %s3757_s23 }
 0x5d0   : > { %v1880_v39 = vpop.permute.xlu0 %1879 }
 0x5d1   : > { %v4740_v14 = vadd.f32 %v1880_v39, %v4451_v7  ;;  %1722 = vrot.lane.b32.xlu1 %v4735_v5, %s3757_s23 }
 0x5d2   : > { %v1882_v15 = vpop.permute.xlu1 %1881 }
 0x5d3   : > { %v4745_v17 = vadd.f32 %v1882_v15, %v4457_v53  ;;  %1909 = vrot.lane.b32.xlu0 %v4740_v14, %s3757_s23 }
 0x5d4   : > { %v1884_v18 = vpop.permute.xlu0 %1883 }
 0x5d5   : > { %1911 = vrot.lane.b32.xlu1 %v4745_v17, %s3757_s23  ;;  %v4757_v19 = vadd.f32 %v1884_v18, %v4473_v29 }
 0x5d6   : > { %v1695_v6 = vpop.permute.xlu1 %1694 }
 0x5d7   : > { %v4752_v11 = vadd.f32 %v1695_v6, %v4471_v28 }
 0x5d9   : > { %1724 = vrot.lane.b32.xlu0 %v4752_v11, %s3757_s23 }
 0x5da   : > { %v1697_v7 = vpop.permute.xlu1 %1696 }
 0x5db   : > { %v4760_v53 = vadd.f32 %v1697_v7, %v4479_v32 }
 0x5dc   : > { %v1699_v26 = vpop.permute.xlu0 %1698 }
 0x5dd   : > { %1913 = vrot.lane.b32.xlu0 %v4757_v19, %s3757_s23  ;;  %1726 = vrot.lane.b32.xlu1 %v4760_v53, %s3757_s23  ;;  %v4767_v27 = vadd.f32 %v1699_v26, %v4493_v58 }
 0x5de   : > { %v1886_v28 = vpop.permute.xlu1 %1885 }
 0x5df   : > { %v4770_v35 = vadd.f32 %v1886_v28, %v4481_v33 }
 0x5e0   : > { %v1888_v37 = vpop.permute.xlu0 %1887 }
 0x5e1   : > { %1728 = vrot.lane.b32.xlu0 %v4767_v27, %s3757_s23  ;;  %1915 = vrot.lane.b32.xlu1 %v4770_v35, %s3757_s23  ;;  %v4777_v32 = vadd.f32 %v1888_v37, %v4495_v59 }
 0x5e2   : > { %v1701_v29 = vpop.permute.xlu1 %1700 }
 0x5e3   : > { %v4780_v9 = vadd.f32 %v1701_v29, %v4501_v0 }
 0x5e4   : > { %v2075_v34 = vpop.permute.xlu0 %2074 }
 0x5e5   : > { %5111 = vst [vmem:[#allocation2_spill] sm:$0xff] %v4780_v9  ;;  %1917 = vrot.lane.b32.xlu0 %v4777_v32, %s3757_s23  ;;  %1730 = vrot.lane.b32.xlu1 %v4780_v9, %s3757_s23  ;;  %v4787_v58 = vadd.f32 %v2075_v34, %v4517_v20 }
 0x5e6   : > { %v1890_v33 = vpop.permute.xlu1 %1889 }
 0x5e7   : > { %v4790_v61 = vadd.f32 %v1890_v33, %v4503_v3 }
 0x5e8   : > { %v2272_v50 = vpop.permute.xlu0 %2271 }
 0x5e9   : > { %5112 = vst [vmem:[#allocation3_spill] sm:$0xff] %v4790_v61  ;;  %2104 = vrot.lane.b32.xlu0 %v4787_v58, %s3757_s23  ;;  %1919 = vrot.lane.b32.xlu1 %v4790_v61, %s3757_s23  ;;  %v4812_v18 = vadd.f32 %v2272_v50, %v4527_v25 }
 0x5ea   : > { %v2270_v59 = vpop.permute.xlu1 %2269 }
 0x5eb   : > { %v4797_v0 = vadd.f32 %v2270_v59, %v4519_v21 }
 0x5ec   : > { %v2079_v39 = vpop.permute.xlu0 %2078 }
 0x5ed   : > { %2299 = vrot.lane.b32.xlu0 %v4797_v0, %s3757_s23  ;;  %v4802_v15 = vadd.f32 %v2079_v39, %v4541_v36 }
 0x5ee   : > { %v2077_v20 = vpop.permute.xlu1 %2076 }
 0x5ef   : > { %v4805_v3 = vadd.f32 %v2077_v20, %v4525_v24 }
 0x5f0   : > { %v2276_v6 = vpop.permute.xlu0 %2275 }
 0x5f1   : > { %2108 = vrot.lane.b32.xlu0 %v4802_v15, %s3757_s23  ;;  %2106 = vrot.lane.b32.xlu1 %v4805_v3, %s3757_s23  ;;  %v4832_v37 = vadd.f32 %v2276_v6, %v4551_v62 }
 0x5f2   : > { %v2274_v21 = vpop.permute.xlu1 %2273 }
 0x5f3   : > { %v4815_v7 = vadd.f32 %v2274_v21, %v4543_v48 }
 0x5f4   : > { %v2083_v26 = vpop.permute.xlu0 %2082 }
 0x5f5   : > { %2301 = vrot.lane.b32.xlu1 %v4812_v18, %s3757_s23  ;;  %2303 = vrot.lane.b32.xlu0 %v4815_v7, %s3757_s23  ;;  %v4822_v36 = vadd.f32 %v2083_v26, %v4565_v22 }
 0x5f6   : > { %v2081_v24 = vpop.permute.xlu1 %2080 }
 0x5f7   : > { %5113 = vst [vmem:[#allocation4_spill] sm:$0xff] %v4822_v36  ;;  %v4825_v28 = vadd.f32 %v2081_v24, %v4549_v60 }
 0x5f8   : > { %v2280_v25 = vpop.permute.xlu0 %2279 }
 0x5f9   : > { %2112 = vrot.lane.b32.xlu0 %v4822_v36, %s3757_s23  ;;  %2110 = vrot.lane.b32.xlu1 %v4825_v28, %s3757_s23  ;;  %v4847_v62 = vadd.f32 %v2280_v25, %v4575_v31 }
 0x5fa   : > { %v2278_v48 = vpop.permute.xlu1 %2277 }
 0x5fb   : > { %v4835_v29 = vadd.f32 %v2278_v48, %v4567_v23  ;;  %5116 = vst [vmem:[#allocation7_spill] sm:$0xff] %v4847_v62 }
 0x5fd   : > { %5114 = vst [vmem:[#allocation5_spill] sm:$0xff] %v4835_v29  ;;  %2305 = vrot.lane.b32.xlu1 %v4832_v37, %s3757_s23  ;;  %2307 = vrot.lane.b32.xlu0 %v4835_v29, %s3757_s23 }
 0x5fe   : > { %v2467_v60 = vpop.permute.xlu0 %2466  ;;  %v2085_v22 = vpop.permute.xlu1 %2084 }
 0x5ff   : > { %v4842_v34 = vadd.f32 %v2085_v22, %v4573_v30  ;;  %v4857_v30 = vadd.f32 %v2467_v60, %v4597_v8 }
 0x601   : > { %5115 = vst [vmem:[#allocation6_spill] sm:$0xff] %v4842_v34  ;;  %2114 = vrot.lane.b32.xlu1 %v4842_v34, %s3757_s23 }
 0x602   : > { %v2662_v33 = vpop.permute.xlu0 %2661 }
 0x603   : > { %v2465_v23 = vpop.permute.xlu1 %2464 }
 0x604   : > { %v4850_v50 = vadd.f32 %v2465_v23, %v4589_v4  ;;  %v4867_v4 = vadd.f32 %v2662_v33, %v4599_v10 }
 0x605   : > { %2309 = vrot.lane.b32.xlu1 %v4847_v62, %s3757_s23 }
 0x606   : > { %2494 = vrot.lane.b32.xlu0 %v4850_v50, %s3757_s23  ;;  %v2471_v59 = vpop.permute.xlu0 %2470 }
 0x607   : > { %v2660_v39 = vpop.permute.xlu1 %2659  ;;  %v4877_v8 = vadd.f32 %v2471_v59, %v4621_v46 }
 0x608   : > { %v4860_v20 = vadd.f32 %v2660_v39, %v4591_v1 }
 0x609   : > { %2496 = vrot.lane.b32.xlu1 %v4857_v30, %s3757_s23 }
 0x60a   : > { %2689 = vrot.lane.b32.xlu0 %v4860_v20, %s3757_s23  ;;  %v2666_v31 = vpop.permute.xlu0 %2665 }
 0x60b   : > { %v2469_v6 = vpop.permute.xlu1 %2468 }
 0x60c   : > { %v4870_v21 = vadd.f32 %v2469_v6, %v4611_v49  ;;  %v4887_v49 = vadd.f32 %v2666_v31, %v4623_v56 }
 0x60d   : > { %2691 = vrot.lane.b32.xlu1 %v4867_v4, %s3757_s23 }
 0x60e   : > { %2498 = vrot.lane.b32.xlu0 %v4870_v21, %s3757_s23  ;;  %v2475_v1 = vpop.permute.xlu0 %2474  ;;  %5117 = vst [vmem:[#allocation8_spill] sm:$0xff] %v4887_v49 }
 0x60f   : > { %v2664_v26 = vpop.permute.xlu1 %2663  ;;  %v4897_v46 = vadd.f32 %v2475_v1, %v4645_v55 }
 0x610   : > { %v4880_v24 = vadd.f32 %v2664_v26, %v4613_v47 }
 0x611   : > { %2500 = vrot.lane.b32.xlu1 %v4877_v8, %s3757_s23  ;;  %5119 = vst [vmem:[#allocation10_spill] sm:$0xff] %v4897_v46 }
 0x612   : > { %2693 = vrot.lane.b32.xlu0 %v4880_v24, %s3757_s23  ;;  %v2670_v10 = vpop.permute.xlu0 %2669 }
 0x613   : > { %v2473_v25 = vpop.permute.xlu1 %2472 }
 0x614   : > { %v4890_v48 = vadd.f32 %v2473_v25, %v4635_v40  ;;  %v4907_v40 = vadd.f32 %v2670_v10, %v4647_v44 }
 0x615   : > { %2695 = vrot.lane.b32.xlu1 %v4887_v49, %s3757_s23 }
 0x616   : > { %5118 = vst [vmem:[#allocation9_spill] sm:$0xff] %v4890_v48  ;;  %2502 = vrot.lane.b32.xlu0 %v4890_v48, %s3757_s23  ;;  %v2857_v47 = vpop.permute.xlu0 %2856  ;;  %5121 = vst [vmem:[#allocation12_spill] sm:$0xff] %v4907_v40 }
 0x617   : > { %v2668_v60 = vpop.permute.xlu1 %2667  ;;  %v4917_v55 = vadd.f32 %v2857_v47, %v4669_v12 }
 0x618   : > { %v4900_v22 = vadd.f32 %v2668_v60, %v4637_v41 }
 0x619   : > { %2504 = vrot.lane.b32.xlu1 %v4897_v46, %s3757_s23 }
 0x61a   : > { %5120 = vst [vmem:[#allocation11_spill] sm:$0xff] %v4900_v22  ;;  %2697 = vrot.lane.b32.xlu0 %v4900_v22, %s3757_s23  ;;  %v3052_v56 = vpop.permute.xlu0 %3051 }
 0x61b   : > { %v2855_v33 = vpop.permute.xlu1 %2854  ;;  %v4927_v44 = vadd.f32 %v3052_v56, %v4671_v2 }
 0x61c   : > { %v4910_v23 = vadd.f32 %v2855_v33, %v4659_v43 }
 0x61d   : > { %2699 = vrot.lane.b32.xlu1 %v4907_v40, %s3757_s23 }
 0x61e   : > { %2884 = vrot.lane.b32.xlu0 %v4910_v23, %s3757_s23  ;;  %v2861_v41 = vpop.permute.xlu0 %2860 }
 0x61f   : > { %v3050_v59 = vpop.permute.xlu1 %3049 }
 0x620   : > { %v4920_v39 = vadd.f32 %v3050_v59, %v4661_v16  ;;  %v4937_v16 = vadd.f32 %v2861_v41, %v4693_v38 }
 0x621   : > { %2886 = vrot.lane.b32.xlu1 %v4917_v55, %s3757_s23 }
 0x622   : > { %3079 = vrot.lane.b32.xlu0 %v4920_v39, %s3757_s23  ;;  %v3056_v31 = vpop.permute.xlu0 %3055  ;;  %5123 = vst [vmem:[#allocation14_spill] sm:$0xff] %v4937_v16 }
 0x623   : > { %v2859_v43 = vpop.permute.xlu1 %2858 }
 0x624   : > { %v4930_v6 = vadd.f32 %v2859_v43, %v4683_v45  ;;  %v4947_v45 = vadd.f32 %v3056_v31, %v4695_v52 }
 0x625   : > { %3081 = vrot.lane.b32.xlu1 %v4927_v44, %s3757_s23 }
 0x626   : > { %5122 = vst [vmem:[#allocation13_spill] sm:$0xff] %v4930_v6  ;;  %2888 = vrot.lane.b32.xlu0 %v4930_v6, %s3757_s23  ;;  %v2865_v2 = vpop.permute.xlu0 %2864  ;;  %5125 = vst [vmem:[#allocation16_spill] sm:$0xff] %v4947_v45 }
 0x627   : > { %v3054_v12 = vpop.permute.xlu1 %3053 }
 0x628   : > { %v4940_v1 = vadd.f32 %v3054_v12, %v4685_v42  ;;  %v4957_v42 = vadd.f32 %v2865_v2, %v4717_v63 }
 0x629   : > { %2890 = vrot.lane.b32.xlu1 %v4937_v16, %s3757_s23 }
 0x62a   : > { %5124 = vst [vmem:[#allocation15_spill] sm:$0xff] %v4940_v1  ;;  %3083 = vrot.lane.b32.xlu0 %v4940_v1, %s3757_s23  ;;  %5127 = vst [vmem:[#allocation18_spill] sm:$0xff] %v4957_v42  ;;  %v3060_v25 = vpop.permute.xlu0 %3059 }
 0x62b   : > { %v2863_v26 = vpop.permute.xlu1 %2862  ;;  %v4967_v52 = vadd.f32 %v3060_v25, %v4719_v13 }
 0x62c   : > { %v4950_v10 = vadd.f32 %v2863_v26, %v4707_v51 }
 0x62d   : > { %3085 = vrot.lane.b32.xlu1 %v4947_v45, %s3757_s23  ;;  %5129 = vst [vmem:[#allocation20_spill] sm:$0xff] %v4967_v52 }
 0x62e   : > { %5126 = vst [vmem:[#allocation17_spill] sm:$0xff] %v4950_v10  ;;  %2892 = vrot.lane.b32.xlu0 %v4950_v10, %s3757_s23 }
 0x62f   : > { %v3058_v38 = vpop.permute.xlu1 %3057 }
 0x630   : > { %v4960_v47 = vadd.f32 %v3058_v38, %v4709_v54 }
 0x631   : > { %2894 = vrot.lane.b32.xlu1 %v4957_v42, %s3757_s23 }
 0x632   : > { %5128 = vst [vmem:[#allocation19_spill] sm:$0xff] %v4960_v47  ;;  %3087 = vrot.lane.b32.xlu0 %v4960_v47, %s3757_s23 }
 0x635   : > { %3089 = vrot.lane.b32.xlu1 %v4967_v52, %s3757_s23 }
 0x641   : > { %v1721_v51 = vpop.permute.xlu0 %1720 }
 0x642   : > { %v1738_v61 = vadd.f32 %v1721_v51, %v4732_v57 }
 0x643   : > { %v1723_v63 = vpop.permute.xlu1 %1722 }
 0x644   : > { %v1739_v36 = vadd.f32 %v1723_v63, %v4735_v5 }
 0x645   : > { %v1910_v60 = vpop.permute.xlu0 %1909 }
 0x646   : > { %v1927_v29 = vadd.f32 %v1910_v60, %v4740_v14 }
 0x647   : > { %v1912_v56 = vpop.permute.xlu1 %1911 }
 0x64b   : > { %v1725_v33 = vpop.permute.xlu0 %1724 }
 0x64f   : > { %v1914_v41 = vpop.permute.xlu0 %1913  ;;  %v1727_v54 = vpop.permute.xlu1 %1726 }
 0x653   : > { %v4971_v59 = vpop.permute.xlu0 %1728  ;;  %v1916_v43 = vpop.permute.xlu1 %1915 }
 0x654   : > { %5130 = vst [vmem:[#allocation21_spill] sm:$0xff] %v4971_v59 }
 0x657   : > { %v4973_v31 = vpop.permute.xlu0 %1917  ;;  %v4975_v12 = vpop.permute.xlu1 %1730 }
 0x658   : > { %5131 = vst [vmem:[#allocation22_spill] sm:$0xff] %v4975_v12 }
 0x65b   : > { %v2105_v2 = vpop.permute.xlu0 %2104  ;;  %v4977_v13 = vpop.permute.xlu1 %1919  ;;  %v5139_v63 = vld [vmem:[#allocation21_spill] sm:$0xff] }
 0x65c   : > { %5132 = vst [vmem:[#allocation23_spill] sm:$0xff] %v4977_v13 }
 0x65f   : > { %v2300_v26 = vpop.permute.xlu0 %2299 }
 0x660   : > { %v2317_v6 = vadd.f32 %v2300_v26, %v4797_v0 }
 0x663   : > { %v2109_v38 = vpop.permute.xlu0 %2108  ;;  %v2107_v25 = vpop.permute.xlu1 %2106 }
 0x664   : > { %v2123_v59 = vadd.f32 %v2107_v25, %v4805_v3  ;;  %v1740_v3 = vadd.f32 %v1725_v33, %v4752_v11  ;;  %v5140_v33 = vld [vmem:[#allocation4_spill] sm:$0xff] }
 0x667   : > { %v2302_v52 = vpop.permute.xlu1 %2301  ;;  %v2304_v47 = vpop.permute.xlu0 %2303 }
 0x668   : > { %v2318_v57 = vadd.f32 %v2302_v52, %v4812_v18  ;;  %v1930_v18 = vadd.f32 %v1916_v43, %v4770_v35  ;;  %v5144_v43 = vld [vmem:[#allocation23_spill] sm:$0xff] }
 0x66b   : > { %v2111_v42 = vpop.permute.xlu1 %2110  ;;  %v4979_v40 = vpop.permute.xlu0 %2112 }
 0x66c   : > { %5133 = vst [vmem:[#allocation24_spill] sm:$0xff] %v4979_v40  ;;  %v2125_v11 = vadd.f32 %v2111_v42, %v4825_v28 }
 0x66f   : > { %v2306_v10 = vpop.permute.xlu1 %2305  ;;  %v4983_v46 = vpop.permute.xlu0 %2307 }
 0x670   : > { %5135 = vst [vmem:[#allocation26_spill] sm:$0xff] %v4983_v46  ;;  %v1928_v46 = vadd.f32 %v1912_v56, %v4745_v17  ;;  %v2320_v52 = vadd.f32 %v2306_v10, %v4832_v37  ;;  %v1742_v56 = vadd.f32 %v5139_v63, %v4767_v27 }
 0x673   : > { %v4981_v45 = vpop.permute.xlu1 %2114 }
 0x674   : > { %5134 = vst [vmem:[#allocation25_spill] sm:$0xff] %v4981_v45  ;;  %v2122_v45 = vadd.f32 %v2105_v2, %v4787_v58  ;;  %v1929_v58 = vadd.f32 %v1914_v41, %v4757_v19  ;;  %v5141_v41 = vld [vmem:[#allocation24_spill] sm:$0xff] }
 0x677   : > { %v4985_v22 = vpop.permute.xlu1 %2309  ;;  %v5148_v27 = vld [vmem:[#allocation26_spill] sm:$0xff] }
 0x678   : > { %5136 = vst [vmem:[#allocation27_spill] sm:$0xff] %v4985_v22  ;;  %v2495_v62 = vpop.permute.xlu0 %2494  ;;  %v1933_v22 = vmax.f32 %v1738_v61, %v1927_v29 }
 0x67a   : > { %v2128_v60 = vmax.f32 %v1933_v22, %v2122_v45  ;;  %v2124_v22 = vadd.f32 %v2109_v38, %v4802_v15  ;;  %v5147_v38 = vld [vmem:[#allocation5_spill] sm:$0xff] }
 0x67b   : > { %v2497_v1 = vpop.permute.xlu1 %2496  ;;  %v2321_v25 = vadd.f32 %v5148_v27, %v5147_v38 }
 0x67c   : > { %v2690_v48 = vpop.permute.xlu0 %2689  ;;  %v2323_v17 = vmax.f32 %v2128_v60, %v2317_v6  ;;  %v2513_v5 = vadd.f32 %v2497_v1, %v4857_v30  ;;  %v1741_v30 = vadd.f32 %v1727_v54, %v4760_v53  ;;  %v1931_v53 = vadd.f32 %v4973_v31, %v4777_v32 }
 0x67d   : > { %v2707_v61 = vadd.f32 %v2690_v48, %v4860_v20  ;;  %v2319_v20 = vadd.f32 %v2304_v47, %v4815_v7  ;;  %v2126_v54 = vadd.f32 %v5141_v41, %v5140_v33 }
 0x67e   : > { %v1937_v26 = vmax.f32 %v1742_v56, %v1931_v53 }
 0x67f   : > { %v2692_v16 = vpop.permute.xlu1 %2691 }
 0x680   : > { %v2499_v34 = vpop.permute.xlu0 %2498  ;;  %v2708_v19 = vadd.f32 %v2692_v16, %v4867_v4  ;;  %v1936_v16 = vmax.f32 %v1741_v30, %v1930_v18  ;;  %v2132_v18 = vmax.f32 %v1937_v26, %v2126_v54  ;;  %v5164_v54 = vld [vmem:[#allocation18_spill] sm:$0xff] }
 0x681   : > { %v2514_v35 = vadd.f32 %v2499_v34, %v4870_v21 }
 0x683   : > { %v2501_v12 = vpop.permute.xlu1 %2500 }
 0x684   : > { %v2694_v9 = vpop.permute.xlu0 %2693  ;;  %v2515_v37 = vadd.f32 %v2501_v12, %v4877_v8  ;;  %v5145_v12 = vld [vmem:[#allocation8_spill] sm:$0xff] }
 0x685   : > { %v2709_v34 = vadd.f32 %v2694_v9, %v4880_v24  ;;  %v5142_v9 = vld [vmem:[#allocation13_spill] sm:$0xff] }
 0x687   : > { %v4988_v49 = vpop.permute.xlu1 %2695 }
 0x688   : > { %5137 = vst [vmem:[#allocation28_spill] sm:$0xff] %v4988_v49  ;;  %v4990_v13 = vpop.permute.xlu0 %2502  ;;  %v1934_v49 = vmax.f32 %v1739_v36, %v1928_v46 }
 0x689   : > { %5138 = vst [vmem:[#allocation29_spill] sm:$0xff] %v4990_v13  ;;  %v2512_v13 = vadd.f32 %v2495_v62, %v4850_v50  ;;  %v1935_v50 = vmax.f32 %v1740_v3, %v1929_v58  ;;  %v5149_v58 = vld [vmem:[#allocation2_spill] sm:$0xff] }
 0x68a   : > { %v2129_v29 = vmax.f32 %v1934_v49, %v2123_v59  ;;  %v5143_v59 = vld [vmem:[#allocation3_spill] sm:$0xff] }
 0x68b   : > { %v4996_v40 = vpop.permute.xlu1 %2504  ;;  %v2518_v45 = vmax.f32 %v2323_v17, %v2512_v13  ;;  %v1932_v31 = vadd.f32 %v5144_v43, %v5143_v59  ;;  %v5150_v17 = vld [vmem:[#allocation22_spill] sm:$0xff] }
 0x68c   : > { %v5000_v14 = vpop.permute.xlu0 %2697  ;;  %v2324_v62 = vmax.f32 %v2129_v29, %v2318_v57  ;;  %v5151_v29 = vld [vmem:[#allocation6_spill] sm:$0xff] }
 0x68d   : > { %v2713_v49 = vmax.f32 %v2518_v45, %v2707_v61  ;;  %v1743_v61 = vadd.f32 %v5150_v17, %v5149_v58  ;;  %v5153_v45 = vld [vmem:[#allocation14_spill] sm:$0xff] }
 0x68e   : > { %v2519_v46 = vmax.f32 %v2324_v62, %v2513_v5  ;;  %v5152_v5 = vld [vmem:[#allocation25_spill] sm:$0xff] }
 0x68f   : > { %v5006_v0 = vpop.permute.xlu1 %2699  ;;  %v5146_v2 = vld [vmem:[#allocation28_spill] sm:$0xff]  ;;  %v5154_v62 = vld [vmem:[#allocation9_spill] sm:$0xff]  ;;  %v1938_v30 = vmax.f32 %v1743_v61, %v1932_v31 }
 0x690   : > { %v2885_v51 = vpop.permute.xlu0 %2884  ;;  %v2714_v7 = vmax.f32 %v2519_v46, %v2708_v19  ;;  %v2710_v13 = vadd.f32 %v5146_v2, %v5145_v12  ;;  %v5155_v19 = vld [vmem:[#allocation29_spill] sm:$0xff]  ;;  %v5158_v46 = vld [vmem:[#allocation27_spill] sm:$0xff]  ;;  %v5166_v2 = vld [vmem:[#allocation20_spill] sm:$0xff] }
 0x691   : > { %v2902_v36 = vadd.f32 %v2885_v51, %v4910_v23  ;;  %v2130_v23 = vmax.f32 %v1935_v50, %v2124_v22  ;;  %v2127_v51 = vadd.f32 %v5152_v5, %v5151_v29  ;;  %v2516_v50 = vadd.f32 %v5155_v19, %v5154_v62 }
 0x693   : > { %v2887_v48 = vpop.permute.xlu1 %2886  ;;  %v2908_v1 = vmax.f32 %v2713_v49, %v2902_v36  ;;  %v2325_v28 = vmax.f32 %v2130_v23, %v2319_v20  ;;  %v5156_v49 = vld [vmem:[#allocation15_spill] sm:$0xff]  ;;  %v2327_v23 = vmax.f32 %v2132_v18, %v2321_v25 }
 0x694   : > { %v3080_v15 = vpop.permute.xlu0 %3079  ;;  %v2903_v6 = vadd.f32 %v2887_v48, %v4917_v55 }
 0x695   : > { %v3097_v4 = vadd.f32 %v3080_v15, %v4920_v39  ;;  %v2131_v39 = vmax.f32 %v1936_v16, %v2125_v11  ;;  %v2520_v32 = vmax.f32 %v2325_v28, %v2514_v35  ;;  %v5157_v11 = vld [vmem:[#allocation7_spill] sm:$0xff] }
 0x696   : > { %v2909_v10 = vmax.f32 %v2714_v7, %v2903_v6  ;;  %v2322_v15 = vadd.f32 %v5158_v46, %v5157_v11  ;;  %v5159_v35 = vld [vmem:[#allocation11_spill] sm:$0xff]  ;;  %v5160_v7 = vld [vmem:[#allocation10_spill] sm:$0xff] }
 0x697   : > { %v3103_v21 = vmax.f32 %v2908_v1, %v3097_v4  ;;  %v3082_v55 = vpop.permute.xlu1 %3081  ;;  %v2326_v8 = vmax.f32 %v2131_v39, %v2320_v52  ;;  %v2715_v60 = vmax.f32 %v2520_v32, %v2709_v34  ;;  %v2711_v1 = vadd.f32 %v5000_v14, %v5159_v35 }
 0x698   : > { %v2889_v42 = vpop.permute.xlu0 %2888  ;;  %v3098_v47 = vadd.f32 %v3082_v55, %v4927_v44  ;;  %v2133_v52 = vmax.f32 %v1938_v30, %v2127_v51  ;;  %v2517_v53 = vadd.f32 %v4996_v40, %v5160_v7  ;;  %v2522_v39 = vmax.f32 %v2327_v23, %v2516_v50 }
 0x699   : > { %3110 = vst.msk [vmem:[%s5026_s26] sm:$0xff] %vm3109_vm3, %v3103_v21  ;;  %v2904_v24 = vadd.f32 %v2889_v42, %v5142_v9  ;;  %v2521_v3 = vmax.f32 %v2326_v8, %v2515_v37  ;;  %v5161_v21 = vld [vmem:[#allocation16_spill] sm:$0xff]  ;;  %v5162_v37 = vld [vmem:[#allocation17_spill] sm:$0xff] }
 0x69a   : > { %v3104_v44 = vmax.f32 %v2909_v10, %v3098_v47  ;;  %v2328_v42 = vmax.f32 %v2133_v52, %v2322_v15  ;;  %v5163_v47 = vld [vmem:[#allocation12_spill] sm:$0xff]  ;;  %v2717_v56 = vmax.f32 %v2522_v39, %v2711_v1 }
 0x69b   : > { %v2891_v57 = vpop.permute.xlu1 %2890  ;;  %v2910_v20 = vmax.f32 %v2715_v60, %v2904_v24  ;;  %v2716_v6 = vmax.f32 %v2521_v3, %v2710_v13  ;;  %v2712_v14 = vadd.f32 %v5006_v0, %v5163_v47  ;;  %v5165_v24 = vld [vmem:[#allocation19_spill] sm:$0xff] }
 0x69c   : > { %3111 = vst.msk [vmem:[%s5026_s26 + $0x8] sm:$0xff] %vm3109_vm3, %v3104_v44  ;;  %v3084_v22 = vpop.permute.xlu0 %3083  ;;  %v2905_v36 = vadd.f32 %v2891_v57, %v5153_v45  ;;  %v2523_v41 = vmax.f32 %v2328_v42, %v2517_v53 }
 0x69d   : > { %v3099_v48 = vadd.f32 %v3084_v22, %v5156_v49 }
 0x69e   : > { %v2911_v28 = vmax.f32 %v2716_v6, %v2905_v36  ;;  %v2718_v43 = vmax.f32 %v2523_v41, %v2712_v14 }
 0x69f   : > { %v3105_v4 = vmax.f32 %v2910_v20, %v3099_v48  ;;  %v3086_v16 = vpop.permute.xlu1 %3085 }
 0x6a0   : > { %v2893_v34 = vpop.permute.xlu0 %2892  ;;  %v3100_v55 = vadd.f32 %v3086_v16, %v5161_v21 }
 0x6a1   : > { %3112 = vst.msk [vmem:[%s5026_s26 + $0x10] sm:$0xff] %vm3109_vm3, %v3105_v4  ;;  %v2906_v10 = vadd.f32 %v2893_v34, %v5162_v37 }
 0x6a2   : > { %v3106_v63 = vmax.f32 %v2911_v28, %v3100_v55 }
 0x6a3   : > { %v2895_v33 = vpop.permute.xlu1 %2894  ;;  %v2912_v9 = vmax.f32 %v2717_v56, %v2906_v10 }
 0x6a4   : > { %3113 = vst.msk [vmem:[%s5026_s26 + $0x18] sm:$0xff] %vm3109_vm3, %v3106_v63  ;;  %v3088_v40 = vpop.permute.xlu0 %3087  ;;  %v2907_v32 = vadd.f32 %v2895_v33, %v5164_v54 }
 0x6a5   : > { %v3101_v59 = vadd.f32 %v3088_v40, %v5165_v24 }
 0x6a6   : > { %v2913_v12 = vmax.f32 %v2718_v43, %v2907_v32 }
 0x6a7   : > { %v3107_v31 = vmax.f32 %v2912_v9, %v3101_v59  ;;  %v3090_v8 = vpop.permute.xlu1 %3089 }
 0x6a8   : > { %v3102_v13 = vadd.f32 %v3090_v8, %v5166_v2 }
 0x6a9   : > { %3114 = vst.msk [vmem:[%s5026_s26 + $0x20] sm:$0xff] %vm3109_vm3, %v3107_v31 }
 0x6aa   : > { %v3108_v0 = vmax.f32 %v2913_v12, %v3102_v13 }
 0x6ac   : > { %3115 = vst.msk [vmem:[%s5026_s26 + $0x28] sm:$0xff] %vm3109_vm3, %v3108_v0 }
 0x6ad PF: > { %s21_s17 = sadd.s32 1, %s3753_s17  }
 0x6ae   : > { %p18_p4 = scmp.ge.s32.totalorder %s21_s17, 4  }
 0x6b0   :  { %20 = sbr.rel (!%p18_p4) target bundleno = 1 (0x1), region = 102 }

</bundles_post_ra>
